<compile_context>
chip_gen: v7x
topology: tpu7x:2x2x1
jax: 0.10.0
libtpu: 0.0.40
codegen_flags: <defaults>
</compile_context>

<pallas_src>
import jax
import jax.numpy as jnp
from jax.experimental import pallas as pl
from jax.experimental.pallas import tpu as pltpu


def _rcu_kernel(x_ref, w1_ref, b1_ref, w2_ref, b2_ref, o_ref, buf_ref):
    """One grid step: full residual conv unit on one NHWC image.

    x_ref   : (H, W, C)        unpadded input block
    w*_ref  : (9*C, C) bf16    im2col-ordered weights (kh, kw, C_in) x C_out
    b*_ref  : (1, C)   f32
    o_ref   : (H, W, C)        output block
    buf_ref : (H+2, Wb, C) f32 scratch; rows 0 / H+1 and cols [W, Wb) are a
                               zero frame (Wb = round_up(W+1, 8)).
    """
    Hp, Wb, C = buf_ref.shape
    H, W, _ = o_ref.shape
    f32 = jnp.float32

    # ---- stage 0: relu(x) into the interior of the zero-framed scratch ----
    xv = x_ref[...].astype(f32)                      # load once (also residual)
    zero_row = jnp.zeros((1, Wb, C), f32)
    zero_tail = jnp.zeros((H, Wb - W, C), f32)
    buf_ref[0:1, :, :] = zero_row                    # top halo row
    buf_ref[Hp - 1:Hp, :, :] = zero_row              # bottom halo row
    buf_ref[1:H + 1, W:Wb, :] = zero_tail            # zero tail columns
    buf_ref[1:H + 1, 0:W, :] = jnp.maximum(xv, 0.0)  # aligned interior store

    def conv3x3(w_ref, bias):
        # Full-width slabs; W shifts via pltpu.roll (wrap lands in the zero
        # tail, emulating the left/right conv padding).  Slices below are
        # leading-dim only -> free, no relayouts.
        a = buf_ref[...]                                           # (Hp, Wb, C) f32
        shifted = (
            pltpu.roll(a, shift=1, axis=1).astype(jnp.bfloat16),       # col w-1 (dw=0)
            a.astype(jnp.bfloat16),                                     # col w   (dw=1)
            pltpu.roll(a, shift=Wb - 1, axis=1).astype(jnp.bfloat16),  # col w+1 (dw=2)
        )
        cols = [shifted[dw][dh:dh + H] for dh in range(3) for dw in range(3)]
        patch = jnp.concatenate(cols, axis=-1).reshape(H * Wb, 9 * C)  # bf16 im2col
        y = jnp.dot(patch, w_ref[...], preferred_element_type=f32)    # one wide-K MXU dot
        return y + bias                                                # (H*Wb, C) f32

    b1 = b1_ref[...]                                  # (1, C) f32
    b2 = b2_ref[...]

    # ---- conv1 + relu: full-width aligned writeback, re-zero the tail ----
    y1 = jnp.maximum(conv3x3(w1_ref, b1), 0.0).reshape(H, Wb, C)
    buf_ref[1:H + 1, :, :] = y1
    buf_ref[1:H + 1, W:Wb, :] = zero_tail             # restore zero halo for conv2

    # ---- conv2 + residual -------------------------------------------------
    y2 = conv3x3(w2_ref, b2).reshape(H, Wb, C)
    out = y2[:, 0:W, :] + xv                          # aligned interior slice
    o_ref[...] = out.astype(o_ref.dtype)


@jax.jit
def residual_conv_unit(x, w1, b1, w2, b2):
    """Pallas equivalent of ResidualConvUnit.forward.

    x      : (N, C, H, W)   NCHW (PyTorch convention)
    w1, w2 : (C, C, 3, 3)   OIHW (PyTorch Conv2d.weight)
    b1, b2 : (C,)
    """
    N, C, H, W = x.shape
    Hp = H + 2
    Wb = 8 * pl.cdiv(W + 1, 8)        # >= W+1 zero-tail column(s), multiple of 8

    # NCHW -> NHWC (layout only; padding happens inside the kernel).
    x_nhwc = jnp.transpose(x, (0, 2, 3, 1))

    # OIHW -> im2col weight (kh*kw*C_in, C_out), bf16 MXU operands.
    def prep_w(w):
        return jnp.transpose(w, (2, 3, 1, 0)).reshape(9 * C, C).astype(jnp.bfloat16)

    w1_k, w2_k = prep_w(w1), prep_w(w2)
    b1_r = b1.reshape(1, C).astype(jnp.float32)
    b2_r = b2.reshape(1, C).astype(jnp.float32)

    out_nhwc = pl.pallas_call(
        _rcu_kernel,
        out_shape=jax.ShapeDtypeStruct((N, H, W, C), x.dtype),
        grid_spec=pltpu.PrefetchScalarGridSpec(
            num_scalar_prefetch=0,
            grid=(N,),
            in_specs=[
                pl.BlockSpec((None, H, W, C), lambda n: (n, 0, 0, 0)),
                pl.BlockSpec((9 * C, C), lambda n: (0, 0)),
                pl.BlockSpec((1, C), lambda n: (0, 0)),
                pl.BlockSpec((9 * C, C), lambda n: (0, 0)),
                pl.BlockSpec((1, C), lambda n: (0, 0)),
            ],
            out_specs=pl.BlockSpec((None, H, W, C), lambda n: (n, 0, 0, 0)),
            scratch_shapes=[pltpu.VMEM((Hp, Wb, C), jnp.float32)],
        ),
        compiler_params=pltpu.CompilerParams(
            dimension_semantics=("parallel",),
        ),
    )(x_nhwc, w1_k, b1_r, w2_k, b2_r)

    # NHWC -> NCHW
    return jnp.transpose(out_nhwc, (0, 3, 1, 2))


def _reference_rcu(x, w1, b1, w2, b2):
    """Pure-JAX reference mirroring the PyTorch module with the same precision
    policy as the kernel (bf16 conv operands, f32 accumulation, f32 bias)."""
    def conv(h, w, b):
        y = jax.lax.conv_general_dilated(
            h.astype(jnp.bfloat16), w.astype(jnp.bfloat16),
            window_strides=(1, 1), padding=((1, 1), (1, 1)),
            dimension_numbers=("NCHW", "OIHW", "NCHW"),
            preferred_element_type=jnp.float32)
        return y + b[None, :, None, None]

    out = jax.nn.relu(x)
    out = conv(out, w1, b1)
    out = jax.nn.relu(out)
    out = conv(out, w2, b2)
    return (out + x).astype(x.dtype)


if __name__ == "__main__":
    key = jax.random.PRNGKey(0)
    kx, kw1, kb1, kw2, kb2 = jax.random.split(key, 5)

    # features=128 keeps the channel (lane) dim MXU/lane-dense while staying small.
    N, C, H, W = 2, 128, 16, 16
    x = jax.random.normal(kx, (N, C, H, W), dtype=jnp.float32)
    fan_in = C * 3 * 3
    w1 = jax.random.normal(kw1, (C, C, 3, 3), jnp.float32) / jnp.sqrt(fan_in)
    b1 = 0.1 * jax.random.normal(kb1, (C,), jnp.float32)
    w2 = jax.random.normal(kw2, (C, C, 3, 3), jnp.float32) / jnp.sqrt(fan_in)
    b2 = 0.1 * jax.random.normal(kb2, (C,), jnp.float32)

    y = residual_conv_unit(x, w1, b1, w2, b2)
    jax.block_until_ready(y)

    assert y.shape == (N, C, H, W), y.shape
    assert y.dtype == x.dtype

    y_ref = _reference_rcu(x, w1, b1, w2, b2)
    max_err = float(jnp.max(jnp.abs(y - y_ref)))
    assert max_err < 1e-2, f"max abs error vs reference: {max_err}"

    print("KERNEL_OK")
</pallas_src>

<mosaic_0001>
module attributes {stable_mosaic.version = 11 : i64} {
  func.func @_rcu_kernel(%arg0: i32, %arg1: memref<1x16x16x128xf32, #tpu.memory_space<vmem>>, %arg2: memref<1152x128xbf16, #tpu.memory_space<vmem>>, %arg3: memref<1x128xf32, #tpu.memory_space<vmem>>, %arg4: memref<1152x128xbf16, #tpu.memory_space<vmem>>, %arg5: memref<1x128xf32, #tpu.memory_space<vmem>>, %arg6: memref<1x16x16x128xf32, #tpu.memory_space<vmem>>, %arg7: memref<18x24x128xf32, #tpu.memory_space<vmem>>) attributes {dimension_semantics = [#tpu.dimension_semantics<parallel>], iteration_bounds = array<i64: 2>, scalar_prefetch = 0 : i64, scratch_operands = 1 : i64, tpu.core_type = #tpu.core_type<tc>, window_params = [{transform_indices = @transform_0, window_bounds = array<i64: 1, 16, 16, 128>}, {pipeline_mode = #tpu.pipeline_mode<synchronous>, transform_indices = @transform_1, window_bounds = array<i64: 1152, 128>}, {pipeline_mode = #tpu.pipeline_mode<synchronous>, transform_indices = @transform_2, window_bounds = array<i64: 1, 128>}, {pipeline_mode = #tpu.pipeline_mode<synchronous>, transform_indices = @transform_3, window_bounds = array<i64: 1152, 128>}, {pipeline_mode = #tpu.pipeline_mode<synchronous>, transform_indices = @transform_4, window_bounds = array<i64: 1, 128>}, {transform_indices = @transform_5, window_bounds = array<i64: 1, 16, 16, 128>}]} {
    %c0 = arith.constant 0 : index
    %c0_0 = arith.constant 0 : index
    %c0_1 = arith.constant 0 : index
    %c0_2 = arith.constant 0 : index
    %0 = vector.load %arg1[%c0, %c0_0, %c0_1, %c0_2] : memref<1x16x16x128xf32, #tpu.memory_space<vmem>>, vector<1x16x16x128xf32>
    %1 = vector.shape_cast %0 : vector<1x16x16x128xf32> to vector<16x16x128xf32>
    %cst = arith.constant 0.000000e+00 : f32
    %2 = vector.broadcast %cst : f32 to vector<1x24x128xf32>
    %cst_3 = arith.constant 0.000000e+00 : f32
    %3 = vector.broadcast %cst_3 : f32 to vector<16x8x128xf32>
    %c0_4 = arith.constant 0 : index
    %c0_5 = arith.constant 0 : index
    %c0_6 = arith.constant 0 : index
    %4 = vector.load %arg7[%c0_4, %c0_5, %c0_6] : memref<18x24x128xf32, #tpu.memory_space<vmem>>, vector<1x24x128xf32>
    tpu.vector_store %arg7[%c0_4, %c0_5, %c0_6], %2 {strides = array<i32>} : memref<18x24x128xf32, #tpu.memory_space<vmem>>, vector<1x24x128xf32>,
    %c17 = arith.constant 17 : index
    %c0_7 = arith.constant 0 : index
    %c0_8 = arith.constant 0 : index
    %5 = vector.load %arg7[%c17, %c0_7, %c0_8] : memref<18x24x128xf32, #tpu.memory_space<vmem>>, vector<1x24x128xf32>
    tpu.vector_store %arg7[%c17, %c0_7, %c0_8], %2 {strides = array<i32>} : memref<18x24x128xf32, #tpu.memory_space<vmem>>, vector<1x24x128xf32>,
    %c1 = arith.constant 1 : index
    %c16 = arith.constant 16 : index
    %c0_9 = arith.constant 0 : index
    %6 = vector.load %arg7[%c1, %c16, %c0_9] : memref<18x24x128xf32, #tpu.memory_space<vmem>>, vector<16x8x128xf32>
    tpu.vector_store %arg7[%c1, %c16, %c0_9], %3 {strides = array<i32>} : memref<18x24x128xf32, #tpu.memory_space<vmem>>, vector<16x8x128xf32>,
    %cst_10 = arith.constant 0.000000e+00 : f32
    %7 = vector.broadcast %cst_10 : f32 to vector<16x16x128xf32>
    %8 = arith.maximumf %1, %7 : vector<16x16x128xf32>
    %c1_11 = arith.constant 1 : index
    %c0_12 = arith.constant 0 : index
    %c0_13 = arith.constant 0 : index
    %9 = vector.load %arg7[%c1_11, %c0_12, %c0_13] : memref<18x24x128xf32, #tpu.memory_space<vmem>>, vector<16x16x128xf32>
    tpu.vector_store %arg7[%c1_11, %c0_12, %c0_13], %8 {strides = array<i32>} : memref<18x24x128xf32, #tpu.memory_space<vmem>>, vector<16x16x128xf32>,
    %c0_14 = arith.constant 0 : index
    %c0_15 = arith.constant 0 : index
    %10 = vector.load %arg3[%c0_14, %c0_15] : memref<1x128xf32, #tpu.memory_space<vmem>>, vector<1x128xf32>
    %c0_16 = arith.constant 0 : index
    %c0_17 = arith.constant 0 : index
    %11 = vector.load %arg5[%c0_16, %c0_17] : memref<1x128xf32, #tpu.memory_space<vmem>>, vector<1x128xf32>
    %c0_18 = arith.constant 0 : index
    %c0_19 = arith.constant 0 : index
    %c0_20 = arith.constant 0 : index
    %12 = vector.load %arg7[%c0_18, %c0_19, %c0_20] : memref<18x24x128xf32, #tpu.memory_space<vmem>>, vector<18x24x128xf32>
    %c1_i32 = arith.constant 1 : i32
    %13 = tpu.dynamic_rotate %12 by %c1_i32 dim 1 : vector<18x24x128xf32>, i32 -> vector<18x24x128xf32>
    %14 = arith.truncf %13 : vector<18x24x128xf32> to vector<18x24x128xbf16>
    %15 = arith.truncf %12 : vector<18x24x128xf32> to vector<18x24x128xbf16>
    %c23_i32 = arith.constant 23 : i32
    %16 = tpu.dynamic_rotate %12 by %c23_i32 dim 1 : vector<18x24x128xf32>, i32 -> vector<18x24x128xf32>
    %17 = arith.truncf %16 : vector<18x24x128xf32> to vector<18x24x128xbf16>
    %18 = vector.extract_strided_slice %14 {offsets = [0, 0, 0], sizes = [16, 24, 128], strides = [1, 1, 1]} : vector<18x24x128xbf16> to vector<16x24x128xbf16>
    %19 = vector.extract_strided_slice %15 {offsets = [0, 0, 0], sizes = [16, 24, 128], strides = [1, 1, 1]} : vector<18x24x128xbf16> to vector<16x24x128xbf16>
    %20 = vector.extract_strided_slice %17 {offsets = [0, 0, 0], sizes = [16, 24, 128], strides = [1, 1, 1]} : vector<18x24x128xbf16> to vector<16x24x128xbf16>
    %21 = vector.extract_strided_slice %14 {offsets = [1, 0, 0], sizes = [16, 24, 128], strides = [1, 1, 1]} : vector<18x24x128xbf16> to vector<16x24x128xbf16>
    %22 = vector.extract_strided_slice %15 {offsets = [1, 0, 0], sizes = [16, 24, 128], strides = [1, 1, 1]} : vector<18x24x128xbf16> to vector<16x24x128xbf16>
    %23 = vector.extract_strided_slice %17 {offsets = [1, 0, 0], sizes = [16, 24, 128], strides = [1, 1, 1]} : vector<18x24x128xbf16> to vector<16x24x128xbf16>
    %24 = vector.extract_strided_slice %14 {offsets = [2, 0, 0], sizes = [16, 24, 128], strides = [1, 1, 1]} : vector<18x24x128xbf16> to vector<16x24x128xbf16>
    %25 = vector.extract_strided_slice %15 {offsets = [2, 0, 0], sizes = [16, 24, 128], strides = [1, 1, 1]} : vector<18x24x128xbf16> to vector<16x24x128xbf16>
    %26 = vector.extract_strided_slice %17 {offsets = [2, 0, 0], sizes = [16, 24, 128], strides = [1, 1, 1]} : vector<18x24x128xbf16> to vector<16x24x128xbf16>
    %27 = tpu.concatenate %18, %19, %20, %21, %22, %23, %24, %25, %26 in 2 : vector<16x24x128xbf16>, vector<16x24x128xbf16>, vector<16x24x128xbf16>, vector<16x24x128xbf16>, vector<16x24x128xbf16>, vector<16x24x128xbf16>, vector<16x24x128xbf16>, vector<16x24x128xbf16>, vector<16x24x128xbf16> -> vector<16x24x1152xbf16>
    %28 = vector.shape_cast %27 : vector<16x24x1152xbf16> to vector<384x1152xbf16>
    %c0_21 = arith.constant 0 : index
    %c0_22 = arith.constant 0 : index
    %29 = vector.load %arg2[%c0_21, %c0_22] : memref<1152x128xbf16, #tpu.memory_space<vmem>>, vector<1152x128xbf16>
    %cst_23 = arith.constant dense<0.000000e+00> : vector<384x128xf32>
    %30 = tpu.matmul %28, %29, %cst_23 {dimension_numbers = #tpu.dot_dimension_numbers<[1], [0], [0], [1], [0, 0, 1, 1], [], []>} : vector<384x1152xbf16>, vector<1152x128xbf16>, vector<384x128xf32> -> vector<384x128xf32>
    %31 = vector.broadcast %10 : vector<1x128xf32> to vector<384x128xf32>
    %32 = arith.addf %30, %31 : vector<384x128xf32>
    %cst_24 = arith.constant 0.000000e+00 : f32
    %33 = vector.broadcast %cst_24 : f32 to vector<384x128xf32>
    %34 = arith.maximumf %32, %33 : vector<384x128xf32>
    %35 = vector.shape_cast %34 : vector<384x128xf32> to vector<16x24x128xf32>
    %c1_25 = arith.constant 1 : index
    %c0_26 = arith.constant 0 : index
    %c0_27 = arith.constant 0 : index
    %36 = vector.load %arg7[%c1_25, %c0_26, %c0_27] : memref<18x24x128xf32, #tpu.memory_space<vmem>>, vector<16x24x128xf32>
    tpu.vector_store %arg7[%c1_25, %c0_26, %c0_27], %35 {strides = array<i32>} : memref<18x24x128xf32, #tpu.memory_space<vmem>>, vector<16x24x128xf32>,
    %c1_28 = arith.constant 1 : index
    %c16_29 = arith.constant 16 : index
    %c0_30 = arith.constant 0 : index
    %37 = vector.load %arg7[%c1_28, %c16_29, %c0_30] : memref<18x24x128xf32, #tpu.memory_space<vmem>>, vector<16x8x128xf32>
    tpu.vector_store %arg7[%c1_28, %c16_29, %c0_30], %3 {strides = array<i32>} : memref<18x24x128xf32, #tpu.memory_space<vmem>>, vector<16x8x128xf32>,
    %c0_31 = arith.constant 0 : index
    %c0_32 = arith.constant 0 : index
    %c0_33 = arith.constant 0 : index
    %38 = vector.load %arg7[%c0_31, %c0_32, %c0_33] : memref<18x24x128xf32, #tpu.memory_space<vmem>>, vector<18x24x128xf32>
    %c1_i32_34 = arith.constant 1 : i32
    %39 = tpu.dynamic_rotate %38 by %c1_i32_34 dim 1 : vector<18x24x128xf32>, i32 -> vector<18x24x128xf32>
    %40 = arith.truncf %39 : vector<18x24x128xf32> to vector<18x24x128xbf16>
    %41 = arith.truncf %38 : vector<18x24x128xf32> to vector<18x24x128xbf16>
    %c23_i32_35 = arith.constant 23 : i32
    %42 = tpu.dynamic_rotate %38 by %c23_i32_35 dim 1 : vector<18x24x128xf32>, i32 -> vector<18x24x128xf32>
    %43 = arith.truncf %42 : vector<18x24x128xf32> to vector<18x24x128xbf16>
    %44 = vector.extract_strided_slice %40 {offsets = [0, 0, 0], sizes = [16, 24, 128], strides = [1, 1, 1]} : vector<18x24x128xbf16> to vector<16x24x128xbf16>
    %45 = vector.extract_strided_slice %41 {offsets = [0, 0, 0], sizes = [16, 24, 128], strides = [1, 1, 1]} : vector<18x24x128xbf16> to vector<16x24x128xbf16>
    %46 = vector.extract_strided_slice %43 {offsets = [0, 0, 0], sizes = [16, 24, 128], strides = [1, 1, 1]} : vector<18x24x128xbf16> to vector<16x24x128xbf16>
    %47 = vector.extract_strided_slice %40 {offsets = [1, 0, 0], sizes = [16, 24, 128], strides = [1, 1, 1]} : vector<18x24x128xbf16> to vector<16x24x128xbf16>
    %48 = vector.extract_strided_slice %41 {offsets = [1, 0, 0], sizes = [16, 24, 128], strides = [1, 1, 1]} : vector<18x24x128xbf16> to vector<16x24x128xbf16>
    %49 = vector.extract_strided_slice %43 {offsets = [1, 0, 0], sizes = [16, 24, 128], strides = [1, 1, 1]} : vector<18x24x128xbf16> to vector<16x24x128xbf16>
    %50 = vector.extract_strided_slice %40 {offsets = [2, 0, 0], sizes = [16, 24, 128], strides = [1, 1, 1]} : vector<18x24x128xbf16> to vector<16x24x128xbf16>
    %51 = vector.extract_strided_slice %41 {offsets = [2, 0, 0], sizes = [16, 24, 128], strides = [1, 1, 1]} : vector<18x24x128xbf16> to vector<16x24x128xbf16>
    %52 = vector.extract_strided_slice %43 {offsets = [2, 0, 0], sizes = [16, 24, 128], strides = [1, 1, 1]} : vector<18x24x128xbf16> to vector<16x24x128xbf16>
    %53 = tpu.concatenate %44, %45, %46, %47, %48, %49, %50, %51, %52 in 2 : vector<16x24x128xbf16>, vector<16x24x128xbf16>, vector<16x24x128xbf16>, vector<16x24x128xbf16>, vector<16x24x128xbf16>, vector<16x24x128xbf16>, vector<16x24x128xbf16>, vector<16x24x128xbf16>, vector<16x24x128xbf16> -> vector<16x24x1152xbf16>
    %54 = vector.shape_cast %53 : vector<16x24x1152xbf16> to vector<384x1152xbf16>
    %c0_36 = arith.constant 0 : index
    %c0_37 = arith.constant 0 : index
    %55 = vector.load %arg4[%c0_36, %c0_37] : memref<1152x128xbf16, #tpu.memory_space<vmem>>, vector<1152x128xbf16>
    %cst_38 = arith.constant dense<0.000000e+00> : vector<384x128xf32>
    %56 = tpu.matmul %54, %55, %cst_38 {dimension_numbers = #tpu.dot_dimension_numbers<[1], [0], [0], [1], [0, 0, 1, 1], [], []>} : vector<384x1152xbf16>, vector<1152x128xbf16>, vector<384x128xf32> -> vector<384x128xf32>
    %57 = vector.broadcast %11 : vector<1x128xf32> to vector<384x128xf32>
    %58 = arith.addf %56, %57 : vector<384x128xf32>
    %59 = vector.shape_cast %58 : vector<384x128xf32> to vector<16x24x128xf32>
    %60 = vector.extract_strided_slice %59 {offsets = [0, 0, 0], sizes = [16, 16, 128], strides = [1, 1, 1]} : vector<16x24x128xf32> to vector<16x16x128xf32>
    %61 = arith.addf %60, %1 : vector<16x16x128xf32>
    %c0_39 = arith.constant 0 : index
    %c0_40 = arith.constant 0 : index
    %c0_41 = arith.constant 0 : index
    %c0_42 = arith.constant 0 : index
    %62 = vector.load %arg6[%c0_39, %c0_40, %c0_41, %c0_42] : memref<1x16x16x128xf32, #tpu.memory_space<vmem>>, vector<1x16x16x128xf32>
    %63 = vector.shape_cast %62 : vector<1x16x16x128xf32> to vector<16x16x128xf32>
    %64 = vector.shape_cast %61 : vector<16x16x128xf32> to vector<1x16x16x128xf32>
    tpu.vector_store %arg6[%c0_39, %c0_40, %c0_41, %c0_42], %64 {strides = array<i32>} : memref<1x16x16x128xf32, #tpu.memory_space<vmem>>, vector<1x16x16x128xf32>,
    return
  }
  func.func @transform_0(%arg0: i32) -> (i32, i32, i32, i32) {
    %c0_i32 = arith.constant 0 : i32
    %c0_i32_0 = arith.constant 0 : i32
    %c0_i32_1 = arith.constant 0 : i32
    %c0_i32_2 = arith.constant 0 : i32
    return %arg0, %c0_i32, %c0_i32_0, %c0_i32_1 : i32, i32, i32, i32
  }
  func.func @transform_1(%arg0: i32) -> (i32, i32) {
    %c0_i32 = arith.constant 0 : i32
    %c0_i32_0 = arith.constant 0 : i32
    %c0_i32_1 = arith.constant 0 : i32
    return %c0_i32, %c0_i32_0 : i32, i32
  }
  func.func @transform_2(%arg0: i32) -> (i32, i32) {
    %c0_i32 = arith.constant 0 : i32
    %c0_i32_0 = arith.constant 0 : i32
    %c0_i32_1 = arith.constant 0 : i32
    return %c0_i32, %c0_i32_0 : i32, i32
  }
  func.func @transform_3(%arg0: i32) -> (i32, i32) {
    %c0_i32 = arith.constant 0 : i32
    %c0_i32_0 = arith.constant 0 : i32
    %c0_i32_1 = arith.constant 0 : i32
    return %c0_i32, %c0_i32_0 : i32, i32
  }
  func.func @transform_4(%arg0: i32) -> (i32, i32) {
    %c0_i32 = arith.constant 0 : i32
    %c0_i32_0 = arith.constant 0 : i32
    %c0_i32_1 = arith.constant 0 : i32
    return %c0_i32, %c0_i32_0 : i32, i32
  }
  func.func @transform_5(%arg0: i32) -> (i32, i32, i32, i32) {
    %c0_i32 = arith.constant 0 : i32
    %c0_i32_0 = arith.constant 0 : i32
    %c0_i32_1 = arith.constant 0 : i32
    %c0_i32_2 = arith.constant 0 : i32
    return %arg0, %c0_i32, %c0_i32_0, %c0_i32_1 : i32, i32, i32, i32
  }
}

</mosaic_0001>

<bundles_post_ra>
// kernel: residual_conv_unit.1
= control target key start
LH: loop header
LB: loop body
LE: loop exit
PB: predicated region body
PF: predicated region fallthrough
CT: control target
= control target key end

     0   :  { %10 = vsyncpa [#allocation4], 0  ;;  %s10537_s0 = inlined_call_operand.vmem [shape: f32[2,16,16,128], index: 0, kind: input, shape index: {}]   ;;  %s10538_s1 = inlined_call_operand.vmem [shape: bf16[1152,128], index: 1, kind: input, shape index: {}]   ;;  %s10539_s2 = inlined_call_operand.vmem [shape: f32[1,128], index: 2, kind: input, shape index: {}]   ;;  %s10540_s3 = inlined_call_operand.vmem [shape: bf16[1152,128], index: 3, kind: input, shape index: {}]   ;;  %s10541_s4 = inlined_call_operand.vmem [shape: f32[1,128], index: 4, kind: input, shape index: {}]   ;;  %s10542_s5 = inlined_call_operand.hbm [shape: f32[2,16,16,128], index: 5, kind: output, shape index: {}]  }
   0x1   :  { %12 = vsyncpa [#allocation4 + $0x1], 0  ;;  %s7067_s18 = smov 0   ;;  %s7069_s19 = smov 0  }
   0x2   :  { %s7071_s20 = smov 0   ;;  %s7073_s21 = smov 0  }
   0x3 LB: > { %s7088_s22 = sadd.s32 4294967295, %s7029_s21   ;;  %s5844_s23 = sadd.s32 4294967294, %s7029_s21   ;;  %s7029_s21 = sphi %s7073_s21, %s11239_s21   ;;  %s7025_s20 = sphi %s7071_s20, %s11238_s20   ;;  %s7021_s19 = sphi %s7069_s19, %s11237_s19   ;;  %s7017_s18 = sphi %s7067_s18, %s11236_s18  }
   0x4   : > { %s7092_s24 = sadd.s32 1, %s7029_s21   ;;  %s135_s25 = sadd.s32 1, %s7025_s20 }
   0x5   : > { %s132_s26 = ssub.s32 %s7029_s21, %s7092_s24  ;;  %p145_p0 = scmp.ne.s32.totalorder %s7025_s20, %s7021_s19 }
   0x6   : > { %p133_p1 = scmp.eq.s32.totalorder %s132_s26, 0  ;;  %p146_p2 = scmp.eq.s32.totalorder %s7088_s22, 1 }
   0x7   : > { %p151_p3 = scmp.ne.s32.totalorder %s7021_s19, %s7017_s18  ;;  %p152_p4 = scmp.eq.s32.totalorder %s5844_s23, 1 }
   0x8   : > { %s7103_s27 = scalar_select %p133_p1, %s7025_s20, %s135_s25  }
   0x9   : > { %p7105_p5 = por %p146_p2, %p145_p0  ;;  %p7109_p6 = por %p152_p4, %p151_p3 }
   0xa   : > { %p5847_p7 = scmp.ge.s32.totalorder %s7029_s21, 1  ;;  %p190_p8 = scmp.lt.s32.totalorder %s7029_s21, 3 }
   0xc   : > { %p191_p9 = pnand %p5847_p7, %p190_p8 }
   0xe   : > { %194 = sbr.rel (%p191_p9) target bundleno = 1888 (0x760), region = 40 }
  0x15   : > { %v6780_v0 = vld [vmem:[%s10538_s1] sm:$0xff]   ;;  %v10545_v1 = vmov 0   ;;  %v6781_v2 = vld [vmem:[%s10538_s1 + $0x8] sm:$0xff]   ;;  %v10543_v3 = vmov 0.0|0.0   ;;  %v6782_v4 = vld [vmem:[%s10538_s1 + $0x10] sm:$0xff]   ;;  %p218_p10 = scmp.lt.s32.totalorder %s7088_s22, 1  ;;  %v454_v15 = vlaneseq }
  0x16   : > { %1886 = vmatprep.subr.bf16.mxu0 %v10545_v1  ;;  %1918 = vmatprep.mubr.bf16.mxu0 %v10543_v3  ;;  %v6783_v5 = vld [vmem:[%s10538_s1 + $0x18] sm:$0xff]   ;;  %v6784_v6 = vld [vmem:[%s10538_s1 + $0x20] sm:$0xff]   ;;  %v6785_v7 = vld [vmem:[%s10538_s1 + $0x28] sm:$0xff]   ;;  %v10547_v21 = vmov 0.0   ;;  %v7221_v35 = vunpack.c.l.b16 %v10543_v3  ;;  %s215_s30 = sand.u32 1, %s7021_s19   ;;  %s6207_s10 = sshll.u32 %s7088_s22, 12 }
  0x17   : > { %1887 = vmatpush1.bf16.msra.mxu0 %v6780_v0  ;;  %v6786_v8 = vld [vmem:[%s10538_s1 + $0x30] sm:$0xff]   ;;  %v6787_v9 = vld [vmem:[%s10538_s1 + $0x38] sm:$0xff]   ;;  %v6788_v10 = vld [vmem:[%s10538_s1 + $0x40] sm:$0xff]   ;;  %s219_s13 = scalar_select %p218_p10, %s7088_s22, 1  ;;  %v7184_v20 = vshrl.u32 %v454_v15, 7  ;;  %v7188_v22 = vrot.slane %v10547_v21, 7 }
  0x18   : > { %1888 = vmatprep.subr.bf16.mxu0 %v10545_v1  ;;  %v6789_v11 = vld [vmem:[%s10538_s1 + $0x48] sm:$0xff]   ;;  %v6790_v12 = vld [vmem:[%s10538_s1 + $0x50] sm:$0xff]   ;;  %v6791_v13 = vld [vmem:[%s10538_s1 + $0x58] sm:$0xff]   ;;  %v7521_v3 = vrot.slane %v10547_v21, 1  ;;  %s5848_s6 = sshll.u32 %s215_s30, 8  ;;  %s10488_s14 = scalar_lea.hbm %s10542_s5, %s6207_s10 }
  0x19   : > { %v6792_v14 = vld [vmem:[%s10538_s1 + $0x60] sm:$0xff]   ;;  %s6104_s16 = sshll.u32 %s219_s13, 8  ;;  %v6793_v16 = vld [vmem:[%s10538_s1 + $0x68] sm:$0xff]   ;;  %v6794_v17 = vld [vmem:[%s10538_s1 + $0x70] sm:$0xff]   ;;  %10773 = vst [vmem:[#allocation6_spill] sm:$0xff] %v7188_v22  ;;  %vm456_vm0 = vcmp.lt.s32.totalorder %v7184_v20, 1  ;;  %v7206_v29 = vpack.c.bf16 %v7188_v22, %v7188_v22 }
  0x1a   : > { %s7173_s25 = scalar_lea.vmem %s10537_s0, %s6104_s16  ;;  %v6795_v25 = vld [vmem:[%s10538_s1 + $0x78] sm:$0xff]   ;;  %v6796_v26 = vld [vmem:[%s10538_s1 + $0x80] sm:$0xff]   ;;  %v6797_v34 = vld [vmem:[%s10538_s1 + $0x88] sm:$0xff]   ;;  %vm637_vm1 = vcmp.lt.s32.totalorder %v7184_v20, 7  ;;  %s10364_s7 = scalar_lea.vmem [#allocation3], %s5848_s6 }
  0x1b   : > { %1889 = vmatpush1.bf16.msra.mxu0 %v6781_v2  ;;  %v224_v18 = vld [vmem:[%s7173_s25] sm:$0xff]  ;;  %v225_v19 = vld [vmem:[%s7173_s25 + $0x8] sm:$0xff]  ;;  %v226_v27 = vld [vmem:[%s7173_s25 + $0x10] sm:$0xff]  ;;  %10774 = vst [vmem:[#allocation7_spill] sm:$0xff] %v7206_v29  ;;  %s5782_s11 = sshll.u32 %s10364_s7, 4  ;;  %s10496_s22 = scalar_lea.sflag [#allocation4], %s215_s30  ;;  %s10490_s11 = int_to_ptr.vmem [resolvable:$true] %s5782_s11 }
  0x1c   : > { %1890 = vmatprep.subr.bf16.mxu0 %v10545_v1  ;;  %v7190_v23 = vmax.f32 %v224_v18, 0.0  ;;  %v7192_v24 = vmax.f32 %v225_v19, 0.0  ;;  %v227_v28 = vld [vmem:[%s7173_s25 + $0x18] sm:$0xff]  ;;  %v7224_v36 = vmax.f32 %v226_v27, 0.0  ;;  %v6798_v42 = vld [vmem:[%s10538_s1 + $0x90] sm:$0xff]   ;;  %v228_v43 = vld [vmem:[%s7173_s25 + $0x20] sm:$0xff] }
  0x1d   : > { %v7226_v37 = vmax.f32 %v227_v28, 0.0  ;;  %v229_v47 = vld [vmem:[%s7173_s25 + $0x28] sm:$0xff]  ;;  %v7254_v52 = vmax.f32 %v228_v43, 0.0  ;;  %v6799_v54 = vld [vmem:[%s10538_s1 + $0x98] sm:$0xff]   ;;  %v6800_v56 = vld [vmem:[%s10538_s1 + $0xa0] sm:$0xff]   ;;  %s6967_s15 = scalar_lea.vmem %s10490_s11, 4096 }
  0x1e   : > { %v401_v30 = vrot.slane %v7190_v23, 7  ;;  %v419_v31 = vrot.slane %v7192_v24, 7  ;;  %v6106_v32 = vpack.c.bf16 %v7190_v23, %v10547_v21  ;;  %v7214_v33 = vpack.c.bf16 %v7192_v24, %v7190_v23  ;;  %v230_v59 = vld [vmem:[%s7173_s25 + $0x30] sm:$0xff]  ;;  %v6801_v62 = vld [vmem:[%s10538_s1 + $0xa8] sm:$0xff]   ;;  %v231_v2 = vld [vmem:[%s7173_s25 + $0x38] sm:$0xff]  ;;  %p6968_p11 = scmp.ne.s32.totalorder %s10490_s11, %s6967_s15  ;;  %s7034_s16 = smov [#allocation3]  }
  0x1f   : > { %1891 = vmatpush1.bf16.msra.mxu0 %v6782_v4  ;;  %v402_v51 = vrot.slane %v7224_v36, 7  ;;  %v7256_v53 = vmax.f32 %v229_v47, 0.0  ;;  %v420_v55 = vrot.slane %v7226_v37, 7  ;;  %v7268_v58 = vpack.c.bf16 %v7226_v37, %v7224_v36  ;;  %s6971_s17 = sshll.u32 %s7034_s16, 4  ;;  %s6972_s17 = int_to_ptr.vmem [resolvable:$false] %s6971_s17 }
  0x20   : > { %1892 = vmatprep.subr.bf16.mxu0 %v10545_v1  ;;  %10775 = vst [vmem:[#allocation8_spill] sm:$0xff] %v7214_v33  ;;  %v476_v38 = vsel %vm456_vm0, %v401_v30, %v419_v31  ;;  %v494_v39 = vsel %vm456_vm0, %v7188_v22, %v401_v30  ;;  %v849_v40 = vunpack.c.h.b16 %v7214_v33  ;;  %v7237_v41 = vsel %vm456_vm0, %v419_v31, %v7188_v22  ;;  %p6969_p12 = pnand %p6968_p11, %p7105_p5  ;;  %s6973_s23 = scalar_lea.vmem %s6972_s17, 8192 }
  0x21   : > { %v7244_v44 = vpack.c.bf16 %v476_v38, %v494_v39  ;;  %v6105_v45 = vpack.c.bf16 %v494_v39, %v7188_v22  ;;  %v514_v46 = vpack.c.bf16 %v7237_v41, %v7237_v41  ;;  %10776 = vst [vmem:[#allocation9_spill] sm:$0xff] %v7268_v58  ;;  %v477_v60 = vsel %vm456_vm0, %v402_v51, %v420_v55  ;;  %v6805_v38 = vld [vmem:[%s10538_s1 + $0xc8] sm:$0xff]   ;;  %p6974_p0 = scmp.lt.s32.totalorder %s10490_s11, %s6972_s17  ;;  %p6975_p1 = scmp.lt.s32.totalorder %s6973_s23, %s6967_s15 }
  0x22   : > { %v1167_v48 = vpack.c.b16 %v7221_v35, %v849_v40  ;;  %v7278_v61 = vsel %vm456_vm0, %v7188_v22, %v402_v51  ;;  %v403_v63 = vrot.slane %v7254_v52, 7  ;;  %v421_v0 = vrot.slane %v7256_v53, 7  ;;  %v6806_v40 = vld [vmem:[%s10538_s1 + $0xd0] sm:$0xff]   ;;  %p6970_p13 = pneg %p6969_p12 }
  0x23   : > { %1893 = vmatpush1.bf16.msra.mxu0 %v6783_v5  ;;  %v848_v49 = vunpack.c.h.b16 %v7244_v44  ;;  %v857_v50 = vunpack.c.l.b16 %v514_v46  ;;  %v7288_v4 = vpack.c.bf16 %v477_v60, %v7278_v61  ;;  %v7290_v5 = vmax.f32 %v230_v59, 0.0  ;;  %v235_v46 = vld [vmem:[%s7173_s25 + $0x58] sm:$0xff]  ;;  %p6976_p2 = por %p6975_p1, %p6974_p0 }
  0x24   : > { %1894 = vmatprep.subr.bf16.mxu0 %v10545_v1  ;;  %v7325_v15 = vsel %vm456_vm0, %v421_v0, %v7188_v22 }
  0x25   : > { %v1166_v57 = vpack.c.b16 %v857_v50, %v848_v49  ;;  %10777 = vst [vmem:[#allocation10_spill] sm:$0xff] %v7288_v4  ;;  %v404_v31 = vrot.slane %v7290_v5, 7  ;;  %v6807_v49 = vld [vmem:[%s10538_s1 + $0xd8] sm:$0xff]   ;;  %p6977_p3 = pnand %p6976_p2, %p6970_p13 }
  0x27   : > { %1895 = vmatpush1.bf16.msra.mxu0 %v6784_v6  ;;  %v6802_v6 = vld [vmem:[%s10538_s1 + $0xb0] sm:$0xff]  }
  0x28   : > { %1896 = vmatprep.subr.bf16.mxu0 %v10545_v1 }
  0x2b   : > { %1897 = vmatpush1.bf16.msra.mxu0 %v6785_v7  ;;  %v7297_v7 = vpack.c.bf16 %v7254_v52, %v10547_v21 }
  0x2c   : > { %1898 = vmatprep.subr.bf16.mxu0 %v10545_v1 }
  0x2d   : > { %10778 = vst [vmem:[#allocation11_spill] sm:$0xff] %v7297_v7 }
  0x2f   : > { %1899 = vmatpush1.bf16.msra.mxu0 %v6786_v8  ;;  %v7301_v8 = vpack.c.bf16 %v7256_v53, %v7254_v52 }
  0x30   : > { %1900 = vmatprep.subr.bf16.mxu0 %v10545_v1 }
  0x31   : > { %10779 = vst [vmem:[#allocation12_spill] sm:$0xff] %v7301_v8 }
  0x33   : > { %1901 = vmatpush1.bf16.msra.mxu0 %v6787_v9  ;;  %v7308_v9 = vsel %vm456_vm0, %v420_v55, %v7188_v22 }
  0x34   : > { %1902 = vmatprep.subr.bf16.mxu0 %v10545_v1 }
  0x37   : > { %1903 = vmatpush1.bf16.msra.mxu0 %v6788_v10  ;;  %v7310_v10 = vmax.f32 %v231_v2, 0.0 }
  0x38   : > { %1904 = vmatprep.subr.bf16.mxu0 %v10545_v1 }
  0x39   : > { %v422_v39 = vrot.slane %v7310_v10, 7  ;;  %v7364_v43 = vpack.c.bf16 %v7310_v10, %v7290_v5 }
  0x3b   : > { %1905 = vmatpush1.bf16.msra.mxu0 %v6789_v11  ;;  %v6803_v11 = vld [vmem:[%s10538_s1 + $0xb8] sm:$0xff]   ;;  %10783 = vst [vmem:[#allocation16_spill] sm:$0xff] %v7364_v43  ;;  %v479_v47 = vsel %vm456_vm0, %v404_v31, %v422_v39 }
  0x3c   : > { %1906 = vmatprep.subr.bf16.mxu0 %v10545_v1 }
  0x3f   : > { %1907 = vmatpush1.bf16.msra.mxu0 %v6790_v12  ;;  %v478_v12 = vsel %vm456_vm0, %v403_v63, %v421_v0  ;;  %v6809_v0 = vld [vmem:[%s10538_s1 + $0xe8] sm:$0xff]  }
  0x40   : > { %1908 = vmatprep.subr.bf16.mxu0 %v10545_v1 }
  0x43   : > { %1909 = vmatpush1.bf16.msra.mxu0 %v6791_v13  ;;  %v496_v13 = vsel %vm456_vm0, %v7188_v22, %v403_v63 }
  0x44   : > { %1910 = vmatprep.subr.bf16.mxu0 %v10545_v1  ;;  %v7332_v18 = vpack.c.bf16 %v478_v12, %v496_v13  ;;  %v7335_v19 = vpack.c.bf16 %v496_v13, %v7308_v9  ;;  %v6810_v13 = vld [vmem:[%s10538_s1 + $0xf0] sm:$0xff]  }
  0x46   : > { %10780 = vst [vmem:[#allocation13_spill] sm:$0xff] %v7335_v19  ;;  %v866_v28 = vunpack.c.h.b16 %v7332_v18 }
  0x47   : > { %1911 = vmatpush1.bf16.msra.mxu0 %v6792_v14  ;;  %v867_v14 = vunpack.c.h.b16 %v7301_v8 }
  0x48   : > { %1912 = vmatprep.subr.bf16.mxu0 %v10545_v1 }
  0x49   : > { %v7341_v27 = vpack.c.b16 %v7221_v35, %v867_v14 }
  0x4b   : > { %1913 = vmatpush1.bf16.msra.mxu0 %v6793_v16  ;;  %v232_v16 = vld [vmem:[%s7173_s25 + $0x40] sm:$0xff]  ;;  %10781 = vst [vmem:[#allocation14_spill] sm:$0xff] %v7341_v27 }
  0x4c   : > { %1914 = vmatprep.subr.bf16.mxu0 %v10545_v1 }
  0x4f   : > { %1915 = vmatpush1.bf16.msra.mxu0 %v6794_v17  ;;  %v6804_v17 = vld [vmem:[%s10538_s1 + $0xc0] sm:$0xff]  }
  0x50   : > { %1916 = vmatprep.subr.bf16.mxu0 %v10545_v1 }
  0x53   : > { %1917 = vmatpush1.bf16.msra.mxu0 %v6795_v25  ;;  %v518_v25 = vpack.c.bf16 %v7325_v15, %v7325_v15 }
  0x54   : > { %2111 = vmatprep.subr.bf16.mxu0 %v10545_v1 }
  0x55   : > { %v869_v30 = vunpack.c.l.b16 %v518_v25 }
  0x56   : > { %1919 = vmatmul.mubr.bf16.vlgmr.msra.gmra.mrb[0].mxu0 %v7206_v29 }
  0x57   : > { %2112 = vmatpush1.bf16.msra.mxu0 %v6796_v26  ;;  %1926 = vmatprep.mubr.bf16.mxu0 %v6106_v32  ;;  %v233_v26 = vld [vmem:[%s7173_s25 + $0x48] sm:$0xff]  ;;  %v7347_v32 = vmax.f32 %v232_v16, 0.0 }
  0x58   : > { %2113 = vmatprep.subr.bf16.mxu0 %v10545_v1 }
  0x59   : > { %v405_v50 = vrot.slane %v7347_v32, 7  ;;  %v7396_v59 = vpack.c.bf16 %v7347_v32, %v10547_v21 }
  0x5b   : > { %2114 = vmatpush1.bf16.msra.mxu0 %v6797_v34  ;;  %v7350_v34 = vmax.f32 %v233_v26, 0.0  ;;  %10785 = vst [vmem:[#allocation18_spill] sm:$0xff] %v7396_v59 }
  0x5c   : > { %2115 = vmatprep.subr.bf16.mxu0 %v10545_v1 }
  0x5d   : > { %v423_v51 = vrot.slane %v7350_v34, 7  ;;  %v7400_v60 = vpack.c.bf16 %v7350_v34, %v7347_v32 }
  0x5e   : > { %1927 = vmatmul.mubr.bf16.gmra.mrb[4].mxu0 %v6105_v45  ;;  %v234_v45 = vld [vmem:[%s7173_s25 + $0x50] sm:$0xff] }
  0x5f   : > { %1934 = vmatprep.mubr.bf16.mxu0 %v1167_v48  ;;  %2116 = vmatpush1.bf16.msra.mxu0 %v6798_v42  ;;  %v7360_v42 = vpack.c.b16 %v869_v30, %v866_v28  ;;  %v7376_v48 = vsel %vm456_vm0, %v7188_v22, %v404_v31  ;;  %10786 = vst [vmem:[#allocation19_spill] sm:$0xff] %v7400_v60  ;;  %v6811_v31 = vld [vmem:[%s10538_s1 + $0xf8] sm:$0xff]  }
  0x60   : > { %2117 = vmatprep.subr.bf16.mxu0 %v10545_v1  ;;  %v7387_v55 = vpack.c.bf16 %v479_v47, %v7376_v48  ;;  %v480_v2 = vsel %vm456_vm0, %v405_v50, %v423_v51  ;;  %v7423_v12 = vsel %vm456_vm0, %v423_v51, %v7188_v22 }
  0x61   : > { %10782 = vst [vmem:[#allocation15_spill] sm:$0xff] %v7360_v42 }
  0x62   : > { %10784 = vst [vmem:[#allocation17_spill] sm:$0xff] %v7387_v55 }
  0x63   : > { %2118 = vmatpush1.bf16.msra.mxu0 %v6799_v54  ;;  %v7384_v54 = vmax.f32 %v234_v45, 0.0  ;;  %v237_v45 = vld [vmem:[%s7173_s25 + $0x68] sm:$0xff] }
  0x64   : > { %2119 = vmatprep.subr.bf16.mxu0 %v10545_v1 }
  0x65   : > { %v406_v63 = vrot.slane %v7384_v54, 7 }
  0x66   : > { %1935 = vmatmul.mubr.bf16.gmra.mrb[8].mxu0 %v1166_v57  ;;  %v6808_v57 = vld [vmem:[%s10538_s1 + $0xe0] sm:$0xff]  }
  0x67   : > { %1942 = vmatprep.mubr.bf16.mxu0 %v7268_v58  ;;  %2120 = vmatpush1.bf16.msra.mxu0 %v6800_v56  ;;  %v7389_v56 = vmax.f32 %v235_v46, 0.0  ;;  %v7464_v47 = vsel %vm456_vm0, %v7188_v22, %v406_v63 }
  0x68   : > { %2121 = vmatprep.subr.bf16.mxu0 %v10545_v1 }
  0x69   : > { %v424_v30 = vrot.slane %v7389_v56, 7 }
  0x6b   : > { %2122 = vmatpush1.bf16.msra.mxu0 %v6801_v62  ;;  %v7407_v62 = vsel %vm456_vm0, %v422_v39, %v7188_v22  ;;  %v7452_v39 = vpack.c.bf16 %v7389_v56, %v7384_v54  ;;  %v481_v46 = vsel %vm456_vm0, %v406_v63, %v424_v30 }
  0x6c   : > { %2123 = vmatprep.subr.bf16.mxu0 %v10545_v1  ;;  %v7471_v51 = vpack.c.bf16 %v481_v46, %v7464_v47  ;;  %v239_v46 = vld [vmem:[%s7173_s25 + $0x78] sm:$0xff] }
  0x6d   : > { %10790 = vst [vmem:[#allocation23_spill] sm:$0xff] %v7452_v39 }
  0x6e   : > { %1943 = vmatmul.mubr.bf16.gmra.mrb[12].mxu0 %v7288_v4  ;;  %10791 = vst [vmem:[#allocation24_spill] sm:$0xff] %v7471_v51 }
  0x6f   : > { %1950 = vmatprep.mubr.bf16.mxu0 %v7297_v7  ;;  %2124 = vmatpush1.bf16.msra.mxu0 %v6802_v6  ;;  %v498_v6 = vsel %vm456_vm0, %v7188_v22, %v405_v50  ;;  %v7468_v50 = vmax.f32 %v237_v45, 0.0  ;;  %v238_v45 = vld [vmem:[%s7173_s25 + $0x70] sm:$0xff]  ;;  %v243_v7 = vld [vmem:[%s7173_s25 + $0x98] sm:$0xff] }
  0x70   : > { %2125 = vmatprep.subr.bf16.mxu0 %v10545_v1  ;;  %v7429_v14 = vpack.c.bf16 %v480_v2, %v498_v6  ;;  %v7432_v16 = vpack.c.bf16 %v498_v6, %v7407_v62  ;;  %v7487_v6 = vsel %vm456_vm0, %v424_v30, %v7188_v22 }
  0x71   : > { %v425_v2 = vrot.slane %v7468_v50, 7 }
  0x72   : > { %10787 = vst [vmem:[#allocation20_spill] sm:$0xff] %v7432_v16  ;;  %v884_v26 = vunpack.c.h.b16 %v7429_v14 }
  0x73   : > { %2126 = vmatpush1.bf16.msra.mxu0 %v6803_v11  ;;  %v885_v11 = vunpack.c.h.b16 %v7400_v60  ;;  %v245_v60 = vld [vmem:[%s7173_s25 + $0xa8] sm:$0xff] }
  0x74   : > { %2127 = vmatprep.subr.bf16.mxu0 %v10545_v1 }
  0x75   : > { %v7437_v25 = vpack.c.b16 %v7221_v35, %v885_v11 }
  0x76   : > { %1951 = vmatmul.mubr.bf16.gmra.mrb[16].mxu0 %v7335_v19 }
  0x77   : > { %1958 = vmatprep.mubr.bf16.mxu0 %v7341_v27  ;;  %2128 = vmatpush1.bf16.msra.mxu0 %v6804_v17  ;;  %v522_v17 = vpack.c.bf16 %v7423_v12, %v7423_v12  ;;  %10788 = vst [vmem:[#allocation21_spill] sm:$0xff] %v7437_v25 }
  0x78   : > { %2129 = vmatprep.subr.bf16.mxu0 %v10545_v1 }
  0x79   : > { %v887_v28 = vunpack.c.l.b16 %v522_v17 }
  0x7b   : > { %2130 = vmatpush1.bf16.msra.mxu0 %v6805_v38  ;;  %v7448_v38 = vpack.c.b16 %v887_v28, %v884_v26  ;;  %v7499_v26 = vsel %vm456_vm0, %v425_v2, %v7188_v22 }
  0x7c   : > { %2131 = vmatprep.subr.bf16.mxu0 %v10545_v1 }
  0x7d   : > { %10789 = vst [vmem:[#allocation22_spill] sm:$0xff] %v7448_v38 }
  0x7e   : > { %1959 = vmatmul.mubr.bf16.gmra.mrb[20].mxu0 %v7360_v42 }
  0x7f   : > { %1966 = vmatprep.mubr.bf16.mxu0 %v7364_v43  ;;  %2132 = vmatpush1.bf16.msra.mxu0 %v6806_v40  ;;  %v236_v40 = vld [vmem:[%s7173_s25 + $0x60] sm:$0xff] }
  0x80   : > { %2133 = vmatprep.subr.bf16.mxu0 %v10545_v1 }
  0x83   : > { %2134 = vmatpush1.bf16.msra.mxu0 %v6807_v49  ;;  %v7466_v49 = vmax.f32 %v236_v40, 0.0 }
  0x84   : > { %2135 = vmatprep.subr.bf16.mxu0 %v10545_v1 }
  0x85   : > { %v7481_v63 = vpack.c.bf16 %v7468_v50, %v7466_v49 }
  0x86   : > { %1967 = vmatmul.mubr.bf16.gmra.mrb[24].mxu0 %v7387_v55 }
  0x87   : > { %1974 = vmatprep.mubr.bf16.mxu0 %v7396_v59  ;;  %2136 = vmatpush1.bf16.msra.mxu0 %v6808_v57  ;;  %v7475_v57 = vpack.c.bf16 %v7466_v49, %v10547_v21  ;;  %10793 = vst [vmem:[#allocation26_spill] sm:$0xff] %v7481_v63  ;;  %v903_v17 = vunpack.c.h.b16 %v7481_v63 }
  0x88   : > { %2137 = vmatprep.subr.bf16.mxu0 %v10545_v1 }
  0x89   : > { %10792 = vst [vmem:[#allocation25_spill] sm:$0xff] %v7475_v57  ;;  %v7509_v40 = vpack.c.b16 %v7221_v35, %v903_v17  ;;  %v10554_v17 = vrot.slane %v7224_v36, 1 }
  0x8b   : > { %2138 = vmatpush1.bf16.msra.mxu0 %v6809_v0  ;;  %v407_v0 = vrot.slane %v7466_v49, 7  ;;  %10795 = vst [vmem:[#allocation28_spill] sm:$0xff] %v7509_v40 }
  0x8c   : > { %2139 = vmatprep.subr.bf16.mxu0 %v10545_v1 }
  0x8d   : > { %v482_v11 = vsel %vm456_vm0, %v407_v0, %v425_v2 }
  0x8e   : > { %1975 = vmatmul.mubr.bf16.gmra.mrb[28].mxu0 %v7432_v16 }
  0x8f   : > { %1982 = vmatprep.mubr.bf16.mxu0 %v7437_v25  ;;  %2140 = vmatpush1.bf16.msra.mxu0 %v6810_v13  ;;  %v500_v13 = vsel %vm456_vm0, %v7188_v22, %v407_v0 }
  0x90   : > { %2141 = vmatprep.subr.bf16.mxu0 %v10545_v1  ;;  %v7501_v28 = vpack.c.bf16 %v482_v11, %v500_v13  ;;  %v7504_v30 = vpack.c.bf16 %v500_v13, %v7487_v6  ;;  %v7515_v11 = vmax.f32 %v238_v45, 0.0  ;;  %v7518_v13 = vmax.f32 %v239_v46, 0.0 }
  0x92   : > { %10794 = vst [vmem:[#allocation27_spill] sm:$0xff] %v7504_v30  ;;  %v902_v0 = vunpack.c.h.b16 %v7501_v28  ;;  %v408_v29 = vrot.slane %v7515_v11, 7 }
  0x93   : > { %2142 = vmatpush1.bf16.msra.mxu0 %v6811_v31  ;;  %v526_v31 = vpack.c.bf16 %v7499_v26, %v7499_v26 }
  0x94   : > { %2336 = vmatprep.subr.bf16.mxu0 %v10545_v1  ;;  %v603_v1 = vrot.slane %v7226_v37, 1  ;;  %v7542_v37 = vpack.c.bf16 %v7518_v13, %v7515_v11 }
  0x95   : > { %v905_v2 = vunpack.c.l.b16 %v526_v31 }
  0x96   : > { %1983 = vmatmul.mubr.bf16.gmra.mrb[32].mxu0 %v7448_v38  ;;  %v640_v31 = vsel %vm637_vm1, %v603_v1, %v7521_v3  ;;  %v7533_v45 = vsel %vm637_vm1, %v10554_v17, %v603_v1  ;;  %10798 = vst [vmem:[#allocation31_spill] sm:$0xff] %v7542_v37  ;;  %v10800_v38 = vmov 0.0  }
  0x97   : > { %1990 = vmatprep.mubr.bf16.mxu0 %v7452_v39  ;;  %10796 = vst [vmem:[#allocation29_spill] sm:$0xff] %v7533_v45  ;;  %v7535_v46 = vpack.c.b16 %v905_v2, %v902_v0  ;;  %v7538_v21 = vpack.c.bf16 %v640_v31, %v7533_v45  ;;  %v7556_v0 = vsel %vm456_vm0, %v7188_v22, %v408_v29 }
  0x99   : > { %10797 = vst [vmem:[#allocation30_spill] sm:$0xff] %v7535_v46  ;;  %6288 = vmatprep.mubr.bf16.mxu1 %v7538_v21 }
  0x9e   : > { %1991 = vmatmul.mubr.bf16.gmra.mrb[36].mxu0 %v7471_v51 }
  0x9f   : > { %1998 = vmatprep.mubr.bf16.mxu0 %v7475_v57  ;;  %v241_v57 = vld [vmem:[%s7173_s25 + $0x88] sm:$0xff] }
  0xa0   : > { %v7560_v31 = vmax.f32 %v241_v57, 0.0 }
  0xa2   : > { %v427_v16 = vrot.slane %v7560_v31, 7 }
  0xa4   : > { %v7591_v42 = vsel %vm456_vm0, %v427_v16, %v7188_v22 }
  0xa6   : > { %1999 = vmatmul.mubr.bf16.gmra.mrb[40].mxu0 %v7504_v30  ;;  %v240_v30 = vld [vmem:[%s7173_s25 + $0x80] sm:$0xff] }
  0xa7   : > { %2006 = vmatprep.mubr.bf16.mxu0 %v7509_v40  ;;  %v426_v40 = vrot.slane %v7518_v13, 7  ;;  %v7558_v2 = vmax.f32 %v240_v30, 0.0 }
  0xa9   : > { %v483_v1 = vsel %vm456_vm0, %v408_v29, %v426_v40  ;;  %v409_v25 = vrot.slane %v7558_v2, 7  ;;  %v7573_v29 = vpack.c.bf16 %v7560_v31, %v7558_v2  ;;  %v7579_v57 = vsel %vm456_vm0, %v426_v40, %v7188_v22 }
  0xaa   : > { %v7563_v17 = vpack.c.bf16 %v483_v1, %v7556_v0 }
  0xab   : > { %10802 = vst [vmem:[#allocation34_spill] sm:$0xff] %v7573_v29  ;;  %v484_v30 = vsel %vm456_vm0, %v409_v25, %v427_v16  ;;  %v502_v1 = vsel %vm456_vm0, %v7188_v22, %v409_v25  ;;  %v921_v59 = vunpack.c.h.b16 %v7573_v29  ;;  %v242_v25 = vld [vmem:[%s7173_s25 + $0x90] sm:$0xff] }
  0xac   : > { %10799 = vst [vmem:[#allocation32_spill] sm:$0xff] %v7563_v17  ;;  %v7593_v27 = vpack.c.bf16 %v484_v30, %v502_v1  ;;  %v7596_v40 = vpack.c.bf16 %v502_v1, %v7579_v57  ;;  %v7608_v30 = vmax.f32 %v242_v25, 0.0  ;;  %v7610_v1 = vmax.f32 %v243_v7, 0.0 }
  0xad   : > { %v7601_v19 = vpack.c.b16 %v7221_v35, %v921_v59  ;;  %v7633_v25 = vmax.f32 %v245_v60, 0.0 }
  0xae   : > { %2007 = vmatmul.mubr.bf16.gmra.mrb[44].mxu0 %v7535_v46  ;;  %v7567_v46 = vpack.c.bf16 %v7558_v2, %v10800_v38  ;;  %10803 = vst [vmem:[#allocation35_spill] sm:$0xff] %v7596_v40  ;;  %v920_v16 = vunpack.c.h.b16 %v7593_v27  ;;  %10805 = vst [vmem:[#allocation37_spill] sm:$0xff] %v7608_v30  ;;  %v7616_v63 = vpack.c.bf16 %v7610_v1, %v7608_v30  ;;  %v410_v59 = vrot.slane %v7608_v30, 7 }
  0xaf   : > { %2014 = vmatprep.mubr.bf16.mxu0 %v7542_v37  ;;  %10804 = vst [vmem:[#allocation36_spill] sm:$0xff] %v7601_v19  ;;  %10806 = vst [vmem:[#allocation38_spill] sm:$0xff] %v7610_v1  ;;  %v428_v39 = vrot.slane %v7610_v1, 7  ;;  %v249_v1 = vld [vmem:[%s7173_s25 + $0xc8] sm:$0xff] }
  0xb0   : > { %10801 = vst [vmem:[#allocation33_spill] sm:$0xff] %v7567_v46  ;;  %10808 = vst [vmem:[#allocation40_spill] sm:$0xff] %v7616_v63 }
  0xb1   : > { %v485_v7 = vsel %vm456_vm0, %v410_v59, %v428_v39  ;;  %10810 = vst [vmem:[#allocation42_spill] sm:$0xff] %v7633_v25  ;;  %v7652_v60 = vsel %vm456_vm0, %v428_v39, %v7188_v22 }
  0xb6   : > { %2015 = vmatmul.mubr.bf16.gmra.mrb[48].mxu0 %v7563_v17 }
  0xb7   : > { %2022 = vmatprep.mubr.bf16.mxu0 %v7567_v46  ;;  %v530_v46 = vpack.c.bf16 %v7591_v42, %v7591_v42 }
  0xb9   : > { %v923_v29 = vunpack.c.l.b16 %v530_v46  ;;  %v7629_v46 = vsel %vm456_vm0, %v7188_v22, %v410_v59 }
  0xbb   : > { %v7612_v37 = vpack.c.b16 %v923_v29, %v920_v16  ;;  %v7636_v16 = vpack.c.bf16 %v485_v7, %v7629_v46 }
  0xbd   : > { %10807 = vst [vmem:[#allocation39_spill] sm:$0xff] %v7612_v37  ;;  %10811 = vst [vmem:[#allocation43_spill] sm:$0xff] %v7636_v16 }
  0xbe   : > { %2023 = vmatmul.mubr.bf16.gmra.mrb[52].mxu0 %v7596_v40  ;;  %v244_v40 = vld [vmem:[%s7173_s25 + $0xa0] sm:$0xff] }
  0xbf   : > { %2030 = vmatprep.mubr.bf16.mxu0 %v7601_v19  ;;  %v7631_v29 = vmax.f32 %v244_v40, 0.0 }
  0xc1   : > { %10809 = vst [vmem:[#allocation41_spill] sm:$0xff] %v7631_v29  ;;  %v411_v19 = vrot.slane %v7631_v29, 7  ;;  %v7646_v59 = vpack.c.bf16 %v7633_v25, %v7631_v29 }
  0xc3   : > { %10813 = vst [vmem:[#allocation45_spill] sm:$0xff] %v7646_v59  ;;  %v504_v7 = vsel %vm456_vm0, %v7188_v22, %v411_v19  ;;  %v939_v43 = vunpack.c.h.b16 %v7646_v59  ;;  %v247_v59 = vld [vmem:[%s7173_s25 + $0xb8] sm:$0xff] }
  0xc4   : > { %v7669_v39 = vpack.c.bf16 %v504_v7, %v7652_v60 }
  0xc5   : > { %v7674_v33 = vpack.c.b16 %v7221_v35, %v939_v43 }
  0xc6   : > { %2031 = vmatmul.mubr.bf16.gmra.mrb[56].mxu0 %v7612_v37  ;;  %v7640_v37 = vpack.c.bf16 %v7631_v29, %v10800_v38  ;;  %10816 = vst [vmem:[#allocation48_spill] sm:$0xff] %v7669_v39 }
  0xc7   : > { %2038 = vmatprep.mubr.bf16.mxu0 %v7616_v63  ;;  %v429_v63 = vrot.slane %v7633_v25, 7  ;;  %10817 = vst [vmem:[#allocation49_spill] sm:$0xff] %v7674_v33 }
  0xc8   : > { %10812 = vst [vmem:[#allocation44_spill] sm:$0xff] %v7640_v37 }
  0xc9   : > { %v486_v40 = vsel %vm456_vm0, %v411_v19, %v429_v63  ;;  %v7664_v8 = vsel %vm456_vm0, %v429_v63, %v7188_v22  ;;  %v246_v19 = vld [vmem:[%s7173_s25 + $0xb0] sm:$0xff] }
  0xca   : > { %10814 = vst [vmem:[#allocation46_spill] sm:$0xff] %v7664_v8  ;;  %v7666_v58 = vpack.c.bf16 %v486_v40, %v504_v7  ;;  %v7681_v40 = vmax.f32 %v246_v19, 0.0  ;;  %v7683_v7 = vmax.f32 %v247_v59, 0.0  ;;  %v7706_v19 = vmax.f32 %v249_v1, 0.0 }
  0xcc   : > { %10815 = vst [vmem:[#allocation47_spill] sm:$0xff] %v7666_v58  ;;  %v938_v63 = vunpack.c.h.b16 %v7666_v58  ;;  %10818 = vst [vmem:[#allocation50_spill] sm:$0xff] %v7681_v40  ;;  %v412_v43 = vrot.slane %v7681_v40, 7  ;;  %v430_v29 = vrot.slane %v7683_v7, 7  ;;  %v253_v58 = vld [vmem:[%s7173_s25 + $0xe8] sm:$0xff] }
  0xcd   : > { %10819 = vst [vmem:[#allocation51_spill] sm:$0xff] %v7683_v7  ;;  %10824 = vst [vmem:[#allocation56_spill] sm:$0xff] %v7706_v19 }
  0xce   : > { %2039 = vmatmul.mubr.bf16.gmra.mrb[60].mxu0 %v7636_v16  ;;  %v7725_v1 = vsel %vm456_vm0, %v430_v29, %v7188_v22 }
  0xcf   : > { %2046 = vmatprep.mubr.bf16.mxu0 %v7640_v37  ;;  %v534_v37 = vpack.c.bf16 %v7664_v8, %v7664_v8  ;;  %v7689_v8 = vpack.c.bf16 %v7683_v7, %v7681_v40  ;;  %10828 = vst [vmem:[#allocation60_spill] sm:$0xff] %v7725_v1 }
  0xd1   : > { %v941_v45 = vunpack.c.l.b16 %v534_v37  ;;  %10821 = vst [vmem:[#allocation53_spill] sm:$0xff] %v7689_v8  ;;  %v487_v37 = vsel %vm456_vm0, %v412_v43, %v430_v29 }
  0xd3   : > { %v7685_v25 = vpack.c.b16 %v941_v45, %v938_v63  ;;  %v7702_v45 = vsel %vm456_vm0, %v7188_v22, %v412_v43 }
  0xd4   : > { %10822 = vst [vmem:[#allocation54_spill] sm:$0xff] %v7702_v45  ;;  %v7709_v63 = vpack.c.bf16 %v487_v37, %v7702_v45 }
  0xd5   : > { %10820 = vst [vmem:[#allocation52_spill] sm:$0xff] %v7685_v25 }
  0xd6   : > { %2047 = vmatmul.mubr.bf16.gmra.mrb[64].mxu0 %v7669_v39  ;;  %v248_v39 = vld [vmem:[%s7173_s25 + $0xc0] sm:$0xff]  ;;  %10825 = vst [vmem:[#allocation57_spill] sm:$0xff] %v7709_v63 }
  0xd7   : > { %2054 = vmatprep.mubr.bf16.mxu0 %v7674_v33  ;;  %v7704_v59 = vmax.f32 %v248_v39, 0.0 }
  0xd9   : > { %10823 = vst [vmem:[#allocation55_spill] sm:$0xff] %v7704_v59  ;;  %v413_v33 = vrot.slane %v7704_v59, 7  ;;  %v7719_v43 = vpack.c.bf16 %v7706_v19, %v7704_v59 }
  0xdb   : > { %10827 = vst [vmem:[#allocation59_spill] sm:$0xff] %v7719_v43  ;;  %v506_v37 = vsel %vm456_vm0, %v7188_v22, %v413_v33  ;;  %v957_v7 = vunpack.c.h.b16 %v7719_v43  ;;  %v251_v43 = vld [vmem:[%s7173_s25 + $0xd8] sm:$0xff] }
  0xdc   : > { %v7742_v29 = vpack.c.bf16 %v506_v37, %v7725_v1 }
  0xdd   : > { %v7747_v40 = vpack.c.b16 %v7221_v35, %v957_v7 }
  0xde   : > { %2055 = vmatmul.mubr.bf16.gmra.mrb[68].mxu0 %v7685_v25  ;;  %v7713_v25 = vpack.c.bf16 %v7704_v59, %v10800_v38  ;;  %10830 = vst [vmem:[#allocation62_spill] sm:$0xff] %v7742_v29 }
  0xdf   : > { %2062 = vmatprep.mubr.bf16.mxu0 %v7689_v8  ;;  %v431_v8 = vrot.slane %v7706_v19, 7  ;;  %10831 = vst [vmem:[#allocation63_spill] sm:$0xff] %v7747_v40 }
  0xe0   : > { %10826 = vst [vmem:[#allocation58_spill] sm:$0xff] %v7713_v25 }
  0xe1   : > { %v488_v39 = vsel %vm456_vm0, %v413_v33, %v431_v8  ;;  %v7737_v19 = vsel %vm456_vm0, %v431_v8, %v7188_v22  ;;  %v250_v33 = vld [vmem:[%s7173_s25 + $0xd0] sm:$0xff] }
  0xe2   : > { %10829 = vst [vmem:[#allocation61_spill] sm:$0xff] %v7737_v19  ;;  %v7739_v59 = vpack.c.bf16 %v488_v39, %v506_v37  ;;  %v7754_v39 = vmax.f32 %v250_v33, 0.0  ;;  %v7756_v37 = vmax.f32 %v251_v43, 0.0  ;;  %v7779_v33 = vmax.f32 %v253_v58, 0.0 }
  0xe4   : > { %v956_v8 = vunpack.c.h.b16 %v7739_v59  ;;  %10832 = vst [vmem:[#allocation64_spill] sm:$0xff] %v7754_v39  ;;  %10833 = vst [vmem:[#allocation65_spill] sm:$0xff] %v7756_v37  ;;  %v414_v7 = vrot.slane %v7754_v39, 7  ;;  %v432_v1 = vrot.slane %v7756_v37, 7 }
  0xe5   : > { %10837 = vst [vmem:[#allocation69_spill] sm:$0xff] %v7779_v33 }
  0xe6   : > { %2063 = vmatmul.mubr.bf16.gmra.mrb[72].mxu0 %v7709_v63  ;;  %v7798_v58 = vsel %vm456_vm0, %v432_v1, %v7188_v22 }
  0xe7   : > { %2070 = vmatprep.mubr.bf16.mxu0 %v7713_v25  ;;  %v538_v25 = vpack.c.bf16 %v7737_v19, %v7737_v19  ;;  %v7762_v19 = vpack.c.bf16 %v7756_v37, %v7754_v39 }
  0xe9   : > { %v959_v63 = vunpack.c.l.b16 %v538_v25  ;;  %10835 = vst [vmem:[#allocation67_spill] sm:$0xff] %v7762_v19  ;;  %v489_v25 = vsel %vm456_vm0, %v414_v7, %v432_v1 }
  0xeb   : > { %v7758_v45 = vpack.c.b16 %v959_v63, %v956_v8  ;;  %v7775_v63 = vsel %vm456_vm0, %v7188_v22, %v414_v7 }
  0xec   : > { %v7782_v8 = vpack.c.bf16 %v489_v25, %v7775_v63 }
  0xed   : > { %10834 = vst [vmem:[#allocation66_spill] sm:$0xff] %v7758_v45 }
  0xee   : > { %2071 = vmatmul.mubr.bf16.gmra.mrb[76].mxu0 %v7742_v29  ;;  %v252_v29 = vld [vmem:[%s7173_s25 + $0xe0] sm:$0xff]  ;;  %10838 = vst [vmem:[#allocation70_spill] sm:$0xff] %v7782_v8 }
  0xef   : > { %2078 = vmatprep.mubr.bf16.mxu0 %v7747_v40  ;;  %v7777_v43 = vmax.f32 %v252_v29, 0.0 }
  0xf1   : > { %10836 = vst [vmem:[#allocation68_spill] sm:$0xff] %v7777_v43  ;;  %v415_v40 = vrot.slane %v7777_v43, 7  ;;  %v7792_v37 = vpack.c.bf16 %v7779_v33, %v7777_v43 }
  0xf3   : > { %10840 = vst [vmem:[#allocation72_spill] sm:$0xff] %v7792_v37  ;;  %v508_v7 = vsel %vm456_vm0, %v7188_v22, %v415_v40  ;;  %v975_v25 = vunpack.c.h.b16 %v7792_v37 }
  0xf4   : > { %v7815_v1 = vpack.c.bf16 %v508_v7, %v7798_v58 }
  0xf6   : > { %2079 = vmatmul.mubr.bf16.gmra.mrb[80].mxu0 %v7758_v45  ;;  %v7786_v45 = vpack.c.bf16 %v7777_v43, %v10800_v38  ;;  %10841 = vst [vmem:[#allocation73_spill] sm:$0xff] %v7815_v1  ;;  %v7820_v43 = vpack.c.b16 %v7221_v35, %v975_v25  ;;  %v6812_v25 = vld [vmem:[%s10538_s1 + $0x100] sm:$0xff]  }
  0xf7   : > { %2086 = vmatprep.mubr.bf16.mxu0 %v7762_v19  ;;  %v433_v19 = vrot.slane %v7779_v33, 7 }
  0xf8   : > { %10839 = vst [vmem:[#allocation71_spill] sm:$0xff] %v7786_v45  ;;  %10842 = vst [vmem:[#allocation74_spill] sm:$0xff] %v7820_v43 }
  0xf9   : > { %v490_v29 = vsel %vm456_vm0, %v415_v40, %v433_v19  ;;  %v7810_v38 = vsel %vm456_vm0, %v433_v19, %v7188_v22 }
  0xfa   : > { %v7812_v33 = vpack.c.bf16 %v490_v29, %v508_v7  ;;  %v7831_v29 = vpack.c.bf16 %v7521_v3, %v7521_v3  ;;  %v516_v7 = vpack.c.bf16 %v7308_v9, %v7308_v9 }
  0xfc   : > { %v974_v40 = vunpack.c.h.b16 %v7812_v33  ;;  %10844 = vst [vmem:[#allocation76_spill] sm:$0xff] %v7831_v29 }
  0xfe   : > { %2087 = vmatmul.mubr.bf16.gmra.mrb[84].mxu0 %v7782_v8 }
  0xff   : > { %2094 = vmatprep.mubr.bf16.mxu0 %v7786_v45  ;;  %v542_v45 = vpack.c.bf16 %v7810_v38, %v7810_v38 }
 0x101   : > { %v977_v37 = vunpack.c.l.b16 %v542_v45  ;;  %v6108_v45 = vpack.c.bf16 %v7278_v61, %v7237_v41  ;;  %v851_v41 = vunpack.c.h.b16 %v7288_v4  ;;  %v10845_v61 = vmov 0  }
 0x102   : > { %v593_v4 = vrot.slane %v7608_v30, 1 }
 0x103   : > { %v7825_v19 = vpack.c.b16 %v977_v37, %v974_v40  ;;  %v584_v37 = vrot.slane %v7190_v23, 1  ;;  %v602_v40 = vrot.slane %v7192_v24, 1  ;;  %v860_v23 = vunpack.c.l.b16 %v516_v7  ;;  %v6814_v7 = vld [vmem:[%s10538_s1 + $0x110] sm:$0xff]  }
 0x105   : > { %10843 = vst [vmem:[#allocation75_spill] sm:$0xff] %v7825_v19  ;;  %v657_v9 = vsel %vm637_vm1, %v584_v37, %v602_v40  ;;  %v7855_v24 = vsel %vm637_vm1, %v7521_v3, %v584_v37 }
 0x106   : > { %2095 = vmatmul.mubr.bf16.gmra.mrb[88].mxu0 %v7815_v1 }
 0x107   : > { %2102 = vmatprep.mubr.bf16.mxu0 %v7820_v43 }
 0x10e   : > { %2103 = vmatmul.mubr.bf16.gmra.mrb[92].mxu0 %v7825_v19  ;;  %v6813_v19 = vld [vmem:[%s10538_s1 + $0x108] sm:$0xff]  }
 0x10f   : > { %2143 = vmatprep.mubr.bf16.mxu0 %v7244_v44  ;;  %v639_v44 = vsel %vm637_vm1, %v602_v40, %v7521_v3  ;;  %v1169_v40 = vpack.c.b16 %v860_v23, %v851_v41  ;;  %v6817_v41 = vld [vmem:[%s10538_s1 + $0x128] sm:$0xff]   ;;  %v586_v23 = vrot.slane %v7254_v52, 1 }
 0x110   : > { %v7858_v43 = vpack.c.bf16 %v639_v44, %v657_v9  ;;  %v6815_v44 = vld [vmem:[%s10538_s1 + $0x118] sm:$0xff]  }
 0x112   : > { %v850_v37 = vunpack.c.h.b16 %v7858_v43 }
 0x116   : > { %2144 = vmatmul.mubr.bf16.vlgmr.msra.gmra.mrb[0].mxu0 %v7831_v29  ;;  %v607_v29 = vrot.slane %v7389_v56, 1  ;;  %v590_v56 = vrot.slane %v7466_v49, 1 }
 0x117   : > { %2337 = vmatpush1.bf16.msra.mxu0 %v6812_v25  ;;  %2151 = vmatprep.mubr.bf16.mxu0 %v6108_v45  ;;  %v6107_v25 = vpack.c.bf16 %v657_v9, %v7521_v3  ;;  %v695_v45 = vpack.c.bf16 %v7855_v24, %v7855_v24  ;;  %v6816_v9 = vld [vmem:[%s10538_s1 + $0x120] sm:$0xff]  }
 0x118   : > { %2338 = vmatprep.subr.bf16.mxu0 %v10845_v61 }
 0x119   : > { %v859_v1 = vunpack.c.l.b16 %v695_v45  ;;  %v6114_v45 = vpack.c.bf16 %v7376_v48, %v7325_v15  ;;  %v875_v48 = vunpack.c.h.b16 %v7387_v55 }
 0x11b   : > { %2339 = vmatpush1.bf16.msra.mxu0 %v6813_v19  ;;  %v1168_v19 = vpack.c.b16 %v859_v1, %v850_v37  ;;  %v604_v1 = vrot.slane %v7256_v53, 1  ;;  %v10846_v53 = vrot.slane %v7224_v36, 1  ;;  %v6819_v37 = vld [vmem:[%s10538_s1 + $0x138] sm:$0xff]  }
 0x11c   : > { %2340 = vmatprep.subr.bf16.mxu0 %v10845_v61 }
 0x11d   : > { %v659_v52 = vsel %vm637_vm1, %v586_v23, %v604_v1  ;;  %v641_v15 = vsel %vm637_vm1, %v604_v1, %v7521_v3 }
 0x11e   : > { %2152 = vmatmul.mubr.bf16.gmra.mrb[96].mxu0 %v6107_v25  ;;  %v520_v25 = vpack.c.bf16 %v7407_v62, %v7407_v62  ;;  %v7899_v62 = vsel %vm637_vm1, %v7521_v3, %v10846_v53 }
 0x11f   : > { %2159 = vmatprep.mubr.bf16.mxu0 %v1169_v40  ;;  %2341 = vmatpush1.bf16.msra.mxu0 %v6814_v7  ;;  %v7908_v7 = vsel %vm637_vm1, %v7521_v3, %v586_v23 }
 0x120   : > { %2342 = vmatprep.subr.bf16.mxu0 %v10845_v61  ;;  %v878_v40 = vunpack.c.l.b16 %v520_v25  ;;  %v699_v1 = vpack.c.bf16 %v7908_v7, %v7908_v7 }
 0x122   : > { %v1187_v23 = vpack.c.b16 %v878_v40, %v875_v48  ;;  %v587_v40 = vrot.slane %v7290_v5, 1 }
 0x123   : > { %2343 = vmatpush1.bf16.msra.mxu0 %v6815_v44 }
 0x124   : > { %2344 = vmatprep.subr.bf16.mxu0 %v10845_v61 }
 0x126   : > { %2160 = vmatmul.mubr.bf16.gmra.mrb[8].mxu0 %v1168_v19 }
 0x127   : > { %2167 = vmatprep.mubr.bf16.mxu0 %v7332_v18  ;;  %2345 = vmatpush1.bf16.msra.mxu0 %v6816_v9  ;;  %v6818_v18 = vld [vmem:[%s10538_s1 + $0x130] sm:$0xff]   ;;  %v7914_v9 = vpack.c.bf16 %v641_v15, %v659_v52  ;;  %v6821_v15 = vld [vmem:[%s10538_s1 + $0x148] sm:$0xff]  }
 0x128   : > { %2346 = vmatprep.subr.bf16.mxu0 %v10845_v61 }
 0x129   : > { %v868_v53 = vunpack.c.h.b16 %v7914_v9 }
 0x12b   : > { %2347 = vmatpush1.bf16.msra.mxu0 %v6817_v41  ;;  %v7917_v41 = vpack.c.bf16 %v659_v52, %v7899_v62  ;;  %v871_v52 = vunpack.c.l.b16 %v699_v1 }
 0x12c   : > { %2348 = vmatprep.subr.bf16.mxu0 %v10845_v61 }
 0x12d   : > { %v7933_v48 = vpack.c.b16 %v871_v52, %v868_v53  ;;  %v6120_v52 = vpack.c.bf16 %v7464_v47, %v7423_v12  ;;  %v893_v12 = vunpack.c.h.b16 %v7471_v51  ;;  %v589_v51 = vrot.slane %v7384_v54, 1 }
 0x12e   : > { %2168 = vmatmul.mubr.bf16.gmra.mrb[100].mxu0 %v7538_v21 }
 0x12f   : > { %2175 = vmatprep.mubr.bf16.mxu0 %v6114_v45  ;;  %2349 = vmatpush1.bf16.msra.mxu0 %v6818_v18  ;;  %v6820_v45 = vld [vmem:[%s10538_s1 + $0x140] sm:$0xff]  }
 0x130   : > { %2350 = vmatprep.subr.bf16.mxu0 %v10845_v61 }
 0x131   : > { %v1928_v44 = vpop.f32.mrb[4].mxu0 }
 0x132   : > { %v1930_v19 = vpop.f32.mrb[5].mxu0  ;;  %v6822_v44 = vld [vmem:[%s10538_s1 + $0x150] sm:$0xff]  }
 0x133   : > { %v7921_v25 = vpop.f32.mrb[6].mxu0  ;;  %2351 = vmatpush1.bf16.msra.mxu0 %v6819_v37  ;;  %v605_v37 = vrot.slane %v7310_v10, 1  ;;  %v6823_v10 = vld [vmem:[%s10538_s1 + $0x158] sm:$0xff]  }
 0x134   : > { %v1933_v18 = vpop.f32.mrb[7].mxu0  ;;  %2352 = vmatprep.subr.bf16.mxu0 %v10845_v61 }
 0x135   : > { %v642_v19 = vsel %vm637_vm1, %v605_v37, %v7521_v3  ;;  %v7948_v1 = vsel %vm637_vm1, %v587_v40, %v605_v37  ;;  %v524_v18 = vpack.c.bf16 %v7487_v6, %v7487_v6  ;;  %v606_v37 = vrot.slane %v7350_v34, 1 }
 0x136   : > { %2176 = vmatmul.mubr.bf16.gmra.mrb[16].mxu0 %v7917_v41 }
 0x137   : > { %2183 = vmatprep.mubr.bf16.mxu0 %v1187_v23  ;;  %2353 = vmatpush1.bf16.msra.mxu0 %v6820_v45  ;;  %v643_v6 = vsel %vm637_vm1, %v606_v37, %v7521_v3  ;;  %v896_v47 = vunpack.c.l.b16 %v524_v18 }
 0x138   : > { %2354 = vmatprep.subr.bf16.mxu0 %v10845_v61 }
 0x13b   : > { %2355 = vmatpush1.bf16.msra.mxu0 %v6821_v15  ;;  %v588_v15 = vrot.slane %v7347_v32, 1  ;;  %v7978_v32 = vsel %vm637_vm1, %v7521_v3, %v587_v40 }
 0x13c   : > { %2356 = vmatprep.subr.bf16.mxu0 %v10845_v61 }
 0x13d   : > { %v661_v34 = vsel %vm637_vm1, %v588_v15, %v606_v37  ;;  %v1205_v37 = vpack.c.b16 %v896_v47, %v893_v12 }
 0x13e   : > { %2184 = vmatmul.mubr.bf16.gmra.mrb[104].mxu0 %v7933_v48  ;;  %v7992_v40 = vpack.c.bf16 %v643_v6, %v661_v34  ;;  %v6827_v6 = vld [vmem:[%s10538_s1 + $0x178] sm:$0xff]  }
 0x13f   : > { %2191 = vmatprep.mubr.bf16.mxu0 %v7429_v14  ;;  %2357 = vmatpush1.bf16.msra.mxu0 %v6822_v44  ;;  %v7957_v14 = vpack.c.bf16 %v642_v19, %v7948_v1  ;;  %v6824_v44 = vld [vmem:[%s10538_s1 + $0x160] sm:$0xff]   ;;  %v7986_v19 = vsel %vm637_vm1, %v7521_v3, %v588_v15  ;;  %v6826_v15 = vld [vmem:[%s10538_s1 + $0x170] sm:$0xff]  }
 0x140   : > { %2358 = vmatprep.subr.bf16.mxu0 %v10845_v61  ;;  %v703_v18 = vpack.c.bf16 %v7986_v19, %v7986_v19 }
 0x141   : > { %v7954_v23 = vpop.f32.mrb[12].mxu0 }
 0x142   : > { %v1946_v45 = vpop.f32.mrb[13].mxu0 }
 0x143   : > { %v7961_v53 = vpop.f32.mrb[14].mxu0  ;;  %2359 = vmatpush1.bf16.msra.mxu0 %v6823_v10  ;;  %v6825_v10 = vld [vmem:[%s10538_s1 + $0x168] sm:$0xff]  }
 0x144   : > { %v1949_v45 = vpop.f32.mrb[15].mxu0  ;;  %2360 = vmatprep.subr.bf16.mxu0 %v10845_v61 }
 0x145   : > { %v889_v45 = vunpack.c.l.b16 %v703_v18 }
 0x146   : > { %2192 = vmatmul.mubr.bf16.gmra.mrb[24].mxu0 %v7957_v14 }
 0x147   : > { %2199 = vmatprep.mubr.bf16.mxu0 %v6120_v52  ;;  %2361 = vmatpush1.bf16.msra.mxu0 %v6824_v44  ;;  %v7995_v52 = vpack.c.bf16 %v661_v34, %v7978_v32  ;;  %v886_v44 = vunpack.c.h.b16 %v7992_v40 }
 0x148   : > { %2362 = vmatprep.subr.bf16.mxu0 %v10845_v61 }
 0x149   : > { %v8011_v47 = vpack.c.b16 %v889_v45, %v886_v44  ;;  %v608_v45 = vrot.slane %v7468_v50, 1  ;;  %v911_v50 = vunpack.c.h.b16 %v7563_v17 }
 0x14b   : > { %2363 = vmatpush1.bf16.msra.mxu0 %v6825_v10  ;;  %v645_v49 = vsel %vm637_vm1, %v608_v45, %v7521_v3 }
 0x14c   : > { %2364 = vmatprep.subr.bf16.mxu0 %v10845_v61 }
 0x14e   : > { %2200 = vmatmul.mubr.bf16.gmra.mrb[108].mxu0 %v7995_v52 }
 0x14f   : > { %2207 = vmatprep.mubr.bf16.mxu0 %v1205_v37  ;;  %2365 = vmatpush1.bf16.msra.mxu0 %v6826_v15  ;;  %v644_v37 = vsel %vm637_vm1, %v607_v29, %v7521_v3  ;;  %v8023_v15 = vsel %vm637_vm1, %v589_v51, %v607_v29  ;;  %v8040_v29 = vsel %vm637_vm1, %v7521_v3, %v589_v51 }
 0x150   : > { %2366 = vmatprep.subr.bf16.mxu0 %v10845_v61  ;;  %v8026_v44 = vpack.c.bf16 %v644_v37, %v8023_v15 }
 0x151   : > { %v8009_v34 = vpop.f32.mrb[20].mxu0 }
 0x152   : > { %v1962_v12 = vpop.f32.mrb[21].mxu0 }
 0x153   : > { %v1963_v10 = vpop.f32.mrb[22].mxu0  ;;  %2367 = vmatpush1.bf16.msra.mxu0 %v6827_v6  ;;  %v528_v6 = vpack.c.bf16 %v7579_v57, %v7579_v57  ;;  %v663_v12 = vsel %vm637_vm1, %v590_v56, %v608_v45 }
 0x154   : > { %v1965_v18 = vpop.f32.mrb[23].mxu0  ;;  %2561 = vmatprep.subr.bf16.mxu0 %v10845_v61  ;;  %v8054_v51 = vpack.c.bf16 %v663_v12, %v8040_v29 }
 0x155   : > { %v914_v57 = vunpack.c.l.b16 %v528_v6  ;;  %v8051_v18 = vpack.c.bf16 %v645_v49, %v663_v12  ;;  %v591_v49 = vrot.slane %v7515_v11, 1  ;;  %v609_v12 = vrot.slane %v7518_v13, 1 }
 0x156   : > { %2208 = vmatmul.mubr.bf16.gmra.mrb[32].mxu0 %v8011_v47  ;;  %v532_v13 = vpack.c.bf16 %v7652_v60, %v7652_v60 }
 0x157   : > { %2215 = vmatprep.mubr.bf16.mxu0 %v7501_v28  ;;  %v6126_v28 = vpack.c.bf16 %v7556_v0, %v7499_v26  ;;  %v8049_v26 = vsel %vm637_vm1, %v7521_v3, %v590_v56  ;;  %v1223_v45 = vpack.c.b16 %v914_v57, %v911_v50  ;;  %v904_v6 = vunpack.c.h.b16 %v8051_v18 }
 0x158   : > { %v707_v37 = vpack.c.bf16 %v8049_v26, %v8049_v26  ;;  %v8073_v50 = vsel %vm637_vm1, %v591_v49, %v609_v12  ;;  %v8095_v60 = vsel %vm637_vm1, %v7521_v3, %v591_v49 }
 0x15a   : > { %v907_v56 = vunpack.c.l.b16 %v707_v37 }
 0x15e   : > { %2216 = vmatmul.mubr.bf16.gmra.mrb[112].mxu0 %v8026_v44 }
 0x15f   : > { %2223 = vmatprep.mubr.bf16.mxu0 %v6126_v28 }
 0x161   : > { %v1976_v0 = vpop.f32.mrb[28].mxu0 }
 0x162   : > { %v1978_v10 = vpop.f32.mrb[29].mxu0  ;;  %v8062_v0 = vpack.c.b16 %v907_v56, %v904_v6  ;;  %v592_v6 = vrot.slane %v7558_v2, 1  ;;  %v610_v56 = vrot.slane %v7560_v31, 1  ;;  %v929_v2 = vunpack.c.h.b16 %v7636_v16 }
 0x163   : > { %v8058_v28 = vpop.f32.mrb[30].mxu0 }
 0x164   : > { %v1981_v17 = vpop.f32.mrb[31].mxu0  ;;  %v8103_v31 = vsel %vm637_vm1, %v7521_v3, %v592_v6 }
 0x165   : > { %v646_v17 = vsel %vm637_vm1, %v609_v12, %v7521_v3  ;;  %10849 = vst [vmem:[#allocation79_spill] sm:$0xff] %v8103_v31  ;;  %v711_v49 = vpack.c.bf16 %v8103_v31, %v8103_v31  ;;  %v10867_v31 = vld [vmem:[#allocation51_spill] sm:$0xff] }
 0x166   : > { %2224 = vmatmul.mubr.bf16.gmra.mrb[40].mxu0 %v8054_v51  ;;  %v8078_v37 = vpack.c.bf16 %v646_v17, %v8073_v50  ;;  %v647_v17 = vsel %vm637_vm1, %v610_v56, %v7521_v3 }
 0x167   : > { %2231 = vmatprep.mubr.bf16.mxu0 %v1223_v45  ;;  %v925_v16 = vunpack.c.l.b16 %v711_v49 }
 0x16e   : > { %2232 = vmatmul.mubr.bf16.gmra.mrb[116].mxu0 %v8062_v0 }
 0x16f   : > { %2239 = vmatprep.mubr.bf16.mxu0 %v7593_v27  ;;  %v6132_v27 = vpack.c.bf16 %v7629_v46, %v7591_v42  ;;  %v665_v42 = vsel %vm637_vm1, %v592_v6, %v610_v56  ;;  %v932_v46 = vunpack.c.l.b16 %v532_v13 }
 0x171   : > { %v8075_v57 = vpop.f32.mrb[36].mxu0 }
 0x172   : > { %10847 = vst [vmem:[#allocation77_spill] sm:$0xff] %v8075_v57  ;;  %v1994_v10 = vpop.f32.mrb[37].mxu0 }
 0x173   : > { %v8082_v45 = vpop.f32.mrb[38].mxu0  ;;  %v8105_v10 = vpack.c.bf16 %v647_v17, %v665_v42 }
 0x174   : > { %10848 = vst [vmem:[#allocation78_spill] sm:$0xff] %v8082_v45  ;;  %v1997_v12 = vpop.f32.mrb[39].mxu0 }
 0x175   : > { %v8108_v12 = vpack.c.bf16 %v665_v42, %v8095_v60  ;;  %v922_v56 = vunpack.c.h.b16 %v8105_v10  ;;  %v10853_v42 = vld [vmem:[#allocation38_spill] sm:$0xff] }
 0x176   : > { %2240 = vmatmul.mubr.bf16.gmra.mrb[48].mxu0 %v8078_v37  ;;  %v611_v45 = vrot.slane %v10853_v42, 1 }
 0x177   : > { %2247 = vmatprep.mubr.bf16.mxu0 %v6132_v27  ;;  %10850 = vst [vmem:[#allocation80_spill] sm:$0xff] %v8108_v12  ;;  %v1241_v27 = vpack.c.b16 %v932_v46, %v929_v2  ;;  %v8116_v6 = vpack.c.b16 %v925_v16, %v922_v56  ;;  %v10854_v2 = vld [vmem:[#allocation47_spill] sm:$0xff]  ;;  %v10857_v16 = vld [vmem:[#allocation41_spill] sm:$0xff]  ;;  %v10858_v56 = vld [vmem:[#allocation42_spill] sm:$0xff] }
 0x178   : > { %v648_v46 = vsel %vm637_vm1, %v611_v45, %v7521_v3  ;;  %v8127_v49 = vsel %vm637_vm1, %v593_v4, %v611_v45  ;;  %v8144_v45 = vsel %vm637_vm1, %v7521_v3, %v593_v4 }
 0x179   : > { %10852 = vst [vmem:[#allocation82_spill] sm:$0xff] %v8116_v6  ;;  %10855 = vst [vmem:[#allocation38_spill] sm:$0xff] %v8127_v49 }
 0x17e   : > { %2248 = vmatmul.mubr.bf16.gmra.mrb[120].mxu0 %v8108_v12 }
 0x17f   : > { %2255 = vmatprep.mubr.bf16.mxu0 %v1241_v27  ;;  %v594_v27 = vrot.slane %v10857_v16, 1  ;;  %v10862_v16 = vld [vmem:[#allocation57_spill] sm:$0xff] }
 0x181   : > { %v8114_v13 = vpop.f32.mrb[44].mxu0 }
 0x182   : > { %10851 = vst [vmem:[#allocation81_spill] sm:$0xff] %v8114_v13  ;;  %v2010_v55 = vpop.f32.mrb[45].mxu0  ;;  %v10860_v13 = vld [vmem:[#allocation46_spill] sm:$0xff] }
 0x183   : > { %v2011_v17 = vpop.f32.mrb[46].mxu0  ;;  %v8130_v55 = vpack.c.bf16 %v648_v46, %v8127_v49 }
 0x184   : > { %v2013_v57 = vpop.f32.mrb[47].mxu0  ;;  %v612_v17 = vrot.slane %v10858_v56, 1  ;;  %v947_v56 = vunpack.c.h.b16 %v10862_v16 }
 0x185   : > { %10856 = vst [vmem:[#allocation47_spill] sm:$0xff] %v8130_v55  ;;  %v10859_v57 = vld [vmem:[#allocation60_spill] sm:$0xff] }
 0x186   : > { %2256 = vmatmul.mubr.bf16.gmra.mrb[56].mxu0 %v8116_v6  ;;  %v536_v42 = vpack.c.bf16 %v10859_v57, %v10859_v57  ;;  %v667_v30 = vsel %vm637_vm1, %v594_v27, %v612_v17  ;;  %v649_v46 = vsel %vm637_vm1, %v612_v17, %v7521_v3 }
 0x187   : > { %2263 = vmatprep.mubr.bf16.mxu0 %v10854_v2  ;;  %v10861_v2 = vld [vmem:[#allocation54_spill] sm:$0xff]  ;;  %v8155_v12 = vpack.c.bf16 %v649_v46, %v667_v30  ;;  %v8158_v4 = vpack.c.bf16 %v667_v30, %v8144_v45  ;;  %v613_v30 = vrot.slane %v10867_v31, 1  ;;  %v540_v31 = vpack.c.bf16 %v7798_v58, %v7798_v58 }
 0x188   : > { %v6138_v6 = vpack.c.bf16 %v10861_v2, %v10860_v13  ;;  %v950_v57 = vunpack.c.l.b16 %v536_v42  ;;  %v8153_v13 = vsel %vm637_vm1, %v7521_v3, %v594_v27 }
 0x189   : > { %10863 = vst [vmem:[#allocation41_spill] sm:$0xff] %v8153_v13  ;;  %10864 = vst [vmem:[#allocation42_spill] sm:$0xff] %v8155_v12  ;;  %v940_v42 = vunpack.c.h.b16 %v8155_v12 }
 0x18a   : > { %v1259_v17 = vpack.c.b16 %v950_v57, %v947_v56 }
 0x18e   : > { %2264 = vmatmul.mubr.bf16.gmra.mrb[124].mxu0 %v8130_v55 }
 0x18f   : > { %2271 = vmatprep.mubr.bf16.mxu0 %v6138_v6  ;;  %v715_v6 = vpack.c.bf16 %v8153_v13, %v8153_v13  ;;  %v10874_v13 = vld [vmem:[#allocation56_spill] sm:$0xff] }
 0x191   : > { %v2024_v2 = vpop.f32.mrb[52].mxu0  ;;  %v943_v27 = vunpack.c.l.b16 %v715_v6 }
 0x192   : > { %v2026_v55 = vpop.f32.mrb[53].mxu0 }
 0x193   : > { %v8162_v49 = vpop.f32.mrb[54].mxu0  ;;  %v8166_v2 = vpack.c.b16 %v943_v27, %v940_v42  ;;  %v10866_v55 = vld [vmem:[#allocation50_spill] sm:$0xff] }
 0x194   : > { %10865 = vst [vmem:[#allocation60_spill] sm:$0xff] %v8162_v49  ;;  %v2029_v16 = vpop.f32.mrb[55].mxu0  ;;  %v595_v46 = vrot.slane %v10866_v55, 1  ;;  %v10873_v55 = vld [vmem:[#allocation55_spill] sm:$0xff] }
 0x195   : > { %v650_v16 = vsel %vm637_vm1, %v613_v30, %v7521_v3  ;;  %v596_v49 = vrot.slane %v10873_v55, 1  ;;  %v965_v55 = vunpack.c.h.b16 %v7782_v8 }
 0x196   : > { %2272 = vmatmul.mubr.bf16.gmra.mrb[64].mxu0 %v8158_v4  ;;  %v8177_v56 = vsel %vm637_vm1, %v595_v46, %v613_v30  ;;  %v614_v30 = vrot.slane %v10874_v13, 1  ;;  %v8199_v58 = vsel %vm637_vm1, %v7521_v3, %v595_v46 }
 0x197   : > { %2279 = vmatprep.mubr.bf16.mxu0 %v1259_v17  ;;  %10868 = vst [vmem:[#allocation46_spill] sm:$0xff] %v8177_v56  ;;  %v8182_v17 = vpack.c.bf16 %v650_v16, %v8177_v56 }
 0x198   : > { %v651_v16 = vsel %vm637_vm1, %v614_v30, %v7521_v3 }
 0x199   : > { %10870 = vst [vmem:[#allocation51_spill] sm:$0xff] %v8182_v17 }
 0x19e   : > { %2280 = vmatmul.mubr.bf16.gmra.mrb[128].mxu0 %v8166_v2 }
 0x19f   : > { %2287 = vmatprep.mubr.bf16.mxu0 %v7739_v59  ;;  %v10872_v59 = vld [vmem:[#allocation61_spill] sm:$0xff] }
 0x1a0   : > { %v6144_v27 = vpack.c.bf16 %v7775_v63, %v10872_v59  ;;  %10875 = vst [vmem:[#allocation61_spill] sm:$0xff] %v8199_v58  ;;  %v669_v63 = vsel %vm637_vm1, %v596_v49, %v614_v30 }
 0x1a1   : > { %v8179_v57 = vpop.f32.mrb[60].mxu0  ;;  %v8209_v13 = vpack.c.bf16 %v651_v16, %v669_v63  ;;  %v8212_v59 = vpack.c.bf16 %v669_v63, %v8199_v58 }
 0x1a2   : > { %10869 = vst [vmem:[#allocation54_spill] sm:$0xff] %v8179_v57  ;;  %v2042_v6 = vpop.f32.mrb[61].mxu0  ;;  %v255_v57 = vld [vmem:[%s7173_s25 + $0xf8] sm:$0xff] }
 0x1a3   : > { %v8186_v42 = vpop.f32.mrb[62].mxu0  ;;  %v968_v6 = vunpack.c.l.b16 %v540_v31  ;;  %10877 = vst [vmem:[#allocation56_spill] sm:$0xff] %v8212_v59  ;;  %v958_v31 = vunpack.c.h.b16 %v8209_v13 }
 0x1a4   : > { %10871 = vst [vmem:[#allocation83_spill] sm:$0xff] %v8186_v42  ;;  %v2045_v12 = vpop.f32.mrb[63].mxu0  ;;  %v254_v42 = vld [vmem:[%s7173_s25 + $0xf0] sm:$0xff] }
 0x1a5   : > { %v8207_v12 = vsel %vm637_vm1, %v7521_v3, %v596_v49  ;;  %v8220_v8 = vmax.f32 %v254_v42, 0.0  ;;  %v8222_v49 = vmax.f32 %v255_v57, 0.0 }
 0x1a6   : > { %2288 = vmatmul.mubr.bf16.gmra.mrb[72].mxu0 %v8182_v17  ;;  %10876 = vst [vmem:[#allocation55_spill] sm:$0xff] %v8207_v12  ;;  %v719_v46 = vpack.c.bf16 %v8207_v12, %v8207_v12 }
 0x1a7   : > { %2295 = vmatprep.mubr.bf16.mxu0 %v6144_v27  ;;  %v1277_v27 = vpack.c.b16 %v968_v6, %v965_v55  ;;  %v597_v55 = vrot.slane %v7754_v39, 1  ;;  %v10879_v6 = vld [vmem:[#allocation65_spill] sm:$0xff] }
 0x1a8   : > { %v961_v30 = vunpack.c.l.b16 %v719_v46  ;;  %v615_v12 = vrot.slane %v10879_v6, 1  ;;  %v434_v46 = vrot.slane %v8222_v49, 7 }
 0x1aa   : > { %v8226_v17 = vpack.c.b16 %v961_v30, %v958_v31  ;;  %v652_v57 = vsel %vm637_vm1, %v615_v12, %v7521_v3  ;;  %v10881_v31 = vld [vmem:[#allocation68_spill] sm:$0xff] }
 0x1ab   : > { %v598_v30 = vrot.slane %v10881_v31, 1 }
 0x1ae   : > { %2296 = vmatmul.mubr.bf16.gmra.mrb[132].mxu0 %v8212_v59  ;;  %v416_v59 = vrot.slane %v8220_v8, 7 }
 0x1af   : > { %2303 = vmatprep.mubr.bf16.mxu0 %v1277_v27  ;;  %v8249_v27 = vsel %vm456_vm0, %v434_v46, %v7188_v22 }
 0x1b0   : > { %v491_v42 = vsel %vm456_vm0, %v416_v59, %v434_v46  ;;  %10880 = vst [vmem:[#allocation65_spill] sm:$0xff] %v8249_v27  ;;  %v544_v39 = vpack.c.bf16 %v8249_v27, %v8249_v27  ;;  %v8267_v46 = vsel %vm637_vm1, %v7521_v3, %v597_v55 }
 0x1b1   : > { %v8224_v16 = vpop.f32.mrb[68].mxu0 }
 0x1b2   : > { %10878 = vst [vmem:[#allocation84_spill] sm:$0xff] %v8224_v16  ;;  %v2058_v63 = vpop.f32.mrb[69].mxu0 }
 0x1b3   : > { %v2059_v56 = vpop.f32.mrb[70].mxu0  ;;  %v10882_v63 = vld [vmem:[#allocation69_spill] sm:$0xff] }
 0x1b4   : > { %v2061_v58 = vpop.f32.mrb[71].mxu0  ;;  %v8239_v56 = vsel %vm637_vm1, %v597_v55, %v615_v12  ;;  %v616_v12 = vrot.slane %v10882_v63, 1 }
 0x1b5   : > { %v509_v58 = vsel %vm456_vm0, %v7188_v22, %v416_v59 }
 0x1b6   : > { %2304 = vmatmul.mubr.bf16.gmra.mrb[80].mxu0 %v8226_v17  ;;  %v8256_v6 = vpack.c.bf16 %v491_v42, %v509_v58  ;;  %v6150_v16 = vpack.c.bf16 %v509_v58, %v7810_v38  ;;  %v671_v59 = vsel %vm637_vm1, %v598_v30, %v616_v12  ;;  %v986_v42 = vunpack.c.l.b16 %v544_v39 }
 0x1b7   : > { %2311 = vmatprep.mubr.bf16.mxu0 %v7812_v33  ;;  %v8252_v33 = vpack.c.bf16 %v652_v57, %v8239_v56  ;;  %v653_v57 = vsel %vm637_vm1, %v616_v12, %v7521_v3  ;;  %v8276_v58 = vsel %vm637_vm1, %v7521_v3, %v598_v30  ;;  %v8281_v55 = vpack.c.bf16 %v671_v59, %v8267_v46 }
 0x1b8   : > { %10883 = vst [vmem:[#allocation68_spill] sm:$0xff] %v8256_v6  ;;  %v983_v38 = vunpack.c.h.b16 %v8256_v6  ;;  %v8278_v22 = vpack.c.bf16 %v653_v57, %v671_v59 }
 0x1ba   : > { %v1295_v12 = vpack.c.b16 %v986_v42, %v983_v38  ;;  %v976_v39 = vunpack.c.h.b16 %v8278_v22  ;;  %v10886_v42 = vld [vmem:[#allocation29_spill] sm:$0xff] }
 0x1be   : > { %2312 = vmatmul.mubr.bf16.gmra.mrb[136].mxu0 %v8252_v33 }
 0x1bf   : > { %2319 = vmatprep.mubr.bf16.mxu0 %v6150_v16  ;;  %v723_v16 = vpack.c.bf16 %v8276_v58, %v8276_v58 }
 0x1c1   : > { %v2072_v31 = vpop.f32.mrb[76].mxu0  ;;  %v979_v30 = vunpack.c.l.b16 %v723_v16  ;;  %v6110_v16 = vpack.c.bf16 %v10886_v42, %v7855_v24  ;;  %v6830_v24 = vld [vmem:[%s10538_s1 + $0x190] sm:$0xff]  }
 0x1c2   : > { %v2074_v63 = vpop.f32.mrb[77].mxu0 }
 0x1c3   : > { %v8285_v27 = vpop.f32.mrb[78].mxu0  ;;  %v8289_v31 = vpack.c.b16 %v979_v30, %v976_v39  ;;  %v697_v63 = vpack.c.bf16 %v7899_v62, %v7899_v62  ;;  %v10887_v39 = vld [vmem:[#allocation8_spill] sm:$0xff]  ;;  %v853_v62 = vunpack.c.h.b16 %v7538_v21  ;;  %v6831_v21 = vld [vmem:[%s10538_s1 + $0x198] sm:$0xff]  }
 0x1c4   : > { %v2077_v6 = vpop.f32.mrb[79].mxu0 }
 0x1c5   : > { %v6828_v6 = vld [vmem:[%s10538_s1 + $0x180] sm:$0xff]   ;;  %v862_v30 = vunpack.c.l.b16 %v697_v63 }
 0x1c6   : > { %2320 = vmatmul.mubr.bf16.gmra.mrb[88].mxu0 %v8281_v55 }
 0x1c7   : > { %2327 = vmatprep.mubr.bf16.mxu0 %v1295_v12 }
 0x1ce   : > { %2328 = vmatmul.mubr.bf16.gmra.mrb[140].mxu0 %v8289_v31 }
 0x1cf   : > { %2368 = vmatprep.mubr.bf16.mxu0 %v7858_v43  ;;  %v6829_v43 = vld [vmem:[%s10538_s1 + $0x188] sm:$0xff]  }
 0x1d1   : > { %v8293_v59 = vpop.f32.mrb[84].mxu0 }
 0x1d2   : > { %10884 = vst [vmem:[#allocation69_spill] sm:$0xff] %v8293_v59  ;;  %v2090_v57 = vpop.f32.mrb[85].mxu0  ;;  %v1171_v59 = vpack.c.b16 %v862_v30, %v853_v62  ;;  %v6116_v62 = vpack.c.bf16 %v7948_v1, %v7908_v7  ;;  %v6834_v30 = vld [vmem:[%s10538_s1 + $0x1b0] sm:$0xff]   ;;  %v6835_v7 = vld [vmem:[%s10538_s1 + $0x1b8] sm:$0xff]  }
 0x1d3   : > { %v8297_v38 = vpop.f32.mrb[86].mxu0  ;;  %v10888_v57 = vmov 0.0  }
 0x1d4   : > { %10885 = vst [vmem:[#allocation85_spill] sm:$0xff] %v8297_v38  ;;  %v2093_v12 = vpop.f32.mrb[87].mxu0  ;;  %v6109_v38 = vpack.c.bf16 %v7224_v36, %v10888_v57 }
 0x1d6   : > { %2369 = vmatmul.mubr.bf16.vlgmr.msra.gmra.mrb[0].mxu0 %v10887_v39 }
 0x1d7   : > { %2562 = vmatpush1.bf16.msra.mxu0 %v6828_v6  ;;  %2376 = vmatprep.mubr.bf16.mxu0 %v6110_v16  ;;  %v10889_v6 = vld [vmem:[#allocation9_spill] sm:$0xff] }
 0x1d8   : > { %2563 = vmatprep.subr.bf16.mxu0 %v10845_v61  ;;  %v852_v42 = vunpack.c.h.b16 %v10889_v6 }
 0x1da   : > { %v1170_v16 = vpack.c.b16 %v7221_v35, %v852_v42 }
 0x1db   : > { %2564 = vmatpush1.bf16.msra.mxu0 %v6829_v43  ;;  %v701_v43 = vpack.c.bf16 %v7978_v32, %v7978_v32  ;;  %v877_v32 = vunpack.c.h.b16 %v7957_v14 }
 0x1dc   : > { %2565 = vmatprep.subr.bf16.mxu0 %v10845_v61 }
 0x1dd   : > { %v880_v42 = vunpack.c.l.b16 %v701_v43 }
 0x1de   : > { %2377 = vmatmul.mubr.bf16.gmra.mrb[144].mxu0 %v6109_v38  ;;  %v6832_v38 = vld [vmem:[%s10538_s1 + $0x1a0] sm:$0xff]  }
 0x1df   : > { %2384 = vmatprep.mubr.bf16.mxu0 %v1171_v59  ;;  %2566 = vmatpush1.bf16.msra.mxu0 %v6830_v24  ;;  %v6833_v59 = vld [vmem:[%s10538_s1 + $0x1a8] sm:$0xff]   ;;  %v8345_v24 = vld [vmem:[%s10539_s2] ss:$0 sm:$0xff] }
 0x1e0   : > { %2567 = vmatprep.subr.bf16.mxu0 %v10845_v61 }
 0x1e1   : > { %v8321_v36 = vpop.f32.mrb[92].mxu0 }
 0x1e2   : > { %v2106_v63 = vpop.f32.mrb[93].mxu0 }
 0x1e3   : > { %v2107_v12 = vpop.f32.mrb[94].mxu0  ;;  %2568 = vmatpush1.bf16.msra.mxu0 %v6831_v21  ;;  %v1932_v63 = vadd.f32 %v8345_v24, %v7921_v25  ;;  %v10891_v25 = vld [vmem:[#allocation16_spill] sm:$0xff] }
 0x1e4   : > { %v2109_v39 = vpop.f32.mrb[95].mxu0  ;;  %2569 = vmatprep.subr.bf16.mxu0 %v10845_v61 }
 0x1e5   : > { %v6836_v39 = vld [vmem:[%s10538_s1 + $0x1c0] sm:$0xff]  }
 0x1e6   : > { %2385 = vmatmul.mubr.bf16.gmra.mrb[8].mxu0 %v1170_v16  ;;  %v6115_v16 = vpack.c.bf16 %v7290_v5, %v10888_v57  ;;  %v876_v5 = vunpack.c.h.b16 %v10891_v25 }
 0x1e7   : > { %2392 = vmatprep.mubr.bf16.mxu0 %v7914_v9  ;;  %2570 = vmatpush1.bf16.msra.mxu0 %v6832_v38  ;;  %v10890_v9 = vld [vmem:[#allocation12_spill] sm:$0xff]  ;;  %v1189_v38 = vpack.c.b16 %v880_v42, %v877_v32 }
 0x1e8   : > { %2571 = vmatprep.subr.bf16.mxu0 %v10845_v61  ;;  %v6844_v32 = vld [vmem:[%s10538_s1 + $0x210] sm:$0xff]   ;;  %v1188_v42 = vpack.c.b16 %v7221_v35, %v876_v5  ;;  %v6847_v5 = vld [vmem:[%s10538_s1 + $0x220] sm:$0xff]  }
 0x1eb   : > { %2572 = vmatpush1.bf16.msra.mxu0 %v6833_v59  ;;  %v6842_v59 = vld [vmem:[%s10538_s1 + $0x200] sm:$0xff]  }
 0x1ec   : > { %2573 = vmatprep.subr.bf16.mxu0 %v10845_v61  ;;  %6272 = vmatprep.subr.bf16.mxu1 %v6842_v59 }
 0x1ed   : > { %6273 = vmatpush3.bf16.msra.mxu1 %v6842_v59 }
 0x1ee   : > { %2393 = vmatmul.mubr.bf16.gmra.mrb[148].mxu0 %v10890_v9  ;;  %v6837_v9 = vld [vmem:[%s10538_s1 + $0x1c8] sm:$0xff]  }
 0x1ef   : > { %2400 = vmatprep.mubr.bf16.mxu0 %v6116_v62  ;;  %2574 = vmatpush1.bf16.msra.mxu0 %v6834_v30  ;;  %v6843_v30 = vld [vmem:[%s10538_s1 + $0x208] sm:$0xff]  }
 0x1f0   : > { %2575 = vmatprep.subr.bf16.mxu0 %v10845_v61  ;;  %6274 = vmatprep.subr.bf16.mxu1 %v6843_v30 }
 0x1f1   : > { %v2153_v1 = vpop.f32.mrb[96].mxu0  ;;  %6275 = vmatpush3.bf16.msra.mxu1 %v6843_v30 }
 0x1f2   : > { %v2155_v21 = vpop.f32.mrb[97].mxu0  ;;  %6276 = vmatprep.subr.bf16.mxu1 %v6844_v32  ;;  %v6839_v1 = vld [vmem:[%s10538_s1 + $0x1d8] sm:$0xff]  }
 0x1f3   : > { %v2156_v12 = vpop.f32.mrb[98].mxu0  ;;  %2576 = vmatpush1.bf16.msra.mxu0 %v6835_v7  ;;  %v6838_v7 = vld [vmem:[%s10538_s1 + $0x1d0] sm:$0xff]   ;;  %v6846_v21 = vld [vmem:[%s10538_s1 + $0x218] sm:$0xff]  }
 0x1f4   : > { %v8362_v43 = vadd.f32 %v2156_v12, %v1932_v63  ;;  %v2158_v62 = vpop.f32.mrb[99].mxu0  ;;  %2577 = vmatprep.subr.bf16.mxu0 %v10845_v61  ;;  %v1945_v63 = vadd.f32 %v8345_v24, %v7954_v23  ;;  %v6840_v23 = vld [vmem:[%s10538_s1 + $0x1e0] sm:$0xff]  }
 0x1f5   : > { %6277 = vmatpush3.bf16.msra.mxu1 %v6844_v32  ;;  %v6122_v62 = vpack.c.bf16 %v8023_v15, %v7986_v19  ;;  %v6848_v19 = vld [vmem:[%s10538_s1 + $0x228] sm:$0xff]   ;;  %v895_v15 = vunpack.c.h.b16 %v8026_v44 }
 0x1f6   : > { %2401 = vmatmul.mubr.bf16.gmra.mrb[16].mxu0 %v6115_v16  ;;  %6278 = vmatprep.subr.bf16.mxu1 %v6846_v21  ;;  %v6841_v32 = vld [vmem:[%s10538_s1 + $0x1e8] sm:$0xff]  }
 0x1f7   : > { %2408 = vmatprep.mubr.bf16.mxu0 %v1189_v38  ;;  %2578 = vmatpush1.bf16.msra.mxu0 %v6836_v39  ;;  %v705_v39 = vpack.c.bf16 %v8040_v29, %v8040_v29  ;;  %v10892_v29 = vld [vmem:[#allocation19_spill] sm:$0xff] }
 0x1f8   : > { %2579 = vmatprep.subr.bf16.mxu0 %v10845_v61 }
 0x1f9   : > { %6279 = vmatpush3.bf16.msra.mxu1 %v6846_v21  ;;  %v6845_v21 = vld [vmem:[%s10538_s1 + $0x1f0] sm:$0xff]  }
 0x1fa   : > { %6280 = vmatprep.subr.bf16.mxu1 %v6847_v5 }
 0x1fb   : > { %2580 = vmatpush1.bf16.msra.mxu0 %v6837_v9  ;;  %v898_v9 = vunpack.c.l.b16 %v705_v39 }
 0x1fc   : > { %2581 = vmatprep.subr.bf16.mxu0 %v10845_v61 }
 0x1fd   : > { %6281 = vmatpush3.bf16.msra.mxu1 %v6847_v5 }
 0x1fe   : > { %2409 = vmatmul.mubr.bf16.gmra.mrb[152].mxu0 %v1188_v42  ;;  %v6850_v42 = vld [vmem:[%s10538_s1 + $0x230] sm:$0xff]   ;;  %6282 = vmatprep.subr.bf16.mxu1 %v6848_v19 }
 0x1ff   : > { %2416 = vmatprep.mubr.bf16.mxu0 %v7992_v40  ;;  %2582 = vmatpush1.bf16.msra.mxu0 %v6838_v7  ;;  %v1948_v40 = vadd.f32 %v8345_v24, %v7961_v53  ;;  %v6121_v7 = vpack.c.bf16 %v7384_v54, %v10888_v57  ;;  %v6849_v54 = vld [vmem:[%s10538_s1 + $0x1f8] sm:$0xff]  }
 0x200   : > { %2583 = vmatprep.subr.bf16.mxu0 %v10845_v61 }
 0x201   : > { %v2169_v16 = vpop.f32.mrb[100].mxu0  ;;  %6283 = vmatpush3.bf16.msra.mxu1 %v6848_v19  ;;  %v10894_v19 = vld [vmem:[#allocation26_spill] sm:$0xff] }
 0x202   : > { %v8391_v12 = vadd.f32 %v2169_v16, %v1945_v63  ;;  %v2171_v38 = vpop.f32.mrb[101].mxu0  ;;  %6284 = vmatprep.subr.bf16.mxu1 %v6850_v42  ;;  %v10893_v63 = vld [vmem:[#allocation23_spill] sm:$0xff] }
 0x203   : > { %v2172_v59 = vpop.f32.mrb[102].mxu0  ;;  %2584 = vmatpush1.bf16.msra.mxu0 %v6839_v1  ;;  %v1207_v1 = vpack.c.b16 %v898_v9, %v895_v15  ;;  %v894_v16 = vunpack.c.h.b16 %v10893_v63  ;;  %v6851_v38 = vld [vmem:[%s10538_s1 + $0x238] sm:$0xff]  }
 0x204   : > { %v8405_v30 = vadd.f32 %v2172_v59, %v1948_v40  ;;  %v2174_v53 = vpop.f32.mrb[103].mxu0  ;;  %2585 = vmatprep.subr.bf16.mxu0 %v10845_v61  ;;  %v1961_v40 = vadd.f32 %v8345_v24, %v8009_v34  ;;  %v709_v34 = vpack.c.bf16 %v8095_v60, %v8095_v60  ;;  %v6127_v60 = vpack.c.bf16 %v7515_v11, %v10888_v57  ;;  %v10896_v11 = vld [vmem:[#allocation77_spill] sm:$0xff] }
 0x205   : > { %6285 = vmatpush3.bf16.msra.mxu1 %v6850_v42 }
 0x206   : > { %2417 = vmatmul.mubr.bf16.gmra.mrb[24].mxu0 %v10892_v29  ;;  %6286 = vmatprep.subr.bf16.mxu1 %v6851_v38  ;;  %v6128_v29 = vpack.c.bf16 %v8073_v50, %v8049_v26  ;;  %v916_v15 = vunpack.c.l.b16 %v709_v34 }
 0x207   : > { %2424 = vmatprep.mubr.bf16.mxu0 %v6122_v62  ;;  %2586 = vmatpush1.bf16.msra.mxu0 %v6840_v23  ;;  %v1206_v23 = vpack.c.b16 %v7221_v35, %v894_v16  ;;  %v10897_v16 = vld [vmem:[#allocation78_spill] sm:$0xff] }
 0x208   : > { %2587 = vmatprep.subr.bf16.mxu0 %v10845_v61 }
 0x209   : > { %6287 = vmatpush3.bf16.msra.mxu1 %v6851_v38 }
 0x20a   : > { %4659 = vmatprep.subr.bf16.mxu1 %v10845_v61 }
 0x20b   : > { %2588 = vmatpush1.bf16.msra.mxu0 %v6841_v32 }
 0x20c   : > { %2589 = vmatprep.subr.bf16.mxu0 %v10845_v61  ;;  %6289 = vmatmul.mubr.bf16.vlgmr.msra.gmra.mrb[0].mxu1 %v7917_v41  ;;  %v913_v41 = vunpack.c.h.b16 %v8078_v37 }
 0x20d   : > { %6292 = vmatprep.mubr.bf16.mxu1 %v7933_v48 }
 0x20e   : > { %2425 = vmatmul.mubr.bf16.gmra.mrb[156].mxu0 %v6121_v7  ;;  %v1225_v26 = vpack.c.b16 %v916_v15, %v913_v41  ;;  %v10904_v41 = vld [vmem:[#allocation82_spill] sm:$0xff]  ;;  %v10905_v15 = vld [vmem:[#allocation40_spill] sm:$0xff] }
 0x20f   : > { %2432 = vmatprep.mubr.bf16.mxu0 %v1207_v1  ;;  %2590 = vmatpush1.bf16.msra.mxu0 %v6845_v21 }
 0x210   : > { %2591 = vmatprep.subr.bf16.mxu0 %v10845_v61 }
 0x211   : > { %v2185_v39 = vpop.f32.mrb[104].mxu0 }
 0x212   : > { %v8436_v59 = vadd.f32 %v2185_v39, %v1961_v40  ;;  %v2187_v62 = vpop.f32.mrb[105].mxu0  ;;  %v10899_v40 = vld [vmem:[#allocation38_spill] sm:$0xff] }
 0x213   : > { %v2188_v5 = vpop.f32.mrb[106].mxu0  ;;  %2592 = vmatpush1.bf16.msra.mxu0 %v6849_v54  ;;  %v713_v54 = vpack.c.bf16 %v8144_v45, %v8144_v45  ;;  %v10900_v62 = vld [vmem:[#allocation34_spill] sm:$0xff] }
 0x214   : > { %v2190_v53 = vpop.f32.mrb[107].mxu0  ;;  %6293 = vmatmul.mubr.bf16.gmra.mrb[4].mxu1 %v7957_v14  ;;  %v10902_v5 = vld [vmem:[#allocation47_spill] sm:$0xff] }
 0x215   : > { %6296 = vmatprep.mubr.bf16.mxu1 %v7995_v52  ;;  %v10895_v52 = vld [vmem:[#allocation31_spill] sm:$0xff]  ;;  %v931_v53 = vunpack.c.h.b16 %v10902_v5  ;;  %v934_v34 = vunpack.c.l.b16 %v713_v54  ;;  %v10912_v54 = vld [vmem:[#allocation45_spill] sm:$0xff] }
 0x216   : > { %2433 = vmatmul.mubr.bf16.gmra.mrb[32].mxu0 %v1206_v23  ;;  %v912_v42 = vunpack.c.h.b16 %v10895_v52  ;;  %v10901_v23 = vld [vmem:[#allocation80_spill] sm:$0xff] }
 0x217   : > { %2440 = vmatprep.mubr.bf16.mxu0 %v8051_v18  ;;  %v1980_v18 = vadd.f32 %v8345_v24, %v8058_v28  ;;  %v1993_v28 = vadd.f32 %v8345_v24, %v10896_v11  ;;  %v10908_v11 = vld [vmem:[#allocation61_spill] sm:$0xff] }
 0x218   : > { %v1224_v7 = vpack.c.b16 %v7221_v35, %v912_v42 }
 0x21c   : > { %6297 = vmatmul.mubr.bf16.gmra.mrb[8].mxu1 %v8011_v47 }
 0x21d   : > { %6300 = vmatprep.mubr.bf16.mxu1 %v8026_v44  ;;  %v1996_v44 = vadd.f32 %v8345_v24, %v10897_v16 }
 0x21e   : > { %2441 = vmatmul.mubr.bf16.gmra.mrb[160].mxu0 %v10894_v19  ;;  %v1243_v19 = vpack.c.b16 %v934_v34, %v931_v53 }
 0x21f   : > { %2448 = vmatprep.mubr.bf16.mxu0 %v6128_v29  ;;  %v10903_v29 = vld [vmem:[#allocation37_spill] sm:$0xff] }
 0x220   : > { %v6133_v45 = vpack.c.bf16 %v10903_v29, %v10888_v57 }
 0x221   : > { %v2201_v9 = vpop.f32.mrb[108].mxu0 }
 0x222   : > { %v2203_v48 = vpop.f32.mrb[109].mxu0  ;;  %v930_v9 = vunpack.c.h.b16 %v10905_v15 }
 0x223   : > { %v2204_v32 = vpop.f32.mrb[110].mxu0 }
 0x224   : > { %v8455_v50 = vadd.f32 %v2204_v32, %v1980_v18  ;;  %v2206_v14 = vpop.f32.mrb[111].mxu0  ;;  %6301 = vmatmul.mubr.bf16.gmra.mrb[12].mxu1 %v8054_v51  ;;  %v10898_v51 = vld [vmem:[#allocation79_spill] sm:$0xff] }
 0x225   : > { %6304 = vmatprep.mubr.bf16.mxu1 %v8062_v0  ;;  %v6134_v39 = vpack.c.bf16 %v10899_v40, %v10898_v51 }
 0x226   : > { %2449 = vmatmul.mubr.bf16.gmra.mrb[40].mxu0 %v6127_v60 }
 0x227   : > { %2456 = vmatprep.mubr.bf16.mxu0 %v1225_v26  ;;  %v1242_v26 = vpack.c.b16 %v7221_v35, %v930_v9  ;;  %v599_v9 = vrot.slane %v8220_v8, 1 }
 0x22c   : > { %6305 = vmatmul.mubr.bf16.gmra.mrb[16].mxu1 %v8078_v37  ;;  %v10906_v37 = vld [vmem:[#allocation81_spill] sm:$0xff] }
 0x22d   : > { %6308 = vmatprep.mubr.bf16.mxu1 %v10901_v23  ;;  %v2009_v48 = vadd.f32 %v8345_v24, %v10906_v37  ;;  %v617_v37 = vrot.slane %v8222_v49, 1 }
 0x22e   : > { %2457 = vmatmul.mubr.bf16.gmra.mrb[164].mxu0 %v1224_v7  ;;  %v10907_v7 = vld [vmem:[#allocation42_spill] sm:$0xff] }
 0x22f   : > { %2464 = vmatprep.mubr.bf16.mxu0 %v8105_v10 }
 0x231   : > { %v2217_v1 = vpop.f32.mrb[112].mxu0 }
 0x232   : > { %v8466_v47 = vadd.f32 %v2217_v1, %v1993_v28  ;;  %v2219_v21 = vpop.f32.mrb[113].mxu0  ;;  %v717_v28 = vpack.c.bf16 %v10908_v11, %v10908_v11  ;;  %v10909_v1 = vld [vmem:[#allocation41_spill] sm:$0xff]  ;;  %v10919_v11 = vld [vmem:[#allocation55_spill] sm:$0xff] }
 0x233   : > { %v2220_v38 = vpop.f32.mrb[114].mxu0  ;;  %v10910_v21 = vld [vmem:[#allocation46_spill] sm:$0xff] }
 0x234   : > { %v8474_v0 = vadd.f32 %v2220_v38, %v1996_v44  ;;  %v2222_v10 = vpop.f32.mrb[115].mxu0  ;;  %6309 = vmatmul.mubr.bf16.gmra.mrb[20].mxu1 %v10904_v41  ;;  %v6140_v16 = vpack.c.bf16 %v10910_v21, %v10909_v1  ;;  %v10911_v44 = vld [vmem:[#allocation51_spill] sm:$0xff]  ;;  %v10913_v38 = vld [vmem:[#allocation56_spill] sm:$0xff]  ;;  %v952_v51 = vunpack.c.l.b16 %v717_v28  ;;  %v6146_v28 = vpack.c.bf16 %v8239_v56, %v10919_v11 }
 0x235   : > { %6312 = vmatprep.mubr.bf16.mxu1 %v10902_v5  ;;  %v10923_v56 = vld [vmem:[#allocation84_spill] sm:$0xff] }
 0x236   : > { %2465 = vmatmul.mubr.bf16.gmra.mrb[48].mxu0 %v10900_v62  ;;  %v10915_v62 = vld [vmem:[#allocation50_spill] sm:$0xff] }
 0x237   : > { %2472 = vmatprep.mubr.bf16.mxu0 %v6134_v39  ;;  %v6139_v23 = vpack.c.bf16 %v10915_v62, %v10888_v57 }
 0x23c   : > { %6313 = vmatmul.mubr.bf16.gmra.mrb[24].mxu1 %v8158_v4  ;;  %v949_v4 = vunpack.c.h.b16 %v10911_v44 }
 0x23d   : > { %6316 = vmatprep.mubr.bf16.mxu1 %v8166_v2  ;;  %v10914_v2 = vld [vmem:[#allocation60_spill] sm:$0xff] }
 0x23e   : > { %2473 = vmatmul.mubr.bf16.gmra.mrb[168].mxu0 %v6133_v45  ;;  %v2028_v39 = vadd.f32 %v8345_v24, %v10914_v2  ;;  %v1261_v53 = vpack.c.b16 %v952_v51, %v949_v4  ;;  %v10916_v45 = vld [vmem:[#allocation53_spill] sm:$0xff]  ;;  %v10921_v4 = vld [vmem:[#allocation64_spill] sm:$0xff] }
 0x23f   : > { %2480 = vmatprep.mubr.bf16.mxu0 %v1243_v19  ;;  %v948_v19 = vunpack.c.h.b16 %v10916_v45  ;;  %v6145_v51 = vpack.c.bf16 %v10921_v4, %v10888_v57 }
 0x241   : > { %v2233_v18 = vpop.f32.mrb[116].mxu0  ;;  %v1260_v41 = vpack.c.b16 %v7221_v35, %v948_v19 }
 0x242   : > { %v8487_v60 = vadd.f32 %v2233_v18, %v2009_v48  ;;  %v2235_v32 = vpop.f32.mrb[117].mxu0  ;;  %v654_v18 = vsel %vm637_vm1, %v617_v37, %v7521_v3 }
 0x243   : > { %v2236_v14 = vpop.f32.mrb[118].mxu0 }
 0x244   : > { %v2238_v42 = vpop.f32.mrb[119].mxu0  ;;  %6317 = vmatmul.mubr.bf16.gmra.mrb[28].mxu1 %v10911_v44  ;;  %v10920_v44 = vld [vmem:[#allocation59_spill] sm:$0xff] }
 0x245   : > { %6320 = vmatprep.mubr.bf16.mxu1 %v10913_v38 }
 0x246   : > { %2481 = vmatmul.mubr.bf16.gmra.mrb[56].mxu0 %v1242_v26  ;;  %v10918_v26 = vld [vmem:[#allocation83_spill] sm:$0xff] }
 0x247   : > { %2488 = vmatprep.mubr.bf16.mxu0 %v10907_v7  ;;  %v672_v7 = vsel %vm637_vm1, %v599_v9, %v617_v37  ;;  %v10924_v37 = vld [vmem:[#allocation72_spill] sm:$0xff] }
 0x248   : > { %v724_v1 = vpack.c.bf16 %v654_v18, %v672_v7  ;;  %v6152_v19 = vpack.c.bf16 %v672_v7, %v8276_v58 }
 0x24c   : > { %6321 = vmatmul.mubr.bf16.gmra.mrb[32].mxu1 %v8226_v17  ;;  %v10917_v17 = vld [vmem:[#allocation54_spill] sm:$0xff] }
 0x24d   : > { %6324 = vmatprep.mubr.bf16.mxu1 %v8252_v33  ;;  %v2041_v48 = vadd.f32 %v8345_v24, %v10917_v17  ;;  %v985_v17 = vunpack.c.h.b16 %v724_v1 }
 0x24e   : > { %2489 = vmatmul.mubr.bf16.gmra.mrb[172].mxu0 %v10912_v54  ;;  %v967_v54 = vunpack.c.h.b16 %v8252_v33 }
 0x24f   : > { %2496 = vmatprep.mubr.bf16.mxu0 %v6140_v16 }
 0x251   : > { %v2249_v40 = vpop.f32.mrb[120].mxu0 }
 0x252   : > { %v2251_v10 = vpop.f32.mrb[121].mxu0 }
 0x253   : > { %v2252_v5 = vpop.f32.mrb[122].mxu0 }
 0x254   : > { %v8505_v34 = vadd.f32 %v2252_v5, %v2028_v39  ;;  %v2254_v29 = vpop.f32.mrb[123].mxu0  ;;  %6325 = vmatmul.mubr.bf16.gmra.mrb[36].mxu1 %v8281_v55  ;;  %v2044_v55 = vadd.f32 %v8345_v24, %v10918_v26  ;;  %v2057_v39 = vadd.f32 %v8345_v24, %v10923_v56  ;;  %v6151_v26 = vpack.c.bf16 %v8220_v8, %v10888_v57  ;;  %v10929_v56 = vld [vmem:[#allocation13_spill] sm:$0xff] }
 0x255   : > { %6328 = vmatprep.mubr.bf16.mxu1 %v8289_v31  ;;  %v8547_v29 = vsel %vm637_vm1, %v7521_v3, %v599_v9  ;;  %v8559_v9 = vpack.c.bf16 %v8222_v49, %v8220_v8  ;;  %v10925_v8 = vld [vmem:[#allocation69_spill] sm:$0xff] }
 0x256   : > { %2497 = vmatmul.mubr.bf16.gmra.mrb[64].mxu0 %v6139_v23  ;;  %v2089_v49 = vadd.f32 %v8345_v24, %v10925_v8 }
 0x257   : > { %2504 = vmatprep.mubr.bf16.mxu0 %v1261_v53 }
 0x25c   : > { %6329 = vmatmul.mubr.bf16.gmra.mrb[40].mxu1 %v724_v1 }
 0x25e   : > { %2505 = vmatmul.mubr.bf16.gmra.mrb[176].mxu0 %v1260_v41  ;;  %v725_v41 = vpack.c.bf16 %v8547_v29, %v8547_v29 }
 0x25f   : > { %2512 = vmatprep.mubr.bf16.mxu0 %v8209_v13  ;;  %v721_v13 = vpack.c.bf16 %v8267_v46, %v8267_v46  ;;  %v10922_v46 = vld [vmem:[#allocation67_spill] sm:$0xff] }
 0x260   : > { %v966_v2 = vunpack.c.h.b16 %v10922_v46 }
 0x261   : > { %v2265_v32 = vpop.f32.mrb[124].mxu0  ;;  %v970_v38 = vunpack.c.l.b16 %v721_v13  ;;  %v984_v13 = vunpack.c.h.b16 %v8559_v9 }
 0x262   : > { %v8523_v14 = vadd.f32 %v2265_v32, %v2041_v48  ;;  %v2267_v42 = vpop.f32.mrb[125].mxu0  ;;  %v1278_v5 = vpack.c.b16 %v7221_v35, %v966_v2  ;;  %v988_v48 = vunpack.c.l.b16 %v725_v41  ;;  %v2076_v32 = vadd.f32 %v8345_v24, %v8285_v27  ;;  %v6852_v27 = vld [vmem:[%s10540_s3] sm:$0xff]   ;;  %v10928_v2 = vld [vmem:[#allocation11_spill] sm:$0xff] }
 0x263   : > { %v2268_v31 = vpop.f32.mrb[126].mxu0  ;;  %v1279_v40 = vpack.c.b16 %v970_v38, %v967_v54  ;;  %4660 = vmatpush1.bf16.msra.mxu1 %v6852_v27 }
 0x264   : > { %v8531_v21 = vadd.f32 %v2268_v31, %v2044_v55  ;;  %v2270_v16 = vpop.f32.mrb[127].mxu0  ;;  %v1297_v55 = vpack.c.b16 %v988_v48, %v985_v17  ;;  %v1296_v31 = vpack.c.b16 %v7221_v35, %v984_v13  ;;  %4661 = vmatprep.subr.bf16.mxu1 %v10845_v61  ;;  %v6856_v17 = vld [vmem:[%s10540_s3 + $0x20] sm:$0xff]   ;;  %v10935_v13 = vld [vmem:[#allocation21_spill] sm:$0xff] }
 0x265   : > { %v10933_v48 = vld [vmem:[#allocation18_spill] sm:$0xff] }
 0x266   : > { %2513 = vmatmul.mubr.bf16.gmra.mrb[72].mxu0 %v10920_v44 }
 0x267   : > { %2520 = vmatprep.mubr.bf16.mxu0 %v6146_v28  ;;  %v10926_v28 = vld [vmem:[#allocation85_spill] sm:$0xff] }
 0x268   : > { %v2092_v1 = vadd.f32 %v8345_v24, %v10926_v28 }
 0x26e   : > { %2521 = vmatmul.mubr.bf16.gmra.mrb[180].mxu0 %v6145_v51  ;;  %v10927_v51 = vld [vmem:[#allocation10_spill] sm:$0xff] }
 0x26f   : > { %2528 = vmatprep.mubr.bf16.mxu0 %v1279_v40  ;;  %v6854_v40 = vld [vmem:[%s10540_s3 + $0x10] sm:$0xff]  }
 0x271   : > { %v2281_v10 = vpop.f32.mrb[128].mxu0 }
 0x272   : > { %v8540_v62 = vadd.f32 %v2281_v10, %v2057_v39  ;;  %v2283_v23 = vpop.f32.mrb[129].mxu0  ;;  %v6855_v39 = vld [vmem:[%s10540_s3 + $0x18] sm:$0xff]   ;;  %v10930_v10 = vld [vmem:[#allocation14_spill] sm:$0xff] }
 0x273   : > { %v2284_v53 = vpop.f32.mrb[130].mxu0  ;;  %v2105_v23 = vadd.f32 %v8345_v24, %v8321_v36  ;;  %v6857_v36 = vld [vmem:[%s10540_s3 + $0x28] sm:$0xff]   ;;  %v10932_v24 = vld [vmem:[#allocation17_spill] sm:$0xff] }
 0x274   : > { %v2286_v33 = vpop.f32.mrb[131].mxu0 }
 0x276   : > { %2529 = vmatmul.mubr.bf16.gmra.mrb[80].mxu0 %v1278_v5 }
 0x277   : > { %2536 = vmatprep.mubr.bf16.mxu0 %v8278_v22 }
 0x27e   : > { %2537 = vmatmul.mubr.bf16.gmra.mrb[184].mxu0 %v10924_v37  ;;  %v10931_v37 = vld [vmem:[#allocation15_spill] sm:$0xff] }
 0x27f   : > { %2544 = vmatprep.mubr.bf16.mxu0 %v6152_v19 }
 0x281   : > { %v2297_v18 = vpop.f32.mrb[132].mxu0 }
 0x282   : > { %v2299_v22 = vpop.f32.mrb[133].mxu0 }
 0x283   : > { %v2300_v58 = vpop.f32.mrb[134].mxu0 }
 0x284   : > { %v8561_v42 = vadd.f32 %v2300_v58, %v2076_v32  ;;  %v2302_v7 = vpop.f32.mrb[135].mxu0 }
 0x285   : > { %v6859_v7 = vld [vmem:[%s10540_s3 + $0x38] sm:$0xff]  }
 0x286   : > { %2545 = vmatmul.mubr.bf16.gmra.mrb[88].mxu0 %v6151_v26 }
 0x287   : > { %2552 = vmatprep.mubr.bf16.mxu0 %v1297_v55  ;;  %v10934_v55 = vld [vmem:[#allocation20_spill] sm:$0xff] }
 0x28e   : > { %2553 = vmatmul.mubr.bf16.gmra.mrb[188].mxu0 %v1296_v31  ;;  %v10936_v31 = vld [vmem:[#allocation22_spill] sm:$0xff] }
 0x28f   : > { %2593 = vmatprep.mubr.bf16.mxu0 %v10889_v6  ;;  %v6853_v6 = vld [vmem:[%s10540_s3 + $0x8] sm:$0xff]  }
 0x290   : > { %4662 = vmatpush1.bf16.msra.mxu1 %v6853_v6  ;;  %v6155_v6 = vpack.c.bf16 %v7521_v3, %v8547_v29  ;;  %v10942_v29 = vld [vmem:[#allocation27_spill] sm:$0xff] }
 0x291   : > { %v2313_v11 = vpop.f32.mrb[136].mxu0  ;;  %4663 = vmatprep.subr.bf16.mxu1 %v10845_v61 }
 0x292   : > { %v8574_v16 = vadd.f32 %v2313_v11, %v2089_v49  ;;  %v2315_v44 = vpop.f32.mrb[137].mxu0  ;;  %6332 = vmatprep.mubr.bf16.mxu1 %v6155_v6 }
 0x293   : > { %v2316_v54 = vpop.f32.mrb[138].mxu0  ;;  %v6861_v44 = vld [vmem:[%s10540_s3 + $0x48] sm:$0xff]  }
 0x294   : > { %v8576_v38 = vadd.f32 %v2316_v54, %v2092_v1  ;;  %v2318_v4 = vpop.f32.mrb[139].mxu0  ;;  %4664 = vmatpush1.bf16.msra.mxu1 %v6854_v40  ;;  %v10937_v54 = vld [vmem:[#allocation76_spill] sm:$0xff]  ;;  %v10940_v40 = vld [vmem:[#allocation25_spill] sm:$0xff] }
 0x295   : > { %4665 = vmatprep.subr.bf16.mxu1 %v10845_v61  ;;  %v994_v4 = vunpack.c.h.b16 %v10937_v54 }
 0x296   : > { %2594 = vmatmul.mubr.bf16.vlgmr.msra.gmra.mrb[0].mxu0 %v10927_v51  ;;  %v10938_v51 = vld [vmem:[#allocation24_spill] sm:$0xff] }
 0x297   : > { %2601 = vmatprep.mubr.bf16.mxu0 %v10928_v2  ;;  %v10941_v2 = vmov 0.0|0.0  }
 0x298   : > { %4666 = vmatpush1.bf16.msra.mxu1 %v6855_v39  ;;  %v10943_v39 = vld [vmem:[#allocation28_spill] sm:$0xff] }
 0x299   : > { %4667 = vmatprep.subr.bf16.mxu1 %v10845_v61 }
 0x29c   : > { %4668 = vmatpush1.bf16.msra.mxu1 %v6856_v17  ;;  %v6865_v17 = vld [vmem:[%s10540_s3 + $0x68] sm:$0xff]  }
 0x29d   : > { %4669 = vmatprep.subr.bf16.mxu1 %v10845_v61 }
 0x29e   : > { %2602 = vmatmul.mubr.bf16.gmra.mrb[192].mxu0 %v10929_v56  ;;  %v6863_v56 = vld [vmem:[%s10540_s3 + $0x58] sm:$0xff]  }
 0x29f   : > { %2609 = vmatprep.mubr.bf16.mxu0 %v10930_v10 }
 0x2a0   : > { %4670 = vmatpush1.bf16.msra.mxu1 %v6857_v36  ;;  %v10946_v36 = vld [vmem:[#allocation33_spill] sm:$0xff] }
 0x2a1   : > { %v2329_v5 = vpop.f32.mrb[140].mxu0  ;;  %4671 = vmatprep.subr.bf16.mxu1 %v10845_v61 }
 0x2a2   : > { %v8596_v53 = vadd.f32 %v2329_v5, %v2105_v23  ;;  %v2331_v33 = vpop.f32.mrb[141].mxu0 }
 0x2a3   : > { %v2332_v19 = vpop.f32.mrb[142].mxu0 }
 0x2a4   : > { %v2334_v41 = vpop.f32.mrb[143].mxu0 }
 0x2a5   : > { %v6864_v41 = vld [vmem:[%s10540_s3 + $0x60] sm:$0xff]  }
 0x2a6   : > { %2610 = vmatmul.mubr.bf16.gmra.mrb[8].mxu0 %v10931_v37  ;;  %v10944_v37 = vld [vmem:[#allocation30_spill] sm:$0xff] }
 0x2a7   : > { %2617 = vmatprep.mubr.bf16.mxu0 %v10891_v25  ;;  %v6858_v25 = vld [vmem:[%s10540_s3 + $0x30] sm:$0xff]  }
 0x2a8   : > { %4672 = vmatpush1.bf16.msra.mxu1 %v6858_v25 }
 0x2a9   : > { %4673 = vmatprep.subr.bf16.mxu1 %v10845_v61 }
 0x2ac   : > { %4674 = vmatpush1.bf16.msra.mxu1 %v6859_v7 }
 0x2ad   : > { %4675 = vmatprep.subr.bf16.mxu1 %v10845_v61 }
 0x2ae   : > { %2618 = vmatmul.mubr.bf16.gmra.mrb[196].mxu0 %v10932_v24 }
 0x2af   : > { %2625 = vmatprep.mubr.bf16.mxu0 %v10933_v48 }
 0x2b1   : > { %v2378_v18 = vpop.f32.mrb[144].mxu0 }
 0x2b2   : > { %v2380_v32 = vpop.f32.mrb[145].mxu0  ;;  %v6866_v18 = vld [vmem:[%s10540_s3 + $0x70] sm:$0xff]  }
 0x2b3   : > { %v2381_v22 = vpop.f32.mrb[146].mxu0 }
 0x2b4   : > { %v8614_v26 = vadd.f32 %v2381_v22, %v8362_v43  ;;  %v2383_v58 = vpop.f32.mrb[147].mxu0  ;;  %v6860_v43 = vld [vmem:[%s10540_s3 + $0x40] sm:$0xff]   ;;  %v6867_v22 = vld [vmem:[%s10540_s3 + $0x78] sm:$0xff]  }
 0x2b5   : > { %4676 = vmatpush1.bf16.msra.mxu1 %v6860_v43  ;;  %v10947_v58 = vld [vmem:[#allocation35_spill] sm:$0xff] }
 0x2b6   : > { %2626 = vmatmul.mubr.bf16.gmra.mrb[16].mxu0 %v10934_v55  ;;  %4677 = vmatprep.subr.bf16.mxu1 %v10845_v61  ;;  %v10948_v55 = vld [vmem:[#allocation36_spill] sm:$0xff]  ;;  %v10949_v43 = vld [vmem:[#allocation7_spill] sm:$0xff] }
 0x2b7   : > { %2633 = vmatprep.mubr.bf16.mxu0 %v10935_v13 }
 0x2b9   : > { %4678 = vmatpush1.bf16.msra.mxu1 %v6861_v44 }
 0x2ba   : > { %4679 = vmatprep.subr.bf16.mxu1 %v10845_v61 }
 0x2be   : > { %2634 = vmatmul.mubr.bf16.gmra.mrb[200].mxu0 %v10936_v31 }
 0x2bf   : > { %2641 = vmatprep.mubr.bf16.mxu0 %v10893_v63  ;;  %v997_v63 = vunpack.c.l.b16 %v10937_v54 }
 0x2c1   : > { %v2394_v27 = vpop.f32.mrb[148].mxu0 }
 0x2c2   : > { %v8630_v8 = vadd.f32 %v2394_v27, %v8391_v12  ;;  %v2396_v49 = vpop.f32.mrb[149].mxu0  ;;  %v8643_v12 = vpack.c.b16 %v997_v63, %v994_v4  ;;  %v10950_v27 = vld [vmem:[#allocation39_spill] sm:$0xff]  ;;  %v6868_v4 = vld [vmem:[%s10540_s3 + $0x80] sm:$0xff]  }
 0x2c3   : > { %v2397_v11 = vpop.f32.mrb[150].mxu0  ;;  %v6869_v49 = vld [vmem:[%s10540_s3 + $0x200] sm:$0xff]   ;;  %v6870_v63 = vld [vmem:[%s10540_s3 + $0x208] sm:$0xff]  }
 0x2c4   : > { %v8633_v28 = vadd.f32 %v2397_v11, %v8405_v30  ;;  %v2399_v1 = vpop.f32.mrb[151].mxu0  ;;  %10939 = vst [vmem:[#allocation29_spill] sm:$0xff] %v8643_v12  ;;  %v6862_v30 = vld [vmem:[%s10540_s3 + $0x50] sm:$0xff]   ;;  %6333 = vmatmul.mubr.bf16.gmra.mrb[44].mxu1 %v8643_v12  ;;  %6336 = vmatprep.subr.bf16.mxu0 %v6869_v49 }
 0x2c5   : > { %4691 = vmatprep.mubr.bf16.mxu1 %v10941_v2  ;;  %4680 = vmatpush1.bf16.msra.mxu1 %v6862_v30  ;;  %v6871_v30 = vld [vmem:[%s10540_s3 + $0x210] sm:$0xff]  }
 0x2c6   : > { %2642 = vmatmul.mubr.bf16.gmra.mrb[24].mxu0 %v10938_v51  ;;  %4681 = vmatprep.subr.bf16.mxu1 %v10845_v61 }
 0x2c7   : > { %2649 = vmatprep.mubr.bf16.mxu0 %v10940_v40  ;;  %6337 = vmatpush3.bf16.msra.mxu0 %v6869_v49  ;;  %v10952_v40 = vld [vmem:[#allocation44_spill] sm:$0xff] }
 0x2c8   : > { %6338 = vmatprep.subr.bf16.mxu0 %v6870_v63 }
 0x2c9   : > { %4682 = vmatpush1.bf16.msra.mxu1 %v6863_v56 }
 0x2ca   : > { %4683 = vmatprep.subr.bf16.mxu1 %v10845_v61 }
 0x2cb   : > { %6339 = vmatpush3.bf16.msra.mxu0 %v6870_v63 }
 0x2cc   : > { %6340 = vmatprep.subr.bf16.mxu0 %v6871_v30 }
 0x2cd   : > { %4684 = vmatpush1.bf16.msra.mxu1 %v6864_v41  ;;  %v6872_v41 = vld [vmem:[%s10540_s3 + $0x88] sm:$0xff]  }
 0x2ce   : > { %2650 = vmatmul.mubr.bf16.gmra.mrb[204].mxu0 %v10942_v29  ;;  %4685 = vmatprep.subr.bf16.mxu1 %v10845_v61 }
 0x2cf   : > { %2657 = vmatprep.mubr.bf16.mxu0 %v10943_v39  ;;  %6341 = vmatpush3.bf16.msra.mxu0 %v6871_v30  ;;  %v6873_v39 = vld [vmem:[%s10540_s3 + $0x218] sm:$0xff]  }
 0x2d0   : > { %6342 = vmatprep.subr.bf16.mxu0 %v6873_v39  ;;  %v6879_v30 = vld [vmem:[%s10540_s3 + $0x98] sm:$0xff]  }
 0x2d1   : > { %v2410_v10 = vpop.f32.mrb[152].mxu0  ;;  %4686 = vmatpush1.bf16.msra.mxu1 %v6865_v17 }
 0x2d2   : > { %v8660_v23 = vadd.f32 %v2410_v10, %v8436_v59  ;;  %v2412_v5 = vpop.f32.mrb[153].mxu0  ;;  %4687 = vmatprep.subr.bf16.mxu1 %v10845_v61  ;;  %v10945_v59 = vld [vmem:[#allocation32_spill] sm:$0xff] }
 0x2d3   : > { %v2413_v33 = vpop.f32.mrb[154].mxu0  ;;  %6343 = vmatpush3.bf16.msra.mxu0 %v6873_v39  ;;  %v10953_v5 = vld [vmem:[#allocation48_spill] sm:$0xff] }
 0x2d4   : > { %v2415_v19 = vpop.f32.mrb[155].mxu0  ;;  %v6874_v33 = vld [vmem:[%s10540_s3 + $0x220] sm:$0xff]  }
 0x2d5   : > { %4688 = vmatpush1.bf16.msra.mxu1 %v6866_v18  ;;  %v10954_v19 = vld [vmem:[#allocation49_spill] sm:$0xff]  ;;  %6344 = vmatprep.subr.bf16.mxu0 %v6874_v33  ;;  %v10955_v18 = vld [vmem:[#allocation52_spill] sm:$0xff] }
 0x2d6   : > { %2658 = vmatmul.mubr.bf16.gmra.mrb[32].mxu0 %v10944_v37  ;;  %4689 = vmatprep.subr.bf16.mxu1 %v10845_v61 }
 0x2d7   : > { %2665 = vmatprep.mubr.bf16.mxu0 %v10895_v52  ;;  %6345 = vmatpush3.bf16.msra.mxu0 %v6874_v33 }
 0x2d9   : > { %4690 = vmatpush1.bf16.msra.mxu1 %v6867_v22  ;;  %v6876_v22 = vld [vmem:[%s10540_s3 + $0x90] sm:$0xff]  }
 0x2da   : > { %4868 = vmatprep.subr.bf16.mxu1 %v10845_v61 }
 0x2dc   : > { %4692 = vmatmul.mubr.bf16.vlgmr.msra.gmra.mrb[48].mxu1 %v10949_v43 }
 0x2dd   : > { %4869 = vmatpush1.bf16.msra.mxu1 %v6868_v4 }
 0x2de   : > { %2666 = vmatmul.mubr.bf16.gmra.mrb[208].mxu0 %v10945_v59  ;;  %4870 = vmatprep.subr.bf16.mxu1 %v10845_v61 }
 0x2df   : > { %2673 = vmatprep.mubr.bf16.mxu0 %v10946_v36  ;;  %v6290_v7 = vpop.f32.mrb[0].mxu1  ;;  %v6875_v36 = vld [vmem:[%s10540_s3 + $0x228] sm:$0xff]  }
 0x2e0   : > { %v8686_v13 = vpop.f32.mrb[1].mxu1  ;;  %6346 = vmatprep.subr.bf16.mxu0 %v6875_v36  ;;  %v10956_v7 = vld [vmem:[#allocation57_spill] sm:$0xff] }
 0x2e1   : > { %v2426_v24 = vpop.f32.mrb[156].mxu0  ;;  %4871 = vmatpush1.bf16.msra.mxu1 %v6872_v41  ;;  %6347 = vmatpush3.bf16.msra.mxu0 %v6875_v36  ;;  %v6880_v41 = vld [vmem:[%s10540_s3 + $0xa0] sm:$0xff]  }
 0x2e2   : > { %v2428_v48 = vpop.f32.mrb[157].mxu0  ;;  %4872 = vmatprep.subr.bf16.mxu1 %v10845_v61 }
 0x2e3   : > { %v2429_v32 = vpop.f32.mrb[158].mxu0 }
 0x2e4   : > { %v8678_v25 = vadd.f32 %v2429_v32, %v8455_v50  ;;  %v2431_v52 = vpop.f32.mrb[159].mxu0  ;;  %v8689_v50 = vpop.f32.mrb[2].mxu1  ;;  %v6877_v32 = vld [vmem:[%s10540_s3 + $0x230] sm:$0xff]  }
 0x2e5   : > { %v8691_v31 = vpop.f32.mrb[3].mxu1  ;;  %6348 = vmatprep.subr.bf16.mxu0 %v6877_v32  ;;  %4873 = vmatpush1.bf16.msra.mxu1 %v6876_v22  ;;  %v10964_v22 = vld [vmem:[#allocation74_spill] sm:$0xff] }
 0x2e6   : > { %2674 = vmatmul.mubr.bf16.gmra.mrb[40].mxu0 %v10947_v58  ;;  %4874 = vmatprep.subr.bf16.mxu1 %v10845_v61 }
 0x2e7   : > { %2681 = vmatprep.mubr.bf16.mxu0 %v10948_v55  ;;  %v8717_v29 = vpop.f32.mrb[4].mxu1  ;;  %6349 = vmatpush3.bf16.msra.mxu0 %v6877_v32 }
 0x2e9   : > { %4875 = vmatpush1.bf16.msra.mxu1 %v6879_v30 }
 0x2ea   : > { %4876 = vmatprep.subr.bf16.mxu1 %v10845_v61 }
 0x2ed   : > { %4877 = vmatpush1.bf16.msra.mxu1 %v6880_v41  ;;  %v10968_v41 = vld [vmem:[#allocation6_spill] sm:$0xff] }
 0x2ee   : > { %2682 = vmatmul.mubr.bf16.gmra.mrb[212].mxu0 %v10950_v27  ;;  %v10957_v27 = vld [vmem:[#allocation58_spill] sm:$0xff]  ;;  %4878 = vmatprep.subr.bf16.mxu1 %v10845_v61 }
 0x2ef   : > { %2689 = vmatprep.mubr.bf16.mxu0 %v10905_v15 }
 0x2f1   : > { %v2442_v11 = vpop.f32.mrb[160].mxu0 }
 0x2f2   : > { %v8700_v1 = vadd.f32 %v2442_v11, %v8466_v47  ;;  %v2444_v44 = vpop.f32.mrb[161].mxu0  ;;  %v10951_v47 = vld [vmem:[#allocation43_spill] sm:$0xff] }
 0x2f3   : > { %v2445_v6 = vpop.f32.mrb[162].mxu0 }
 0x2f4   : > { %v8709_v51 = vadd.f32 %v2445_v6, %v8474_v0  ;;  %v2447_v15 = vpop.f32.mrb[163].mxu0  ;;  %v8719_v0 = vpop.f32.mrb[5].mxu1 }
 0x2f5   : > { %v8721_v56 = vpop.f32.mrb[6].mxu1  ;;  %v10958_v15 = vld [vmem:[#allocation62_spill] sm:$0xff] }
 0x2f6   : > { %2690 = vmatmul.mubr.bf16.gmra.mrb[48].mxu0 %v10951_v47  ;;  %v2839_v10 = vpop.f32.mrb[7].mxu1  ;;  %v10959_v47 = vld [vmem:[#allocation63_spill] sm:$0xff] }
 0x2f7   : > { %2697 = vmatprep.mubr.bf16.mxu0 %v10952_v40  ;;  %v8749_v52 = vpop.f32.mrb[8].mxu1 }
 0x2f8   : > { %v2852_v58 = vpop.f32.mrb[9].mxu1 }
 0x2f9   : > { %v6299_v55 = vpop.f32.mrb[10].mxu1 }
 0x2fe   : > { %2698 = vmatmul.mubr.bf16.gmra.mrb[216].mxu0 %v10953_v5 }
 0x2ff   : > { %2705 = vmatprep.mubr.bf16.mxu0 %v10954_v19 }
 0x301   : > { %v2458_v37 = vpop.f32.mrb[164].mxu0 }
 0x302   : > { %v8735_v17 = vadd.f32 %v2458_v37, %v8487_v60  ;;  %v2460_v59 = vpop.f32.mrb[165].mxu0  ;;  %v6878_v60 = vld [vmem:[%s10540_s3 + $0x238] sm:$0xff]  }
 0x303   : > { %v2461_v24 = vpop.f32.mrb[166].mxu0  ;;  %6350 = vmatprep.subr.bf16.mxu0 %v6878_v60 }
 0x304   : > { %v2463_v48 = vpop.f32.mrb[167].mxu0  ;;  %6351 = vmatpush3.bf16.msra.mxu0 %v6878_v60  ;;  %v10961_v24 = vld [vmem:[#allocation70_spill] sm:$0xff]  ;;  %v10963_v60 = vld [vmem:[#allocation73_spill] sm:$0xff] }
 0x306   : > { %2706 = vmatmul.mubr.bf16.gmra.mrb[56].mxu0 %v10955_v18 }
 0x307   : > { %2713 = vmatprep.mubr.bf16.mxu0 %v10916_v45  ;;  %v8755_v45 = vpop.f32.mrb[11].mxu1 }
 0x308   : > { %v6302_v49 = vpop.f32.mrb[12].mxu1 }
 0x309   : > { %v8767_v40 = vpop.f32.mrb[13].mxu1 }
 0x30a   : > { %v8769_v39 = vpop.f32.mrb[14].mxu1 }
 0x30b   : > { %v8772_v10 = vpop.f32.mrb[15].mxu1 }
 0x30c   : > { %v8788_v48 = vpop.f32.mrb[16].mxu1 }
 0x30e   : > { %2714 = vmatmul.mubr.bf16.gmra.mrb[220].mxu0 %v10956_v7 }
 0x30f   : > { %2721 = vmatprep.mubr.bf16.mxu0 %v10957_v27 }
 0x311   : > { %v2474_v11 = vpop.f32.mrb[168].mxu0 }
 0x312   : > { %v2476_v44 = vpop.f32.mrb[169].mxu0  ;;  %v10965_v11 = vld [vmem:[#allocation75_spill] sm:$0xff] }
 0x313   : > { %v2477_v4 = vpop.f32.mrb[170].mxu0  ;;  %v6882_v44 = vld [vmem:[%s10540_s3 + $0xb0] sm:$0xff]  }
 0x314   : > { %v8760_v63 = vadd.f32 %v2477_v4, %v8505_v34  ;;  %v2479_v6 = vpop.f32.mrb[171].mxu0  ;;  %v10960_v34 = vld [vmem:[#allocation66_spill] sm:$0xff] }
 0x316   : > { %2722 = vmatmul.mubr.bf16.gmra.mrb[64].mxu0 %v10958_v15 }
 0x317   : > { %2729 = vmatprep.mubr.bf16.mxu0 %v10959_v47  ;;  %v10966_v47 = vld [vmem:[#allocation68_spill] sm:$0xff] }
 0x31e   : > { %2730 = vmatmul.mubr.bf16.gmra.mrb[224].mxu0 %v10960_v34 }
 0x31f   : > { %2737 = vmatprep.mubr.bf16.mxu0 %v10922_v46  ;;  %v10962_v46 = vld [vmem:[#allocation71_spill] sm:$0xff] }
 0x321   : > { %v2490_v5 = vpop.f32.mrb[172].mxu0 }
 0x322   : > { %v8777_v33 = vadd.f32 %v2490_v5, %v8523_v14  ;;  %v2492_v19 = vpop.f32.mrb[173].mxu0  ;;  %v8790_v14 = vpop.f32.mrb[17].mxu1 }
 0x323   : > { %v2493_v37 = vpop.f32.mrb[174].mxu0  ;;  %v8792_v18 = vpop.f32.mrb[18].mxu1  ;;  %v10967_v19 = vld [vmem:[#allocation65_spill] sm:$0xff] }
 0x324   : > { %v8783_v59 = vadd.f32 %v2493_v37, %v8531_v21  ;;  %v2495_v36 = vpop.f32.mrb[175].mxu0  ;;  %v2887_v32 = vpop.f32.mrb[19].mxu1  ;;  %v6881_v21 = vld [vmem:[%s10540_s3 + $0xa8] sm:$0xff]   ;;  %v6153_v37 = vpack.c.bf16 %v10968_v41, %v10967_v19 }
 0x325   : > { %4879 = vmatpush1.bf16.msra.mxu1 %v6881_v21  ;;  %v8808_v4 = vpop.f32.mrb[20].mxu1 }
 0x326   : > { %2738 = vmatmul.mubr.bf16.gmra.mrb[72].mxu0 %v10961_v24  ;;  %4880 = vmatprep.subr.bf16.mxu1 %v10845_v61  ;;  %v2900_v6 = vpop.f32.mrb[21].mxu1 }
 0x327   : > { %2745 = vmatprep.mubr.bf16.mxu0 %v10962_v46 }
 0x329   : > { %4881 = vmatpush1.bf16.msra.mxu1 %v6882_v44  ;;  %v6884_v44 = vld [vmem:[%s10540_s3 + $0xc0] sm:$0xff]  }
 0x32a   : > { %4882 = vmatprep.subr.bf16.mxu1 %v10845_v61 }
 0x32e   : > { %2746 = vmatmul.mubr.bf16.gmra.mrb[228].mxu0 %v10963_v60  ;;  %v992_v60 = vunpack.c.h.b16 %v10949_v43 }
 0x32f   : > { %2753 = vmatprep.mubr.bf16.mxu0 %v10964_v22  ;;  %v995_v22 = vunpack.c.l.b16 %v10949_v43 }
 0x331   : > { %v2506_v58 = vpop.f32.mrb[176].mxu0  ;;  %v8827_v21 = vpack.c.b16 %v995_v22, %v992_v60  ;;  %v8866_v22 = vld [vmem:[%s10539_s2] ss:$0 sm:$0xff] }
 0x332   : > { %v8800_v55 = vadd.f32 %v2506_v58, %v8540_v62  ;;  %v2508_v7 = vpop.f32.mrb[177].mxu0  ;;  %v6311_v62 = vpop.f32.mrb[22].mxu1  ;;  %v6883_v58 = vld [vmem:[%s10540_s3 + $0xb8] sm:$0xff]  }
 0x333   : > { %v2509_v27 = vpop.f32.mrb[178].mxu0  ;;  %v8810_v15 = vpop.f32.mrb[23].mxu1  ;;  %10970 = vst [vmem:[#allocation9_spill] sm:$0xff] %v8827_v21  ;;  %4883 = vmatpush1.bf16.msra.mxu1 %v6883_v58 }
 0x334   : > { %v2511_v49 = vpop.f32.mrb[179].mxu0  ;;  %v6314_v30 = vpop.f32.mrb[24].mxu1  ;;  %4884 = vmatprep.subr.bf16.mxu1 %v10845_v61 }
 0x335   : > { %v8832_v7 = vpop.f32.mrb[25].mxu1 }
 0x336   : > { %2754 = vmatmul.mubr.bf16.gmra.mrb[80].mxu0 %v10965_v11  ;;  %v8834_v27 = vpop.f32.mrb[26].mxu1 }
 0x337   : > { %2761 = vmatprep.mubr.bf16.mxu0 %v8559_v9  ;;  %v993_v9 = vunpack.c.h.b16 %v10941_v2  ;;  %4885 = vmatpush1.bf16.msra.mxu1 %v6884_v44 }
 0x338   : > { %4886 = vmatprep.subr.bf16.mxu1 %v10845_v61 }
 0x339   : > { %v8819_v24 = vpack.c.b16 %v7221_v35, %v993_v9 }
 0x33b   : > { %10969 = vst [vmem:[#allocation8_spill] sm:$0xff] %v8819_v24 }
 0x33e   : > { %2762 = vmatmul.mubr.bf16.gmra.mrb[232].mxu0 %v10966_v47 }
 0x33f   : > { %2769 = vmatprep.mubr.bf16.mxu0 %v10941_v2 }
 0x341   : > { %v2522_v34 = vpop.f32.mrb[180].mxu0 }
 0x342   : > { %v2524_v5 = vpop.f32.mrb[181].mxu0 }
 0x343   : > { %v2525_v36 = vpop.f32.mrb[182].mxu0  ;;  %v6885_v5 = vld [vmem:[%s10540_s3 + $0xc8] sm:$0xff]  }
 0x344   : > { %v8822_v46 = vadd.f32 %v2525_v36, %v8561_v42  ;;  %v2527_v32 = vpop.f32.mrb[183].mxu0  ;;  %v8836_v42 = vpop.f32.mrb[27].mxu1  ;;  %4887 = vmatpush1.bf16.msra.mxu1 %v6885_v5 }
 0x345   : > { %v8850_v30 = vpop.f32.mrb[28].mxu1  ;;  %4888 = vmatprep.subr.bf16.mxu1 %v10845_v61 }
 0x346   : > { %2770 = vmatmul.mubr.bf16.gmra.mrb[88].mxu0 %v6153_v37  ;;  %v8852_v9 = vpop.f32.mrb[29].mxu1 }
 0x347   : > { %2777 = vmatprep.mubr.bf16.mxu0 %v8819_v24  ;;  %v8854_v34 = vpop.f32.mrb[30].mxu1 }
 0x34e   : > { %2778 = vmatmul.mubr.bf16.gmra.mrb[236].mxu0 %v8827_v21 }
 0x351   : > { %v2538_v43 = vpop.f32.mrb[184].mxu0 }
 0x352   : > { %v8841_v49 = vadd.f32 %v2538_v43, %v8574_v16  ;;  %v2540_v11 = vpop.f32.mrb[185].mxu0  ;;  %v2935_v16 = vpop.f32.mrb[31].mxu1 }
 0x353   : > { %v2541_v6 = vpop.f32.mrb[186].mxu0  ;;  %v8874_v16 = vpop.f32.mrb[32].mxu1 }
 0x354   : > { %v8847_v62 = vadd.f32 %v2541_v6, %v8576_v38  ;;  %v2543_v47 = vpop.f32.mrb[187].mxu0 }
 0x355   : > { %v6886_v47 = vld [vmem:[%s10540_s3 + $0xd0] sm:$0xff]  }
 0x356   : > { %4889 = vmatpush1.bf16.msra.mxu1 %v6886_v47 }
 0x357   : > { %4890 = vmatprep.subr.bf16.mxu1 %v10845_v61 }
 0x361   : > { %v2554_v19 = vpop.f32.mrb[188].mxu0 }
 0x362   : > { %v8860_v37 = vadd.f32 %v2554_v19, %v8596_v53  ;;  %v2556_v38 = vpop.f32.mrb[189].mxu0 }
 0x363   : > { %v2557_v36 = vpop.f32.mrb[190].mxu0  ;;  %v2948_v38 = vpop.f32.mrb[33].mxu1 }
 0x364   : > { %v2559_v32 = vpop.f32.mrb[191].mxu0  ;;  %v6323_v36 = vpop.f32.mrb[34].mxu1 }
 0x369   : > { %v2595_v60 = vpop.f32.mrb[0].mxu0 }
 0x36a   : > { %v6416_v58 = vadd.f32 %v8866_v22, %v2595_v60  ;;  %v2597_v43 = vpop.f32.mrb[1].mxu0 }
 0x36b   : > { %v2598_v11 = vpop.f32.mrb[2].mxu0 }
 0x36c   : > { %v2821_v44 = vadd.f32 %v6416_v58, %v8686_v13  ;;  %v6417_v53 = vadd.f32 %v8866_v22, %v2598_v11  ;;  %v2600_v6 = vpop.f32.mrb[3].mxu0  ;;  %v8882_v58 = vpop.f32.mrb[35].mxu1 }
 0x36d   : > { %v6326_v11 = vpop.f32.mrb[36].mxu1 }
 0x36e   : > { %v8876_v5 = vmax.f32 %v2821_v44, 0.0  ;;  %v2824_v19 = vadd.f32 %v6417_v53, %v8691_v31 }
 0x370   : > { %v3012_v32 = vmax.f32 %v2824_v19, 0.0  ;;  %v6157_v13 = vpack.c.bf16 %v8876_v5, %v10888_v57  ;;  %v3178_v60 = vrot.slane %v8876_v5, 7  ;;  %v3358_v38 = vrot.slane %v8876_v5, 1 }
 0x371   : > { %v2603_v43 = vpop.f32.mrb[192].mxu0 }
 0x372   : > { %v3196_v6 = vrot.slane %v3012_v32, 7  ;;  %v3376_v44 = vrot.slane %v3012_v32, 1  ;;  %v2605_v12 = vpop.f32.mrb[193].mxu0  ;;  %4699 = vmatprep.mubr.bf16.mxu1 %v6157_v13  ;;  %v3268_v31 = vsel %vm456_vm0, %v10968_v41, %v3178_v60  ;;  %v8889_v53 = vpack.c.bf16 %v3012_v32, %v8876_v5 }
 0x373   : > { %v2606_v47 = vpop.f32.mrb[194].mxu0  ;;  %v6156_v19 = vpack.c.bf16 %v3268_v31, %v10968_v41 }
 0x374   : > { %10971 = vst [vmem:[#allocation12_spill] sm:$0xff] %v8889_v53  ;;  %v2607_v36 = vadd.f32 %v2606_v47, %v8614_v26  ;;  %v2608_v43 = vpop.f32.mrb[195].mxu0  ;;  %v3250_v11 = vsel %vm456_vm0, %v3178_v60, %v3196_v6  ;;  %v3622_v12 = vunpack.c.h.b16 %v8889_v53  ;;  %v8900_v13 = vsel %vm456_vm0, %v3196_v6, %v10968_v41 }
 0x375   : > { %10972 = vst [vmem:[#allocation16_spill] sm:$0xff] %v8900_v13  ;;  %v8902_v32 = vpack.c.bf16 %v3250_v11, %v3268_v31  ;;  %4700 = vmatmul.mubr.bf16.gmra.mrb[52].mxu1 %v6156_v19  ;;  %v3288_v21 = vpack.c.bf16 %v8900_v13, %v8900_v13  ;;  %v3412_v26 = vsel %vm637_vm1, %v3376_v44, %v7521_v3 }
 0x376   : > { %v8911_v5 = vsel %vm637_vm1, %v3358_v38, %v3376_v44  ;;  %v2832_v60 = vadd.f32 %v8689_v50, %v2607_v36  ;;  %v3940_v47 = vpack.c.b16 %v7221_v35, %v3622_v12  ;;  %v6887_v50 = vld [vmem:[%s10540_s3 + $0xd8] sm:$0xff]   ;;  %v8926_v36 = vpop.f32.mrb[37].mxu1 }
 0x377   : > { %10973 = vst [vmem:[#allocation19_spill] sm:$0xff] %v8911_v5  ;;  %v8916_v6 = vpack.c.bf16 %v3412_v26, %v8911_v5  ;;  %v3621_v31 = vunpack.c.h.b16 %v8902_v32  ;;  %v3630_v19 = vunpack.c.l.b16 %v3288_v21  ;;  %4891 = vmatpush1.bf16.msra.mxu1 %v6887_v50 }
 0x378   : > { %v8919_v43 = vmax.f32 %v2832_v60, 0.0  ;;  %4706 = vmatprep.mubr.bf16.mxu1 %v3940_v47  ;;  %v8934_v60 = vpop.f32.mrb[38].mxu1  ;;  %4892 = vmatprep.subr.bf16.mxu1 %v10845_v61 }
 0x379   : > { %10974 = vst [vmem:[#allocation23_spill] sm:$0xff] %v8916_v6  ;;  %v2611_v11 = vpop.f32.mrb[8].mxu0  ;;  %v3939_v54 = vpack.c.b16 %v3630_v19, %v3621_v31 }
 0x37a   : > { %10975 = vst [vmem:[#allocation26_spill] sm:$0xff] %v8919_v43  ;;  %v6418_v24 = vadd.f32 %v8866_v22, %v2611_v11  ;;  %v2613_v2 = vpop.f32.mrb[9].mxu0  ;;  %v3179_v44 = vrot.slane %v8919_v43, 7  ;;  %v3359_v19 = vrot.slane %v8919_v43, 1 }
 0x37b   : > { %v2614_v53 = vpop.f32.mrb[10].mxu0  ;;  %v8936_v2 = vpop.f32.mrb[39].mxu1 }
 0x37c   : > { %v2837_v12 = vadd.f32 %v6418_v24, %v8719_v0  ;;  %v2616_v21 = vpop.f32.mrb[11].mxu0  ;;  %v8932_v26 = vsel %vm456_vm0, %v10968_v41, %v3179_v44 }
 0x37d   : > { %10976 = vst [vmem:[#allocation31_spill] sm:$0xff] %v8932_v26  ;;  %4707 = vmatmul.mubr.bf16.gmra.mrb[56].mxu1 %v3939_v54  ;;  %v8948_v54 = vsel %vm637_vm1, %v7521_v3, %v3358_v38  ;;  %v6888_v38 = vld [vmem:[%s10540_s3 + $0xe0] sm:$0xff]  }
 0x37e   : > { %v3015_v47 = vmax.f32 %v2837_v12, 0.0  ;;  %10978 = vst [vmem:[#allocation78_spill] sm:$0xff] %v8948_v54  ;;  %4893 = vmatpush1.bf16.msra.mxu1 %v6888_v38 }
 0x37f   : > { %4894 = vmatprep.subr.bf16.mxu1 %v10845_v61 }
 0x380   : > { %v3197_v31 = vrot.slane %v3015_v47, 7  ;;  %v3377_v0 = vrot.slane %v3015_v47, 1  ;;  %v8942_v24 = vpack.c.bf16 %v3015_v47, %v8919_v43 }
 0x381   : > { %v2619_v11 = vpop.f32.mrb[196].mxu0 }
 0x382   : > { %10977 = vst [vmem:[#allocation77_spill] sm:$0xff] %v8942_v24  ;;  %v2620_v21 = vadd.f32 %v2619_v11, %v8630_v8  ;;  %v2621_v53 = vpop.f32.mrb[197].mxu0  ;;  %4713 = vmatprep.mubr.bf16.mxu1 %v8942_v24  ;;  %v3251_v50 = vsel %vm456_vm0, %v3179_v44, %v3197_v31  ;;  %v3413_v12 = vsel %vm637_vm1, %v3377_v0, %v7521_v3 }
 0x383   : > { %v8959_v47 = vsel %vm637_vm1, %v3359_v19, %v3377_v0  ;;  %v2622_v43 = vpop.f32.mrb[198].mxu0  ;;  %v8965_v8 = vpack.c.bf16 %v3251_v50, %v8932_v26 }
 0x384   : > { %10979 = vst [vmem:[#allocation79_spill] sm:$0xff] %v8959_v47  ;;  %v8968_v53 = vpack.c.bf16 %v3413_v12, %v8959_v47  ;;  %v2845_v11 = vadd.f32 %v8717_v29, %v2620_v21  ;;  %v2623_v24 = vadd.f32 %v2622_v43, %v8633_v28  ;;  %v2624_v0 = vpop.f32.mrb[199].mxu0  ;;  %v8984_v28 = vsel %vm456_vm0, %v3197_v31, %v10968_v41  ;;  %v8986_v43 = vpop.f32.mrb[40].mxu1 }
 0x385   : > { %10980 = vst [vmem:[#allocation38_spill] sm:$0xff] %v8965_v8  ;;  %4714 = vmatmul.mubr.bf16.gmra.mrb[60].mxu1 %v8965_v8  ;;  %v8994_v0 = vpop.f32.mrb[41].mxu1  ;;  %v9002_v31 = vsel %vm637_vm1, %v7521_v3, %v3359_v19 }
 0x386   : > { %10981 = vst [vmem:[#allocation34_spill] sm:$0xff] %v8968_v53  ;;  %6352 = vmatprep.mubr.bf16.mxu0 %v8968_v53  ;;  %v3017_v6 = vmax.f32 %v2845_v11, 0.0  ;;  %v2848_v50 = vadd.f32 %v8721_v56, %v2623_v24  ;;  %10985 = vst [vmem:[#allocation82_spill] sm:$0xff] %v9002_v31  ;;  %v9015_v54 = vpop.f32.mrb[42].mxu1 }
 0x388   : > { %v3360_v12 = vrot.slane %v3017_v6, 1  ;;  %v3018_v5 = vmax.f32 %v2848_v50, 0.0  ;;  %v8979_v13 = vpack.c.bf16 %v3017_v6, %v10888_v57  ;;  %v3180_v44 = vrot.slane %v3017_v6, 7 }
 0x389   : > { %v2627_v29 = vpop.f32.mrb[16].mxu0 }
 0x38a   : > { %10982 = vst [vmem:[#allocation80_spill] sm:$0xff] %v8979_v13  ;;  %v3198_v21 = vrot.slane %v3018_v5, 7  ;;  %v8988_v38 = vpack.c.bf16 %v3018_v5, %v3017_v6  ;;  %v3378_v56 = vrot.slane %v3018_v5, 1  ;;  %v2629_v24 = vpop.f32.mrb[17].mxu0  ;;  %4721 = vmatprep.mubr.bf16.mxu1 %v8979_v13  ;;  %v3270_v11 = vsel %vm456_vm0, %v10968_v41, %v3180_v44 }
 0x38b   : > { %v2630_v50 = vpop.f32.mrb[18].mxu0  ;;  %v8997_v29 = vpack.c.bf16 %v3270_v11, %v8984_v28  ;;  %v9007_v5 = vsel %vm637_vm1, %v7521_v3, %v3360_v12 }
 0x38c   : > { %10983 = vst [vmem:[#allocation47_spill] sm:$0xff] %v8988_v38  ;;  %10986 = vst [vmem:[#allocation40_spill] sm:$0xff] %v9007_v5  ;;  %v3432_v6 = vsel %vm637_vm1, %v3360_v12, %v3378_v56  ;;  %v6419_v24 = vadd.f32 %v8866_v22, %v2630_v50  ;;  %v2632_v13 = vpop.f32.mrb[19].mxu0  ;;  %v3252_v47 = vsel %vm456_vm0, %v3180_v44, %v3198_v21  ;;  %v3640_v53 = vunpack.c.h.b16 %v8988_v38  ;;  %v2983_v50 = vpop.f32.mrb[43].mxu1 }
 0x38d   : > { %10984 = vst [vmem:[#allocation37_spill] sm:$0xff] %v8997_v29  ;;  %v9017_v19 = vpack.c.bf16 %v3252_v47, %v3270_v11  ;;  %4722 = vmatmul.mubr.bf16.gmra.mrb[64].mxu1 %v8997_v29  ;;  %v9021_v8 = vpack.c.bf16 %v3432_v6, %v9002_v31  ;;  %v3414_v12 = vsel %vm637_vm1, %v3378_v56, %v7521_v3 }
 0x38e   : > { %v3472_v13 = vpack.c.bf16 %v9007_v5, %v9007_v5  ;;  %v2856_v44 = vadd.f32 %v6419_v24, %v8755_v45  ;;  %v9030_v38 = vpack.c.b16 %v7221_v35, %v3640_v53  ;;  %v9032_v47 = vpack.c.bf16 %v3414_v12, %v3432_v6  ;;  %v6889_v6 = vld [vmem:[%s10540_s3 + $0xe8] sm:$0xff]  }
 0x38f   : > { %10987 = vst [vmem:[#allocation81_spill] sm:$0xff] %v9017_v19  ;;  %10988 = vst [vmem:[#allocation42_spill] sm:$0xff] %v9021_v8  ;;  %v9037_v11 = vsel %vm456_vm0, %v3198_v21, %v10968_v41  ;;  %6353 = vmatmul.mubr.bf16.vlgmr.msra.gmra.mrb[240].mxu0 %v9021_v8  ;;  %v3639_v29 = vunpack.c.h.b16 %v9017_v19  ;;  %4895 = vmatpush1.bf16.msra.mxu1 %v6889_v6 }
 0x390   : > { %10989 = vst [vmem:[#allocation61_spill] sm:$0xff] %v9030_v38  ;;  %10990 = vst [vmem:[#allocation41_spill] sm:$0xff] %v9032_v47  ;;  %v3292_v56 = vpack.c.bf16 %v9037_v11, %v9037_v11  ;;  %v9043_v50 = vmax.f32 %v2856_v44, 0.0  ;;  %4728 = vmatprep.mubr.bf16.mxu1 %v9030_v38  ;;  %v3641_v45 = vunpack.c.h.b16 %v9032_v47  ;;  %v3644_v53 = vunpack.c.l.b16 %v3472_v13  ;;  %4896 = vmatprep.subr.bf16.mxu1 %v10845_v61 }
 0x391   : > { %v2635_v21 = vpop.f32.mrb[200].mxu0 }
 0x392   : > { %10991 = vst [vmem:[#allocation46_spill] sm:$0xff] %v9043_v50  ;;  %v3642_v24 = vunpack.c.l.b16 %v3292_v56  ;;  %v2636_v12 = vadd.f32 %v2635_v21, %v8660_v23  ;;  %v2637_v31 = vpop.f32.mrb[201].mxu0  ;;  %v9051_v8 = vpack.c.b16 %v3644_v53, %v3641_v45  ;;  %v3181_v19 = vrot.slane %v9043_v50, 7 }
 0x393   : > { %v2638_v44 = vpop.f32.mrb[202].mxu0 }
 0x394   : > { %10992 = vst [vmem:[#allocation51_spill] sm:$0xff] %v9051_v8  ;;  %v9054_v26 = vpack.c.b16 %v3642_v24, %v3639_v29  ;;  %v2861_v13 = vadd.f32 %v8749_v52, %v2636_v12  ;;  %6356 = vmatprep.mubr.bf16.mxu0 %v9051_v8  ;;  %v2640_v38 = vpop.f32.mrb[203].mxu0  ;;  %v9062_v23 = vsel %vm456_vm0, %v10968_v41, %v3181_v19  ;;  %v3361_v52 = vrot.slane %v9043_v50, 1 }
 0x396   : > { %10993 = vst [vmem:[#allocation45_spill] sm:$0xff] %v9054_v26  ;;  %4729 = vmatmul.mubr.bf16.gmra.mrb[68].mxu1 %v9054_v26  ;;  %v3021_v56 = vmax.f32 %v2861_v13, 0.0 }
 0x398   : > { %v3199_v29 = vrot.slane %v3021_v56, 7  ;;  %v3379_v45 = vrot.slane %v3021_v56, 1  ;;  %v9068_v53 = vpack.c.bf16 %v3021_v56, %v9043_v50 }
 0x399   : > { %v2643_v6 = vpop.f32.mrb[24].mxu0 }
 0x39a   : > { %10994 = vst [vmem:[#allocation56_spill] sm:$0xff] %v9068_v53  ;;  %v6420_v38 = vadd.f32 %v8866_v22, %v2643_v6  ;;  %v2645_v21 = vpop.f32.mrb[25].mxu0  ;;  %4735 = vmatprep.mubr.bf16.mxu1 %v9068_v53  ;;  %v3253_v24 = vsel %vm456_vm0, %v3181_v19, %v3199_v29  ;;  %v3415_v12 = vsel %vm637_vm1, %v3379_v45, %v7521_v3 }
 0x39b   : > { %v9080_v44 = vsel %vm637_vm1, %v3361_v52, %v3379_v45  ;;  %v2646_v13 = vpop.f32.mrb[26].mxu0  ;;  %v9083_v56 = vpack.c.bf16 %v3253_v24, %v9062_v23  ;;  %v6890_v45 = vld [vmem:[%s10540_s3 + $0xf0] sm:$0xff]   ;;  %v9097_v24 = vpop.f32.mrb[44].mxu1 }
 0x39c   : > { %10995 = vst [vmem:[#allocation60_spill] sm:$0xff] %v9080_v44  ;;  %v9086_v6 = vpack.c.bf16 %v3415_v12, %v9080_v44  ;;  %v2869_v19 = vadd.f32 %v6420_v38, %v8767_v40  ;;  %v6421_v31 = vadd.f32 %v8866_v22, %v2646_v13  ;;  %v2648_v26 = vpop.f32.mrb[27].mxu0  ;;  %v2996_v50 = vpop.f32.mrb[45].mxu1  ;;  %4897 = vmatpush1.bf16.msra.mxu1 %v6890_v45 }
 0x39d   : > { %10996 = vst [vmem:[#allocation50_spill] sm:$0xff] %v9083_v56  ;;  %v6335_v21 = vpop.f32.mrb[46].mxu1  ;;  %4898 = vmatprep.subr.bf16.mxu1 %v10845_v61 }
 0x39e   : > { %10997 = vst [vmem:[#allocation53_spill] sm:$0xff] %v9086_v6  ;;  %4736 = vmatmul.mubr.bf16.gmra.mrb[72].mxu1 %v9083_v56  ;;  %6357 = vmatmul.mubr.bf16.gmra.mrb[244].mxu0 %v9086_v6  ;;  %v3023_v12 = vmax.f32 %v2869_v19, 0.0  ;;  %v2872_v53 = vadd.f32 %v6421_v31, %v8772_v10  ;;  %v9103_v5 = vpop.f32.mrb[47].mxu1  ;;  %v9109_v19 = vsel %vm456_vm0, %v3199_v29, %v10968_v41 }
 0x39f   : > { %v9123_v29 = vsel %vm637_vm1, %v7521_v3, %v3361_v52 }
 0x3a0   : > { %v3024_v40 = vmax.f32 %v2872_v53, 0.0  ;;  %v9101_v38 = vpack.c.bf16 %v3023_v12, %v10888_v57  ;;  %v3182_v26 = vrot.slane %v3023_v12, 7  ;;  %v3362_v13 = vrot.slane %v3023_v12, 1  ;;  %11001 = vst [vmem:[#allocation59_spill] sm:$0xff] %v9123_v29 }
 0x3a1   : > { %v2651_v44 = vpop.f32.mrb[204].mxu0 }
 0x3a2   : > { %10998 = vst [vmem:[#allocation54_spill] sm:$0xff] %v9101_v38  ;;  %v3200_v10 = vrot.slane %v3024_v40, 7  ;;  %v3380_v50 = vrot.slane %v3024_v40, 1  ;;  %v2653_v31 = vpop.f32.mrb[205].mxu0  ;;  %4743 = vmatprep.mubr.bf16.mxu1 %v9101_v38  ;;  %v3272_v53 = vsel %vm456_vm0, %v10968_v41, %v3182_v26  ;;  %v9115_v21 = vpack.c.bf16 %v3024_v40, %v3023_v12 }
 0x3a3   : > { %v2654_v45 = vpop.f32.mrb[206].mxu0  ;;  %v9118_v47 = vpack.c.bf16 %v3272_v53, %v9109_v19  ;;  %v9128_v44 = vsel %vm637_vm1, %v7521_v3, %v3362_v13 }
 0x3a4   : > { %10999 = vst [vmem:[#allocation83_spill] sm:$0xff] %v9115_v21  ;;  %11002 = vst [vmem:[#allocation64_spill] sm:$0xff] %v9128_v44  ;;  %v2655_v31 = vadd.f32 %v2654_v45, %v8678_v25  ;;  %v2656_v38 = vpop.f32.mrb[207].mxu0  ;;  %v3254_v12 = vsel %vm456_vm0, %v3182_v26, %v3200_v10  ;;  %v3416_v40 = vsel %vm637_vm1, %v3380_v50, %v7521_v3  ;;  %v3658_v25 = vunpack.c.h.b16 %v9115_v21 }
 0x3a5   : > { %11000 = vst [vmem:[#allocation55_spill] sm:$0xff] %v9118_v47  ;;  %v3434_v6 = vsel %vm637_vm1, %v3362_v13, %v3380_v50  ;;  %v9138_v52 = vpack.c.bf16 %v3254_v12, %v3272_v53  ;;  %v3476_v26 = vpack.c.bf16 %v9128_v44, %v9128_v44  ;;  %v9153_v13 = vsel %vm456_vm0, %v3200_v10, %v10968_v41  ;;  %v6891_v10 = vld [vmem:[%s10540_s3 + $0xf8] sm:$0xff]  }
 0x3a6   : > { %4744 = vmatmul.mubr.bf16.gmra.mrb[76].mxu1 %v9118_v47  ;;  %v9141_v8 = vpack.c.bf16 %v3416_v40, %v3434_v6  ;;  %v9144_v56 = vpack.c.bf16 %v3434_v6, %v9123_v29  ;;  %v2880_v38 = vadd.f32 %v8769_v39, %v2655_v31  ;;  %v9157_v50 = vpack.c.b16 %v7221_v35, %v3658_v25 }
 0x3a7   : > { %v3296_v53 = vpack.c.bf16 %v9153_v13, %v9153_v13  ;;  %v3657_v39 = vunpack.c.h.b16 %v9138_v52  ;;  %v3662_v31 = vunpack.c.l.b16 %v3476_v26  ;;  %4899 = vmatpush1.bf16.msra.mxu1 %v6891_v10 }
 0x3a8   : > { %11003 = vst [vmem:[#allocation67_spill] sm:$0xff] %v9141_v8  ;;  %11004 = vst [vmem:[#allocation84_spill] sm:$0xff] %v9144_v56  ;;  %6360 = vmatprep.mubr.bf16.mxu0 %v9144_v56  ;;  %v3659_v6 = vunpack.c.h.b16 %v9141_v8  ;;  %v9163_v45 = vmax.f32 %v2880_v38, 0.0  ;;  %4750 = vmatprep.mubr.bf16.mxu1 %v9157_v50 }
 0x3a9   : > { %11005 = vst [vmem:[#allocation72_spill] sm:$0xff] %v9157_v50  ;;  %v2659_v12 = vpop.f32.mrb[32].mxu0  ;;  %v3660_v40 = vunpack.c.l.b16 %v3296_v53  ;;  %5077 = vmatprep.subr.bf16.mxu1 %v10845_v61 }
 0x3aa   : > { %11006 = vst [vmem:[#allocation69_spill] sm:$0xff] %v9163_v45  ;;  %v6422_v25 = vadd.f32 %v8866_v22, %v2659_v12  ;;  %v2661_v47 = vpop.f32.mrb[33].mxu0  ;;  %v9170_v21 = vpack.c.b16 %v3662_v31, %v3659_v6  ;;  %v3183_v8 = vrot.slane %v9163_v45, 7 }
 0x3ab   : > { %v2662_v29 = vpop.f32.mrb[34].mxu0  ;;  %v9173_v38 = vpack.c.b16 %v3660_v40, %v3657_v39 }
 0x3ac   : > { %11007 = vst [vmem:[#allocation85_spill] sm:$0xff] %v9170_v21  ;;  %v2885_v26 = vadd.f32 %v6422_v25, %v8790_v14  ;;  %6361 = vmatmul.mubr.bf16.gmra.mrb[248].mxu0 %v9170_v21  ;;  %v2664_v50 = vpop.f32.mrb[35].mxu0  ;;  %v9181_v53 = vsel %vm456_vm0, %v10968_v41, %v3183_v8  ;;  %v3363_v14 = vrot.slane %v9163_v45, 1 }
 0x3ad   : > { %11008 = vst [vmem:[#allocation10_spill] sm:$0xff] %v9173_v38 }
 0x3ae   : > { %4751 = vmatmul.mubr.bf16.gmra.mrb[80].mxu1 %v9173_v38  ;;  %v3027_v29 = vmax.f32 %v2885_v26, 0.0 }
 0x3b0   : > { %v3201_v6 = vrot.slane %v3027_v29, 7  ;;  %v3381_v39 = vrot.slane %v3027_v29, 1  ;;  %v9187_v31 = vpack.c.bf16 %v3027_v29, %v9163_v45 }
 0x3b1   : > { %v2667_v10 = vpop.f32.mrb[208].mxu0 }
 0x3b2   : > { %11009 = vst [vmem:[#allocation11_spill] sm:$0xff] %v9187_v31  ;;  %v2668_v50 = vadd.f32 %v2667_v10, %v8700_v1  ;;  %v2669_v12 = vpop.f32.mrb[209].mxu0  ;;  %4757 = vmatprep.mubr.bf16.mxu1 %v9187_v31  ;;  %v3255_v40 = vsel %vm456_vm0, %v3183_v8, %v3201_v6  ;;  %v3417_v25 = vsel %vm637_vm1, %v3381_v39, %v7521_v3 }
 0x3b3   : > { %v9199_v26 = vsel %vm637_vm1, %v3363_v14, %v3381_v39  ;;  %v2670_v29 = vpop.f32.mrb[210].mxu0  ;;  %v9202_v47 = vpack.c.bf16 %v3255_v40, %v9181_v53 }
 0x3b4   : > { %11010 = vst [vmem:[#allocation13_spill] sm:$0xff] %v9199_v26  ;;  %v9205_v1 = vpack.c.bf16 %v3417_v25, %v9199_v26  ;;  %v2893_v8 = vadd.f32 %v8788_v48, %v2668_v50  ;;  %v2671_v12 = vadd.f32 %v2670_v29, %v8709_v51  ;;  %v2672_v38 = vpop.f32.mrb[211].mxu0  ;;  %v9220_v48 = vsel %vm456_vm0, %v3201_v6, %v10968_v41 }
 0x3b5   : > { %11011 = vst [vmem:[#allocation14_spill] sm:$0xff] %v9202_v47 }
 0x3b6   : > { %4758 = vmatmul.mubr.bf16.gmra.mrb[84].mxu1 %v9202_v47  ;;  %6364 = vmatprep.mubr.bf16.mxu0 %v9205_v1  ;;  %v3029_v39 = vmax.f32 %v2893_v8, 0.0  ;;  %v2896_v31 = vadd.f32 %v8792_v18, %v2671_v12 }
 0x3b8   : > { %v3030_v40 = vmax.f32 %v2896_v31, 0.0  ;;  %v9215_v45 = vpack.c.bf16 %v3029_v39, %v10888_v57  ;;  %v3184_v25 = vrot.slane %v3029_v39, 7  ;;  %v3364_v21 = vrot.slane %v3029_v39, 1 }
 0x3b9   : > { %v2675_v56 = vpop.f32.mrb[40].mxu0 }
 0x3ba   : > { %11012 = vst [vmem:[#allocation15_spill] sm:$0xff] %v9215_v45  ;;  %v3202_v51 = vrot.slane %v3030_v40, 7  ;;  %v9222_v38 = vpack.c.bf16 %v3030_v40, %v3029_v39  ;;  %v3382_v50 = vrot.slane %v3030_v40, 1  ;;  %v2677_v29 = vpop.f32.mrb[41].mxu0  ;;  %4765 = vmatprep.mubr.bf16.mxu1 %v9215_v45  ;;  %v3274_v18 = vsel %vm456_vm0, %v10968_v41, %v3184_v25 }
 0x3bb   : > { %v2678_v31 = vpop.f32.mrb[42].mxu0  ;;  %v9229_v8 = vpack.c.bf16 %v3274_v18, %v9220_v48  ;;  %v9234_v56 = vsel %vm637_vm1, %v7521_v3, %v3363_v14  ;;  %v9239_v6 = vsel %vm637_vm1, %v7521_v3, %v3364_v21 }
 0x3bc   : > { %11013 = vst [vmem:[#allocation17_spill] sm:$0xff] %v9222_v38  ;;  %11015 = vst [vmem:[#allocation20_spill] sm:$0xff] %v9234_v56  ;;  %v6423_v12 = vadd.f32 %v8866_v22, %v2678_v31  ;;  %v2680_v39 = vpop.f32.mrb[43].mxu0  ;;  %v3256_v40 = vsel %vm456_vm0, %v3184_v25, %v3202_v51  ;;  %v3418_v29 = vsel %vm637_vm1, %v3382_v50, %v7521_v3  ;;  %v3676_v31 = vunpack.c.h.b16 %v9222_v38 }
 0x3bd   : > { %11014 = vst [vmem:[#allocation18_spill] sm:$0xff] %v9229_v8  ;;  %11016 = vst [vmem:[#allocation21_spill] sm:$0xff] %v9239_v6  ;;  %v3436_v10 = vsel %vm637_vm1, %v3364_v21, %v3382_v50  ;;  %v9249_v14 = vpack.c.bf16 %v3256_v40, %v3274_v18  ;;  %v3480_v39 = vpack.c.bf16 %v9239_v6, %v9239_v6 }
 0x3be   : > { %4766 = vmatmul.mubr.bf16.gmra.mrb[88].mxu1 %v9229_v8  ;;  %v9252_v45 = vpack.c.bf16 %v3418_v29, %v3436_v10  ;;  %v9255_v44 = vpack.c.bf16 %v3436_v10, %v9234_v56  ;;  %v2904_v25 = vadd.f32 %v6423_v12, %v8810_v15  ;;  %v9264_v21 = vsel %vm456_vm0, %v3202_v51, %v10968_v41 }
 0x3bf   : > { %v9268_v50 = vpack.c.b16 %v7221_v35, %v3676_v31  ;;  %v3300_v18 = vpack.c.bf16 %v9264_v21, %v9264_v21  ;;  %v3675_v15 = vunpack.c.h.b16 %v9249_v14  ;;  %v3680_v40 = vunpack.c.l.b16 %v3480_v39 }
 0x3c0   : > { %11017 = vst [vmem:[#allocation22_spill] sm:$0xff] %v9252_v45  ;;  %11018 = vst [vmem:[#allocation24_spill] sm:$0xff] %v9255_v44  ;;  %6365 = vmatmul.mubr.bf16.gmra.mrb[252].mxu0 %v9255_v44  ;;  %v3677_v10 = vunpack.c.h.b16 %v9252_v45  ;;  %v9274_v12 = vmax.f32 %v2904_v25, 0.0 }
 0x3c1   : > { %11019 = vst [vmem:[#allocation25_spill] sm:$0xff] %v9268_v50  ;;  %4772 = vmatprep.mubr.bf16.mxu1 %v9268_v50  ;;  %v2683_v29 = vpop.f32.mrb[212].mxu0  ;;  %v3678_v51 = vunpack.c.l.b16 %v3300_v18 }
 0x3c2   : > { %11020 = vst [vmem:[#allocation27_spill] sm:$0xff] %v9274_v12  ;;  %v2684_v8 = vadd.f32 %v2683_v29, %v8735_v17  ;;  %v2685_v38 = vpop.f32.mrb[213].mxu0  ;;  %v9278_v26 = vpack.c.b16 %v3680_v40, %v3677_v10  ;;  %v3185_v31 = vrot.slane %v9274_v12, 7 }
 0x3c3   : > { %v2686_v45 = vpop.f32.mrb[214].mxu0  ;;  %v9281_v56 = vpack.c.b16 %v3678_v51, %v3675_v15 }
 0x3c4   : > { %11021 = vst [vmem:[#allocation28_spill] sm:$0xff] %v9278_v26  ;;  %v2909_v44 = vadd.f32 %v8808_v4, %v2684_v8  ;;  %6368 = vmatprep.mubr.bf16.mxu0 %v9278_v26  ;;  %v2688_v25 = vpop.f32.mrb[215].mxu0  ;;  %v9288_v39 = vsel %vm456_vm0, %v10968_v41, %v3185_v31  ;;  %v3365_v45 = vrot.slane %v9274_v12, 1 }
 0x3c5   : > { %11022 = vst [vmem:[#allocation30_spill] sm:$0xff] %v9281_v56 }
 0x3c6   : > { %4773 = vmatmul.mubr.bf16.gmra.mrb[92].mxu1 %v9281_v56  ;;  %v3033_v38 = vmax.f32 %v2909_v44, 0.0 }
 0x3c8   : > { %v3203_v10 = vrot.slane %v3033_v38, 7  ;;  %v3383_v18 = vrot.slane %v3033_v38, 1  ;;  %v9295_v4 = vpack.c.bf16 %v3033_v38, %v9274_v12 }
 0x3c9   : > { %v2691_v8 = vpop.f32.mrb[48].mxu0 }
 0x3ca   : > { %11023 = vst [vmem:[#allocation32_spill] sm:$0xff] %v9295_v4  ;;  %v3419_v15 = vsel %vm637_vm1, %v3383_v18, %v7521_v3  ;;  %v9302_v40 = vsel %vm637_vm1, %v3365_v45, %v3383_v18  ;;  %v6424_v29 = vadd.f32 %v8866_v22, %v2691_v8  ;;  %v2693_v51 = vpop.f32.mrb[49].mxu0  ;;  %4779 = vmatprep.mubr.bf16.mxu1 %v9295_v4 }
 0x3cb   : > { %11024 = vst [vmem:[#allocation33_spill] sm:$0xff] %v9302_v40  ;;  %v3257_v44 = vsel %vm456_vm0, %v3185_v31, %v3203_v10  ;;  %v9309_v25 = vpack.c.bf16 %v3419_v15, %v9302_v40  ;;  %v2694_v38 = vpop.f32.mrb[50].mxu0 }
 0x3cc   : > { %v9312_v17 = vpack.c.bf16 %v3257_v44, %v9288_v39  ;;  %v2917_v18 = vadd.f32 %v6424_v29, %v8832_v7  ;;  %v6425_v8 = vadd.f32 %v8866_v22, %v2694_v38  ;;  %v2696_v51 = vpop.f32.mrb[51].mxu0  ;;  %v9327_v7 = vsel %vm456_vm0, %v3203_v10, %v10968_v41 }
 0x3cd   : > { %11025 = vst [vmem:[#allocation35_spill] sm:$0xff] %v9309_v25  ;;  %6369 = vmatmul.mubr.bf16.gmra.mrb[4].mxu0 %v9309_v25  ;;  %v9344_v10 = vsel %vm637_vm1, %v7521_v3, %v3365_v45 }
 0x3ce   : > { %11026 = vst [vmem:[#allocation36_spill] sm:$0xff] %v9312_v17  ;;  %4780 = vmatmul.mubr.bf16.gmra.mrb[96].mxu1 %v9312_v17  ;;  %v3035_v31 = vmax.f32 %v2917_v18, 0.0  ;;  %v2920_v15 = vadd.f32 %v6425_v8, %v8836_v42  ;;  %11030 = vst [vmem:[#allocation44_spill] sm:$0xff] %v9344_v10 }
 0x3d0   : > { %v3036_v50 = vmax.f32 %v2920_v15, 0.0  ;;  %v9322_v4 = vpack.c.bf16 %v3035_v31, %v10888_v57  ;;  %v3186_v44 = vrot.slane %v3035_v31, 7  ;;  %v3366_v12 = vrot.slane %v3035_v31, 1 }
 0x3d1   : > { %v2699_v26 = vpop.f32.mrb[216].mxu0 }
 0x3d2   : > { %11027 = vst [vmem:[#allocation7_spill] sm:$0xff] %v9322_v4  ;;  %v3204_v29 = vrot.slane %v3036_v50, 7  ;;  %v3384_v38 = vrot.slane %v3036_v50, 1  ;;  %v2701_v51 = vpop.f32.mrb[217].mxu0  ;;  %4787 = vmatprep.mubr.bf16.mxu1 %v9322_v4  ;;  %v3276_v42 = vsel %vm456_vm0, %v10968_v41, %v3186_v44  ;;  %v9336_v18 = vsel %vm637_vm1, %v7521_v3, %v3366_v12 }
 0x3d3   : > { %11028 = vst [vmem:[#allocation39_spill] sm:$0xff] %v9336_v18  ;;  %v2702_v26 = vpop.f32.mrb[218].mxu0  ;;  %v9339_v8 = vpack.c.bf16 %v3276_v42, %v9327_v7  ;;  %v3484_v15 = vpack.c.bf16 %v9336_v18, %v9336_v18  ;;  %v9348_v51 = vpack.c.bf16 %v3036_v50, %v3035_v31 }
 0x3d4   : > { %v2703_v56 = vadd.f32 %v2702_v26, %v8760_v63  ;;  %v2704_v4 = vpop.f32.mrb[219].mxu0  ;;  %v3258_v6 = vsel %vm456_vm0, %v3186_v44, %v3204_v29  ;;  %v3420_v40 = vsel %vm637_vm1, %v3384_v38, %v7521_v3  ;;  %v3438_v25 = vsel %vm637_vm1, %v3366_v12, %v3384_v38 }
 0x3d5   : > { %11029 = vst [vmem:[#allocation43_spill] sm:$0xff] %v9339_v8  ;;  %11031 = vst [vmem:[#allocation48_spill] sm:$0xff] %v9348_v51  ;;  %v9358_v45 = vpack.c.bf16 %v3258_v6, %v3276_v42  ;;  %v9361_v17 = vpack.c.bf16 %v3420_v40, %v3438_v25  ;;  %v9364_v50 = vpack.c.bf16 %v3438_v25, %v9344_v10  ;;  %v3694_v4 = vunpack.c.h.b16 %v9348_v51 }
 0x3d6   : > { %4788 = vmatmul.mubr.bf16.gmra.mrb[100].mxu1 %v9339_v8  ;;  %v2928_v63 = vadd.f32 %v8834_v27, %v2703_v56  ;;  %v9371_v31 = vsel %vm456_vm0, %v3204_v29, %v10968_v41  ;;  %v3698_v6 = vunpack.c.l.b16 %v3484_v15 }
 0x3d7   : > { %11032 = vst [vmem:[#allocation49_spill] sm:$0xff] %v9361_v17  ;;  %v3695_v12 = vunpack.c.h.b16 %v9361_v17  ;;  %6372 = vmatprep.mubr.bf16.mxu0 %v9364_v50  ;;  %v3304_v40 = vpack.c.bf16 %v9371_v31, %v9371_v31  ;;  %v3693_v25 = vunpack.c.h.b16 %v9358_v45  ;;  %v9381_v27 = vpack.c.b16 %v7221_v35, %v3694_v4 }
 0x3d8   : > { %v9378_v44 = vmax.f32 %v2928_v63, 0.0 }
 0x3d9   : > { %11034 = vst [vmem:[#allocation57_spill] sm:$0xff] %v9381_v27  ;;  %v9383_v56 = vpack.c.b16 %v3698_v6, %v3695_v12  ;;  %v2707_v38 = vpop.f32.mrb[56].mxu0  ;;  %v3696_v29 = vunpack.c.l.b16 %v3304_v40  ;;  %4794 = vmatprep.mubr.bf16.mxu1 %v9381_v27 }
 0x3da   : > { %11033 = vst [vmem:[#allocation52_spill] sm:$0xff] %v9378_v44  ;;  %v6426_v42 = vadd.f32 %v8866_v22, %v2707_v38  ;;  %v2709_v26 = vpop.f32.mrb[57].mxu0  ;;  %v3187_v15 = vrot.slane %v9378_v44, 7 }
 0x3db   : > { %v2710_v8 = vpop.f32.mrb[58].mxu0  ;;  %6373 = vmatmul.mubr.bf16.gmra.mrb[12].mxu0 %v9383_v56  ;;  %v9389_v51 = vpack.c.b16 %v3696_v29, %v3693_v25  ;;  %v3367_v25 = vrot.slane %v9378_v44, 1 }
 0x3dc   : > { %v2933_v63 = vadd.f32 %v6426_v42, %v8852_v9  ;;  %v2712_v4 = vpop.f32.mrb[59].mxu0  ;;  %v9395_v12 = vsel %vm456_vm0, %v10968_v41, %v3187_v15 }
 0x3dd   : > { %11035 = vst [vmem:[#allocation58_spill] sm:$0xff] %v9389_v51 }
 0x3de   : > { %4795 = vmatmul.mubr.bf16.gmra.mrb[104].mxu1 %v9389_v51  ;;  %v3039_v40 = vmax.f32 %v2933_v63, 0.0 }
 0x3e0   : > { %v3205_v38 = vrot.slane %v3039_v40, 7  ;;  %v3385_v8 = vrot.slane %v3039_v40, 1  ;;  %v9401_v26 = vpack.c.bf16 %v3039_v40, %v9378_v44 }
 0x3e1   : > { %v2715_v9 = vpop.f32.mrb[220].mxu0 }
 0x3e2   : > { %11036 = vst [vmem:[#allocation62_spill] sm:$0xff] %v9401_v26  ;;  %v2716_v29 = vadd.f32 %v2715_v9, %v8777_v33  ;;  %v2717_v42 = vpop.f32.mrb[221].mxu0  ;;  %4801 = vmatprep.mubr.bf16.mxu1 %v9401_v26  ;;  %v3259_v4 = vsel %vm456_vm0, %v3187_v15, %v3205_v38  ;;  %v3421_v63 = vsel %vm637_vm1, %v3385_v8, %v7521_v3 }
 0x3e3   : > { %v9413_v6 = vsel %vm637_vm1, %v3367_v25, %v3385_v8  ;;  %v2718_v40 = vpop.f32.mrb[222].mxu0  ;;  %v9416_v51 = vpack.c.bf16 %v3259_v4, %v9395_v12 }
 0x3e4   : > { %11037 = vst [vmem:[#allocation63_spill] sm:$0xff] %v9413_v6  ;;  %v9419_v33 = vpack.c.bf16 %v3421_v63, %v9413_v6  ;;  %v2941_v15 = vadd.f32 %v8850_v30, %v2716_v29  ;;  %v2719_v42 = vadd.f32 %v2718_v40, %v8783_v59  ;;  %v2720_v27 = vpop.f32.mrb[223].mxu0  ;;  %v9434_v30 = vsel %vm456_vm0, %v3205_v38, %v10968_v41 }
 0x3e6   : > { %4802 = vmatmul.mubr.bf16.gmra.mrb[108].mxu1 %v9416_v51  ;;  %6376 = vmatprep.mubr.bf16.mxu0 %v9419_v33  ;;  %v3041_v8 = vmax.f32 %v2941_v15, 0.0  ;;  %v2944_v26 = vadd.f32 %v8854_v34, %v2719_v42 }
 0x3e8   : > { %v3368_v4 = vrot.slane %v3041_v8, 1  ;;  %v3042_v44 = vmax.f32 %v2944_v26, 0.0  ;;  %v9429_v63 = vpack.c.bf16 %v3041_v8, %v10888_v57  ;;  %v3188_v17 = vrot.slane %v3041_v8, 7 }
 0x3e9   : > { %v2723_v10 = vpop.f32.mrb[64].mxu0 }
 0x3ea   : > { %11038 = vst [vmem:[#allocation66_spill] sm:$0xff] %v9429_v63  ;;  %v3206_v59 = vrot.slane %v3042_v44, 7  ;;  %v9436_v27 = vpack.c.bf16 %v3042_v44, %v3041_v8  ;;  %v3386_v29 = vrot.slane %v3042_v44, 1  ;;  %v2725_v40 = vpop.f32.mrb[65].mxu0  ;;  %4809 = vmatprep.mubr.bf16.mxu1 %v9429_v63  ;;  %v3278_v34 = vsel %vm456_vm0, %v10968_v41, %v3188_v17 }
 0x3eb   : > { %v9445_v10 = vsel %vm637_vm1, %v7521_v3, %v3367_v25  ;;  %v2726_v26 = vpop.f32.mrb[66].mxu0  ;;  %v9448_v38 = vpack.c.bf16 %v3278_v34, %v9434_v30  ;;  %v9453_v44 = vsel %vm637_vm1, %v7521_v3, %v3368_v4 }
 0x3ec   : > { %11039 = vst [vmem:[#allocation70_spill] sm:$0xff] %v9436_v27  ;;  %11040 = vst [vmem:[#allocation71_spill] sm:$0xff] %v9445_v10  ;;  %v3440_v15 = vsel %vm637_vm1, %v3368_v4, %v3386_v29  ;;  %v6427_v42 = vadd.f32 %v8866_v22, %v2726_v26  ;;  %v2728_v8 = vpop.f32.mrb[67].mxu0  ;;  %v3260_v40 = vsel %vm456_vm0, %v3188_v17, %v3206_v59  ;;  %v3712_v25 = vunpack.c.h.b16 %v9436_v27 }
 0x3ed   : > { %11041 = vst [vmem:[#allocation73_spill] sm:$0xff] %v9448_v38  ;;  %11042 = vst [vmem:[#allocation74_spill] sm:$0xff] %v9453_v44  ;;  %v9462_v9 = vpack.c.bf16 %v3440_v15, %v9445_v10  ;;  %v9464_v63 = vpack.c.bf16 %v3260_v40, %v3278_v34  ;;  %v3422_v18 = vsel %vm637_vm1, %v3386_v29, %v7521_v3 }
 0x3ee   : > { %4810 = vmatmul.mubr.bf16.gmra.mrb[112].mxu1 %v9448_v38  ;;  %v3488_v4 = vpack.c.bf16 %v9453_v44, %v9453_v44  ;;  %v2952_v26 = vadd.f32 %v6427_v42, %v8882_v58  ;;  %v9474_v17 = vpack.c.b16 %v7221_v35, %v3712_v25  ;;  %v9476_v8 = vpack.c.bf16 %v3422_v18, %v3440_v15 }
 0x3ef   : > { %11043 = vst [vmem:[#allocation75_spill] sm:$0xff] %v9462_v9  ;;  %v9481_v34 = vsel %vm456_vm0, %v3206_v59, %v10968_v41  ;;  %6377 = vmatmul.mubr.bf16.gmra.mrb[20].mxu0 %v9462_v9  ;;  %v3711_v40 = vunpack.c.h.b16 %v9464_v63 }
 0x3f0   : > { %11044 = vst [vmem:[#allocation68_spill] sm:$0xff] %v9474_v17  ;;  %11045 = vst [vmem:[#allocation65_spill] sm:$0xff] %v9476_v8  ;;  %v3308_v29 = vpack.c.bf16 %v9481_v34, %v9481_v34  ;;  %v9487_v38 = vmax.f32 %v2952_v26, 0.0  ;;  %4816 = vmatprep.mubr.bf16.mxu1 %v9474_v17  ;;  %v3713_v58 = vunpack.c.h.b16 %v9476_v8  ;;  %v3716_v18 = vunpack.c.l.b16 %v3488_v4 }
 0x3f1   : > { %v2731_v15 = vpop.f32.mrb[224].mxu0 }
 0x3f2   : > { %11046 = vst [vmem:[#allocation6_spill] sm:$0xff] %v9487_v38  ;;  %v3714_v42 = vunpack.c.l.b16 %v3308_v29  ;;  %v2732_v25 = vadd.f32 %v2731_v15, %v8800_v55  ;;  %v2733_v59 = vpop.f32.mrb[225].mxu0  ;;  %v9492_v27 = vpack.c.b16 %v3716_v18, %v3713_v58  ;;  %v3189_v10 = vrot.slane %v9487_v38, 7 }
 0x3f3   : > { %v2734_v6 = vpop.f32.mrb[226].mxu0 }
 0x3f4   : > { %11047 = vst [vmem:[#allocation86_spill] sm:$0xff] %v9492_v27  ;;  %v9495_v9 = vpack.c.b16 %v3714_v42, %v3711_v40  ;;  %v2957_v26 = vadd.f32 %v8874_v16, %v2732_v25  ;;  %6380 = vmatprep.mubr.bf16.mxu0 %v9492_v27  ;;  %v2736_v17 = vpop.f32.mrb[227].mxu0  ;;  %v9502_v4 = vsel %vm456_vm0, %v10968_v41, %v3189_v10  ;;  %v3369_v6 = vrot.slane %v9487_v38, 1 }
 0x3f6   : > { %11048 = vst [vmem:[#allocation87_spill] sm:$0xff] %v9495_v9  ;;  %4817 = vmatmul.mubr.bf16.gmra.mrb[116].mxu1 %v9495_v9  ;;  %v3045_v29 = vmax.f32 %v2957_v26, 0.0 }
 0x3f8   : > { %v3207_v40 = vrot.slane %v3045_v29, 7  ;;  %v3387_v58 = vrot.slane %v3045_v29, 1  ;;  %v9509_v16 = vpack.c.bf16 %v3045_v29, %v9487_v38 }
 0x3f9   : > { %v2739_v18 = vpop.f32.mrb[72].mxu0 }
 0x3fa   : > { %11049 = vst [vmem:[#allocation88_spill] sm:$0xff] %v9509_v16  ;;  %v3423_v17 = vsel %vm637_vm1, %v3387_v58, %v7521_v3  ;;  %v9516_v15 = vsel %vm637_vm1, %v3369_v6, %v3387_v58  ;;  %v6428_v42 = vadd.f32 %v8866_v22, %v2739_v18  ;;  %v2741_v25 = vpop.f32.mrb[73].mxu0  ;;  %4823 = vmatprep.mubr.bf16.mxu1 %v9509_v16 }
 0x3fb   : > { %11050 = vst [vmem:[#allocation89_spill] sm:$0xff] %v9516_v15  ;;  %v3261_v59 = vsel %vm456_vm0, %v3189_v10, %v3207_v40  ;;  %v9523_v26 = vpack.c.bf16 %v3423_v17, %v9516_v15  ;;  %v2742_v29 = vpop.f32.mrb[74].mxu0 }
 0x3fc   : > { %v9526_v55 = vpack.c.bf16 %v3261_v59, %v9502_v4  ;;  %v2965_v58 = vadd.f32 %v6428_v42, %v8926_v36  ;;  %v6429_v18 = vadd.f32 %v8866_v22, %v2742_v29  ;;  %v2744_v25 = vpop.f32.mrb[75].mxu0  ;;  %v9541_v36 = vsel %vm456_vm0, %v3207_v40, %v10968_v41 }
 0x3fd   : > { %11051 = vst [vmem:[#allocation90_spill] sm:$0xff] %v9523_v26  ;;  %6381 = vmatmul.mubr.bf16.gmra.mrb[28].mxu0 %v9523_v26  ;;  %v9558_v40 = vsel %vm637_vm1, %v7521_v3, %v3369_v6 }
 0x3fe   : > { %4824 = vmatmul.mubr.bf16.gmra.mrb[120].mxu1 %v9526_v55  ;;  %v3047_v10 = vmax.f32 %v2965_v58, 0.0  ;;  %v2968_v17 = vadd.f32 %v6429_v18, %v8936_v2  ;;  %11054 = vst [vmem:[#allocation93_spill] sm:$0xff] %v9558_v40 }
 0x400   : > { %v3048_v16 = vmax.f32 %v2968_v17, 0.0  ;;  %v9536_v38 = vpack.c.bf16 %v3047_v10, %v10888_v57  ;;  %v3190_v59 = vrot.slane %v3047_v10, 7  ;;  %v3370_v8 = vrot.slane %v3047_v10, 1 }
 0x401   : > { %v2747_v27 = vpop.f32.mrb[228].mxu0 }
 0x402   : > { %11052 = vst [vmem:[#allocation91_spill] sm:$0xff] %v9536_v38  ;;  %v3208_v22 = vrot.slane %v3048_v16, 7  ;;  %v3388_v42 = vrot.slane %v3048_v16, 1  ;;  %v2749_v29 = vpop.f32.mrb[229].mxu0  ;;  %4831 = vmatprep.mubr.bf16.mxu1 %v9536_v38  ;;  %v3280_v2 = vsel %vm456_vm0, %v10968_v41, %v3190_v59  ;;  %v9550_v58 = vsel %vm637_vm1, %v7521_v3, %v3370_v8 }
 0x403   : > { %v2750_v27 = vpop.f32.mrb[230].mxu0  ;;  %v9553_v18 = vpack.c.bf16 %v3280_v2, %v9541_v36  ;;  %v3492_v25 = vpack.c.bf16 %v9550_v58, %v9550_v58  ;;  %v9562_v17 = vpack.c.bf16 %v3048_v16, %v3047_v10 }
 0x404   : > { %v2751_v29 = vadd.f32 %v2750_v27, %v8822_v46  ;;  %v2752_v9 = vpop.f32.mrb[231].mxu0  ;;  %v3262_v38 = vsel %vm456_vm0, %v3190_v59, %v3208_v22  ;;  %v3424_v44 = vsel %vm637_vm1, %v3388_v42, %v7521_v3  ;;  %v3442_v15 = vsel %vm637_vm1, %v3370_v8, %v3388_v42  ;;  %v6925_v27 = vld [vmem:[%s10539_s2] ss:$0 sm:$0xff] }
 0x405   : > { %11053 = vst [vmem:[#allocation92_spill] sm:$0xff] %v9553_v18  ;;  %11055 = vst [vmem:[#allocation94_spill] sm:$0xff] %v9562_v17  ;;  %v9572_v6 = vpack.c.bf16 %v3262_v38, %v3280_v2  ;;  %v9575_v26 = vpack.c.bf16 %v3424_v44, %v3442_v15  ;;  %v9578_v16 = vpack.c.bf16 %v3442_v15, %v9558_v40  ;;  %v3730_v9 = vunpack.c.h.b16 %v9562_v17 }
 0x406   : > { %4832 = vmatmul.mubr.bf16.gmra.mrb[124].mxu1 %v9553_v18  ;;  %v2976_v46 = vadd.f32 %v8934_v60, %v2751_v29  ;;  %v9585_v10 = vsel %vm456_vm0, %v3208_v22, %v10968_v41  ;;  %v3734_v38 = vunpack.c.l.b16 %v3492_v25 }
 0x407   : > { %11056 = vst [vmem:[#allocation95_spill] sm:$0xff] %v9575_v26  ;;  %v3731_v8 = vunpack.c.h.b16 %v9575_v26  ;;  %6384 = vmatprep.mubr.bf16.mxu0 %v9578_v16  ;;  %v3312_v44 = vpack.c.bf16 %v9585_v10, %v9585_v10  ;;  %v3729_v15 = vunpack.c.h.b16 %v9572_v6  ;;  %v9595_v60 = vpack.c.b16 %v7221_v35, %v3730_v9 }
 0x408   : > { %v9592_v59 = vmax.f32 %v2976_v46, 0.0 }
 0x409   : > { %11058 = vst [vmem:[#allocation97_spill] sm:$0xff] %v9595_v60  ;;  %v9597_v42 = vpack.c.b16 %v3734_v38, %v3731_v8  ;;  %v2755_v2 = vpop.f32.mrb[80].mxu0  ;;  %v3732_v22 = vunpack.c.l.b16 %v3312_v44  ;;  %4838 = vmatprep.mubr.bf16.mxu1 %v9595_v60 }
 0x40a   : > { %11057 = vst [vmem:[#allocation96_spill] sm:$0xff] %v9592_v59  ;;  %v6430_v25 = vadd.f32 %v6925_v27, %v2755_v2  ;;  %v2757_v29 = vpop.f32.mrb[81].mxu0  ;;  %v3191_v18 = vrot.slane %v9592_v59, 7 }
 0x40b   : > { %11059 = vst [vmem:[#allocation98_spill] sm:$0xff] %v9597_v42  ;;  %v2758_v17 = vpop.f32.mrb[82].mxu0  ;;  %6385 = vmatmul.mubr.bf16.gmra.mrb[36].mxu0 %v9597_v42  ;;  %v9605_v46 = vpack.c.b16 %v3732_v22, %v3729_v15  ;;  %v3371_v15 = vrot.slane %v9592_v59, 1 }
 0x40c   : > { %v2981_v9 = vadd.f32 %v6430_v25, %v8994_v0  ;;  %v2760_v8 = vpop.f32.mrb[83].mxu0  ;;  %v9611_v38 = vsel %vm456_vm0, %v10968_v41, %v3191_v18 }
 0x40d   : > { %11060 = vst [vmem:[#allocation99_spill] sm:$0xff] %v9605_v46 }
 0x40e   : > { %4839 = vmatmul.mubr.bf16.gmra.mrb[128].mxu1 %v9605_v46  ;;  %v3051_v2 = vmax.f32 %v2981_v9, 0.0 }
 0x410   : > { %v3209_v29 = vrot.slane %v3051_v2, 7  ;;  %v3389_v17 = vrot.slane %v3051_v2, 1  ;;  %v9617_v60 = vpack.c.bf16 %v3051_v2, %v9592_v59 }
 0x411   : > { %v2763_v0 = vpop.f32.mrb[232].mxu0 }
 0x412   : > { %11061 = vst [vmem:[#allocation100_spill] sm:$0xff] %v9617_v60  ;;  %v2764_v22 = vadd.f32 %v2763_v0, %v8841_v49  ;;  %v2765_v25 = vpop.f32.mrb[233].mxu0  ;;  %4845 = vmatprep.mubr.bf16.mxu1 %v9617_v60  ;;  %v3263_v8 = vsel %vm456_vm0, %v3191_v18, %v3209_v29  ;;  %v3425_v9 = vsel %vm637_vm1, %v3389_v17, %v7521_v3 }
 0x413   : > { %v9629_v44 = vsel %vm637_vm1, %v3371_v15, %v3389_v17  ;;  %v2766_v2 = vpop.f32.mrb[234].mxu0  ;;  %v9632_v46 = vpack.c.bf16 %v3263_v8, %v9611_v38 }
 0x414   : > { %v9635_v49 = vpack.c.bf16 %v3425_v9, %v9629_v44  ;;  %v2989_v18 = vadd.f32 %v8986_v43, %v2764_v22  ;;  %v2767_v25 = vadd.f32 %v2766_v2, %v8847_v62  ;;  %v2768_v60 = vpop.f32.mrb[235].mxu0  ;;  %v9650_v43 = vsel %vm456_vm0, %v3209_v29, %v10968_v41 }
 0x416   : > { %4846 = vmatmul.mubr.bf16.gmra.mrb[132].mxu1 %v9632_v46  ;;  %6388 = vmatprep.mubr.bf16.mxu0 %v9635_v49  ;;  %v3053_v17 = vmax.f32 %v2989_v18, 0.0  ;;  %v2992_v59 = vadd.f32 %v9015_v54, %v2767_v25 }
 0x418   : > { %v3054_v8 = vmax.f32 %v2992_v59, 0.0  ;;  %v9645_v26 = vpack.c.bf16 %v3053_v17, %v10888_v57  ;;  %v3192_v9 = vrot.slane %v3053_v17, 7  ;;  %v3372_v40 = vrot.slane %v3053_v17, 1 }
 0x419   : > { %v2771_v42 = vpop.f32.mrb[88].mxu0  ;;  %v9661_v59 = vsel %vm637_vm1, %v7521_v3, %v3371_v15 }
 0x41a   : > { %11062 = vst [vmem:[#allocation101_spill] sm:$0xff] %v9645_v26  ;;  %v3210_v62 = vrot.slane %v3054_v8, 7  ;;  %v9652_v60 = vpack.c.bf16 %v3054_v8, %v3053_v17  ;;  %v3390_v22 = vrot.slane %v3054_v8, 1  ;;  %v2773_v2 = vpop.f32.mrb[89].mxu0  ;;  %4853 = vmatprep.mubr.bf16.mxu1 %v9645_v26  ;;  %v3282_v54 = vsel %vm456_vm0, %v10968_v41, %v3192_v9  ;;  %11064 = vst [vmem:[#allocation103_spill] sm:$0xff] %v9661_v59 }
 0x41b   : > { %v2774_v42 = vpop.f32.mrb[90].mxu0  ;;  %v9664_v29 = vpack.c.bf16 %v3282_v54, %v9650_v43 }
 0x41c   : > { %11063 = vst [vmem:[#allocation102_spill] sm:$0xff] %v9652_v60  ;;  %v3444_v18 = vsel %vm637_vm1, %v3372_v40, %v3390_v22  ;;  %v6431_v25 = vadd.f32 %v6925_v27, %v2774_v42  ;;  %v2776_v17 = vpop.f32.mrb[91].mxu0  ;;  %v3264_v8 = vsel %vm456_vm0, %v3192_v9, %v3210_v62  ;;  %v3748_v2 = vunpack.c.h.b16 %v9652_v60 }
 0x41d   : > { %11065 = vst [vmem:[#allocation104_spill] sm:$0xff] %v9664_v29  ;;  %v9672_v0 = vpack.c.bf16 %v3444_v18, %v9661_v59  ;;  %v9674_v26 = vpack.c.bf16 %v3264_v8, %v3282_v54  ;;  %v9680_v15 = vsel %vm456_vm0, %v3210_v62, %v10968_v41  ;;  %v3426_v27 = vsel %vm637_vm1, %v3390_v22, %v7521_v3 }
 0x41e   : > { %4854 = vmatmul.mubr.bf16.gmra.mrb[136].mxu1 %v9664_v29  ;;  %v3000_v9 = vadd.f32 %v6431_v25, %v9103_v5  ;;  %v9687_v42 = vpack.c.b16 %v7221_v35, %v3748_v2  ;;  %v3316_v54 = vpack.c.bf16 %v9680_v15, %v9680_v15  ;;  %v9691_v17 = vpack.c.bf16 %v3426_v27, %v3444_v18 }
 0x41f   : > { %6389 = vmatmul.mubr.bf16.gmra.mrb[44].mxu0 %v9672_v0  ;;  %v3747_v8 = vunpack.c.h.b16 %v9674_v26 }
 0x420   : > { %11066 = vst [vmem:[#allocation105_spill] sm:$0xff] %v9687_v42  ;;  %v9695_v62 = vmax.f32 %v3000_v9, 0.0  ;;  %4860 = vmatprep.mubr.bf16.mxu1 %v9687_v42  ;;  %v3750_v29 = vunpack.c.l.b16 %v3316_v54  ;;  %v11070_v54 = vld [vmem:[#allocation76_spill] sm:$0xff] }
 0x421   : > { %v2779_v22 = vpop.f32.mrb[236].mxu0 }
 0x422   : > { %v3193_v5 = vrot.slane %v9695_v62, 7  ;;  %v2780_v25 = vadd.f32 %v2779_v22, %v8860_v37  ;;  %v2781_v2 = vpop.f32.mrb[237].mxu0  ;;  %v9700_v60 = vpack.c.b16 %v3750_v29, %v3747_v8  ;;  %v10768_v37 = vrot.slane %v9695_v62, 1  ;;  %v6892_v8 = vld [vmem:[%s10540_s3 + $0x100] sm:$0xff]  }
 0x423   : > { %v2782_v59 = vpop.f32.mrb[238].mxu0 }
 0x424   : > { %11067 = vst [vmem:[#allocation106_spill] sm:$0xff] %v9700_v60  ;;  %v3005_v18 = vadd.f32 %v9097_v24, %v2780_v25  ;;  %v2784_v27 = vpop.f32.mrb[239].mxu0  ;;  %v9706_v9 = vsel %vm456_vm0, %v10968_v41, %v3193_v5 }
 0x425   : > { %v3290_v27 = vpack.c.bf16 %v8984_v28, %v8984_v28  ;;  %v6894_v28 = vld [vmem:[%s10540_s3 + $0x110] sm:$0xff]  }
 0x426   : > { %4861 = vmatmul.mubr.bf16.gmra.mrb[140].mxu1 %v9700_v60  ;;  %v9711_v42 = vmax.f32 %v3005_v18, 0.0  ;;  %v11072_v60 = vld [vmem:[#allocation16_spill] sm:$0xff] }
 0x427   : > { %4900 = vmatprep.mubr.bf16.mxu1 %v8902_v32  ;;  %v9731_v32 = vsel %vm637_vm1, %v7521_v3, %v3372_v40 }
 0x428   : > { %v10765_v59 = vrot.slane %v9711_v42, 7  ;;  %v9718_v24 = vpack.c.bf16 %v9711_v42, %v9695_v62  ;;  %v3391_v29 = vrot.slane %v9711_v42, 1 }
 0x42a   : > { %11068 = vst [vmem:[#allocation107_spill] sm:$0xff] %v9718_v24  ;;  %v3265_v22 = vsel %vm456_vm0, %v3193_v5, %v10765_v59  ;;  %v3427_v25 = vsel %vm637_vm1, %v3391_v29, %v7521_v3  ;;  %v9740_v2 = vsel %vm637_vm1, %v10768_v37, %v3391_v29  ;;  %v11071_v59 = vld [vmem:[#allocation31_spill] sm:$0xff]  ;;  %v3633_v37 = vunpack.c.l.b16 %v3290_v27 }
 0x42b   : > { %v9743_v18 = vpack.c.bf16 %v3265_v22, %v9706_v9  ;;  %v9746_v5 = vpack.c.bf16 %v3427_v25, %v9740_v2  ;;  %v11073_v24 = vpack.c.bf16 %v11071_v59, %v11072_v60  ;;  %v6893_v29 = vld [vmem:[%s10540_s3 + $0x108] sm:$0xff]   ;;  %v11074_v22 = vld [vmem:[#allocation38_spill] sm:$0xff] }
 0x42c   : > { %v3624_v25 = vunpack.c.h.b16 %v11074_v22  ;;  %v11076_v59 = vld [vmem:[#allocation78_spill] sm:$0xff]  ;;  %v11077_v27 = vld [vmem:[#allocation23_spill] sm:$0xff] }
 0x42d   : > { %11069 = vst [vmem:[#allocation108_spill] sm:$0xff] %v9746_v5 }
 0x42e   : > { %4901 = vmatmul.mubr.bf16.vlgmr.msra.gmra.mrb[48].mxu1 %v11070_v54  ;;  %v11075_v54 = vld [vmem:[#allocation19_spill] sm:$0xff]  ;;  %v3942_v60 = vpack.c.b16 %v3633_v37, %v3624_v25  ;;  %v6896_v37 = vld [vmem:[%s10540_s3 + $0x120] sm:$0xff]   ;;  %v11078_v25 = vld [vmem:[#allocation81_spill] sm:$0xff] }
 0x42f   : > { %4908 = vmatprep.mubr.bf16.mxu1 %v11073_v24  ;;  %5078 = vmatpush1.bf16.msra.mxu1 %v6892_v8  ;;  %v6158_v40 = vpack.c.bf16 %v11075_v54, %v7521_v3  ;;  %v3468_v24 = vpack.c.bf16 %v11076_v59, %v11076_v59  ;;  %v6895_v8 = vld [vmem:[%s10540_s3 + $0x118] sm:$0xff]   ;;  %v6898_v54 = vld [vmem:[%s10540_s3 + $0x130] sm:$0xff]  }
 0x430   : > { %5079 = vmatprep.subr.bf16.mxu1 %v10845_v61 }
 0x431   : > { %v3632_v22 = vunpack.c.l.b16 %v3468_v24  ;;  %v11080_v24 = vpack.c.bf16 %v9062_v23, %v9037_v11  ;;  %v6900_v11 = vld [vmem:[%s10540_s3 + $0x140] sm:$0xff]  }
 0x433   : > { %5080 = vmatpush1.bf16.msra.mxu1 %v6893_v29  ;;  %v3623_v29 = vunpack.c.h.b16 %v11077_v27 }
 0x434   : > { %5081 = vmatprep.subr.bf16.mxu1 %v10845_v61 }
 0x436   : > { %4909 = vmatmul.mubr.bf16.gmra.mrb[144].mxu1 %v6158_v40  ;;  %v3941_v40 = vpack.c.b16 %v3632_v22, %v3623_v29  ;;  %v3294_v22 = vpack.c.bf16 %v9109_v19, %v9109_v19 }
 0x437   : > { %4915 = vmatprep.mubr.bf16.mxu1 %v3942_v60  ;;  %5082 = vmatpush1.bf16.msra.mxu1 %v6894_v28  ;;  %v6897_v28 = vld [vmem:[%s10540_s3 + $0x128] sm:$0xff]   ;;  %v11079_v60 = vld [vmem:[#allocation34_spill] sm:$0xff] }
 0x438   : > { %5083 = vmatprep.subr.bf16.mxu1 %v10845_v61 }
 0x43b   : > { %5084 = vmatpush1.bf16.msra.mxu1 %v6895_v8  ;;  %v6899_v8 = vld [vmem:[%s10540_s3 + $0x138] sm:$0xff]  }
 0x43c   : > { %5085 = vmatprep.subr.bf16.mxu1 %v10845_v61 }
 0x43e   : > { %4916 = vmatmul.mubr.bf16.gmra.mrb[56].mxu1 %v3941_v40 }
 0x43f   : > { %4922 = vmatprep.mubr.bf16.mxu1 %v11078_v25  ;;  %5086 = vmatpush1.bf16.msra.mxu1 %v6896_v37  ;;  %v11081_v37 = vld [vmem:[#allocation50_spill] sm:$0xff]  ;;  %v3651_v25 = vunpack.c.l.b16 %v3294_v22  ;;  %v6901_v22 = vld [vmem:[%s10540_s3 + $0x148] sm:$0xff]  }
 0x440   : > { %5087 = vmatprep.subr.bf16.mxu1 %v10845_v61  ;;  %v3648_v40 = vunpack.c.h.b16 %v11081_v37 }
 0x442   : > { %v3960_v19 = vpack.c.b16 %v3651_v25, %v3648_v40 }
 0x443   : > { %5088 = vmatpush1.bf16.msra.mxu1 %v6897_v28 }
 0x444   : > { %5089 = vmatprep.subr.bf16.mxu1 %v10845_v61 }
 0x446   : > { %4923 = vmatmul.mubr.bf16.gmra.mrb[148].mxu1 %v11079_v60 }
 0x447   : > { %4930 = vmatprep.mubr.bf16.mxu1 %v11080_v24  ;;  %5090 = vmatpush1.bf16.msra.mxu1 %v6898_v54  ;;  %v11082_v54 = vld [vmem:[#allocation42_spill] sm:$0xff]  ;;  %v6902_v24 = vld [vmem:[%s10540_s3 + $0x150] sm:$0xff]  }
 0x448   : > { %5091 = vmatprep.subr.bf16.mxu1 %v10845_v61  ;;  %v4701_v29 = vpop.f32.mrb[52].mxu1 }
 0x449   : > { %v4702_v28 = vpop.f32.mrb[53].mxu1  ;;  %v6903_v29 = vld [vmem:[%s10540_s3 + $0x158] sm:$0xff]  }
 0x44a   : > { %v9798_v5 = vpop.f32.mrb[54].mxu1 }
 0x44b   : > { %5092 = vmatpush1.bf16.msra.mxu1 %v6899_v8  ;;  %v4705_v23 = vpop.f32.mrb[55].mxu1  ;;  %v11083_v8 = vld [vmem:[#allocation51_spill] sm:$0xff] }
 0x44c   : > { %5093 = vmatprep.subr.bf16.mxu1 %v10845_v61 }
 0x44e   : > { %4931 = vmatmul.mubr.bf16.gmra.mrb[64].mxu1 %v11082_v54  ;;  %v11085_v54 = vpack.c.bf16 %v9181_v53, %v9153_v13 }
 0x44f   : > { %4937 = vmatprep.mubr.bf16.mxu1 %v3960_v19  ;;  %5094 = vmatpush1.bf16.msra.mxu1 %v6900_v11  ;;  %v6904_v11 = vld [vmem:[%s10540_s3 + $0x160] sm:$0xff]   ;;  %v11084_v19 = vld [vmem:[#allocation53_spill] sm:$0xff] }
 0x450   : > { %5095 = vmatprep.subr.bf16.mxu1 %v10845_v61 }
 0x453   : > { %5096 = vmatpush1.bf16.msra.mxu1 %v6901_v22  ;;  %v6905_v22 = vld [vmem:[%s10540_s3 + $0x168] sm:$0xff]  }
 0x454   : > { %5097 = vmatprep.subr.bf16.mxu1 %v10845_v61 }
 0x456   : > { %4938 = vmatmul.mubr.bf16.gmra.mrb[152].mxu1 %v11083_v8 }
 0x457   : > { %4944 = vmatprep.mubr.bf16.mxu1 %v9138_v52  ;;  %5098 = vmatpush1.bf16.msra.mxu1 %v6902_v24  ;;  %v3298_v52 = vpack.c.bf16 %v9220_v48, %v9220_v48  ;;  %v3666_v24 = vunpack.c.h.b16 %v9202_v47  ;;  %v6906_v48 = vld [vmem:[%s10540_s3 + $0x170] sm:$0xff]  }
 0x458   : > { %5099 = vmatprep.subr.bf16.mxu1 %v10845_v61  ;;  %v9819_v40 = vpop.f32.mrb[60].mxu1 }
 0x459   : > { %v4717_v25 = vpop.f32.mrb[61].mxu1  ;;  %v3669_v8 = vunpack.c.l.b16 %v3298_v52  ;;  %v6907_v52 = vld [vmem:[%s10540_s3 + $0x178] sm:$0xff]  }
 0x45a   : > { %v9821_v28 = vpop.f32.mrb[62].mxu1 }
 0x45b   : > { %5100 = vmatpush1.bf16.msra.mxu1 %v6903_v29  ;;  %v4720_v23 = vpop.f32.mrb[63].mxu1  ;;  %v3978_v53 = vpack.c.b16 %v3669_v8, %v3666_v24  ;;  %v11090_v24 = vld [vmem:[#allocation85_spill] sm:$0xff] }
 0x45c   : > { %5101 = vmatprep.subr.bf16.mxu1 %v10845_v61 }
 0x45e   : > { %4945 = vmatmul.mubr.bf16.gmra.mrb[72].mxu1 %v11084_v19 }
 0x45f   : > { %4952 = vmatprep.mubr.bf16.mxu1 %v11085_v54  ;;  %5102 = vmatpush1.bf16.msra.mxu1 %v6904_v11  ;;  %v11088_v11 = vld [vmem:[#allocation84_spill] sm:$0xff] }
 0x460   : > { %5103 = vmatprep.subr.bf16.mxu1 %v10845_v61 }
 0x462   : > { %v6354_v29 = vpop.f32.mrb[240].mxu0 }
 0x463   : > { %5104 = vmatpush1.bf16.msra.mxu1 %v6905_v22  ;;  %v9841_v25 = vpop.f32.mrb[241].mxu0 }
 0x464   : > { %11086 = vst [vmem:[#allocation76_spill] sm:$0xff] %v9841_v25  ;;  %5105 = vmatprep.subr.bf16.mxu1 %v10845_v61  ;;  %v9844_v13 = vpop.f32.mrb[242].mxu0 }
 0x465   : > { %11087 = vst [vmem:[#allocation31_spill] sm:$0xff] %v9844_v13  ;;  %v9847_v23 = vpop.f32.mrb[243].mxu0  ;;  %v3302_v13 = vpack.c.bf16 %v9327_v7, %v9327_v7 }
 0x466   : > { %4953 = vmatmul.mubr.bf16.gmra.mrb[156].mxu1 %v11088_v11  ;;  %11089 = vst [vmem:[#allocation16_spill] sm:$0xff] %v9847_v23 }
 0x467   : > { %4959 = vmatprep.mubr.bf16.mxu1 %v3978_v53  ;;  %5106 = vmatpush1.bf16.msra.mxu1 %v6906_v48 }
 0x468   : > { %5107 = vmatprep.subr.bf16.mxu1 %v10845_v61 }
 0x469   : > { %v9853_v54 = vpop.f32.mrb[68].mxu1 }
 0x46a   : > { %v4732_v22 = vpop.f32.mrb[69].mxu1 }
 0x46b   : > { %v4733_v29 = vpop.f32.mrb[70].mxu1  ;;  %5108 = vmatpush1.bf16.msra.mxu1 %v6907_v52  ;;  %v11095_v22 = vld [vmem:[#allocation36_spill] sm:$0xff] }
 0x46c   : > { %v4734_v25 = vpop.f32.mrb[71].mxu1  ;;  %5286 = vmatprep.subr.bf16.mxu1 %v10845_v61  ;;  %v3684_v29 = vunpack.c.h.b16 %v11095_v22 }
 0x46d   : > { %v11094_v25 = vpack.c.bf16 %v9288_v39, %v9264_v21  ;;  %v11097_v21 = vld [vmem:[#allocation28_spill] sm:$0xff] }
 0x46e   : > { %4960 = vmatmul.mubr.bf16.gmra.mrb[80].mxu1 %v11090_v24 }
 0x46f   : > { %4966 = vmatprep.mubr.bf16.mxu1 %v9249_v14  ;;  %v3687_v14 = vunpack.c.l.b16 %v3302_v13 }
 0x471   : > { %v9858_v8 = vpop.f32.mrb[244].mxu0  ;;  %v3996_v23 = vpack.c.b16 %v3687_v14, %v3684_v29 }
 0x472   : > { %11091 = vst [vmem:[#allocation19_spill] sm:$0xff] %v9858_v8  ;;  %v9860_v48 = vpop.f32.mrb[245].mxu0 }
 0x473   : > { %11092 = vst [vmem:[#allocation78_spill] sm:$0xff] %v9860_v48  ;;  %v9862_v53 = vpop.f32.mrb[246].mxu0 }
 0x474   : > { %11093 = vst [vmem:[#allocation23_spill] sm:$0xff] %v9862_v53  ;;  %v5547_v11 = vpop.f32.mrb[247].mxu0  ;;  %v11096_v53 = vld [vmem:[#allocation24_spill] sm:$0xff] }
 0x476   : > { %4967 = vmatmul.mubr.bf16.gmra.mrb[160].mxu1 %v9205_v1 }
 0x477   : > { %4974 = vmatprep.mubr.bf16.mxu1 %v11094_v25 }
 0x479   : > { %v4745_v52 = vpop.f32.mrb[76].mxu1 }
 0x47a   : > { %v4746_v24 = vpop.f32.mrb[77].mxu1  ;;  %v3702_v52 = vunpack.c.h.b16 %v9416_v51 }
 0x47b   : > { %v9871_v8 = vpop.f32.mrb[78].mxu1 }
 0x47c   : > { %v4749_v48 = vpop.f32.mrb[79].mxu1 }
 0x47e   : > { %4975 = vmatmul.mubr.bf16.gmra.mrb[88].mxu1 %v11096_v53  ;;  %v3306_v53 = vpack.c.bf16 %v9434_v30, %v9434_v30 }
 0x47f   : > { %4981 = vmatprep.mubr.bf16.mxu1 %v3996_v23  ;;  %v9874_v11 = vpop.f32.mrb[248].mxu0  ;;  %v11098_v23 = vld [vmem:[#allocation35_spill] sm:$0xff] }
 0x480   : > { %v5559_v7 = vpop.f32.mrb[249].mxu0  ;;  %v3705_v29 = vunpack.c.l.b16 %v3306_v53 }
 0x481   : > { %v6363_v47 = vpop.f32.mrb[250].mxu0 }
 0x482   : > { %v9876_v37 = vpop.f32.mrb[251].mxu0  ;;  %v11099_v47 = vpack.c.bf16 %v9395_v12, %v9371_v31  ;;  %v4014_v7 = vpack.c.b16 %v3705_v29, %v3702_v52  ;;  %v11103_v29 = vpack.c.bf16 %v9502_v4, %v9481_v34  ;;  %v11106_v34 = vld [vmem:[#allocation86_spill] sm:$0xff] }
 0x486   : > { %4982 = vmatmul.mubr.bf16.gmra.mrb[164].mxu1 %v11097_v21 }
 0x487   : > { %4988 = vmatprep.mubr.bf16.mxu1 %v9358_v45 }
 0x489   : > { %v9880_v39 = vpop.f32.mrb[84].mxu1 }
 0x48a   : > { %v4761_v13 = vpop.f32.mrb[85].mxu1 }
 0x48b   : > { %v9882_v25 = vpop.f32.mrb[86].mxu1 }
 0x48c   : > { %v4764_v48 = vpop.f32.mrb[87].mxu1 }
 0x48e   : > { %4989 = vmatmul.mubr.bf16.gmra.mrb[96].mxu1 %v11098_v23 }
 0x48f   : > { %4996 = vmatprep.mubr.bf16.mxu1 %v11099_v47 }
 0x493   : > { %v6366_v14 = vpop.f32.mrb[252].mxu0 }
 0x494   : > { %v9891_v45 = vpop.f32.mrb[253].mxu0 }
 0x495   : > { %v9893_v24 = vpop.f32.mrb[254].mxu0 }
 0x496   : > { %4997 = vmatmul.mubr.bf16.gmra.mrb[168].mxu1 %v9364_v50  ;;  %v9896_v21 = vpop.f32.mrb[255].mxu0  ;;  %v3310_v50 = vpack.c.bf16 %v9541_v36, %v9541_v36 }
 0x497   : > { %5003 = vmatprep.mubr.bf16.mxu1 %v4014_v7 }
 0x499   : > { %v9898_v30 = vpop.f32.mrb[92].mxu1 }
 0x49a   : > { %v4776_v13 = vpop.f32.mrb[93].mxu1 }
 0x49b   : > { %v4777_v48 = vpop.f32.mrb[94].mxu1 }
 0x49c   : > { %v4778_v31 = vpop.f32.mrb[95].mxu1 }
 0x49e   : > { %5004 = vmatmul.mubr.bf16.gmra.mrb[104].mxu1 %v9383_v56  ;;  %v3720_v56 = vunpack.c.h.b16 %v9526_v55 }
 0x49f   : > { %5010 = vmatprep.mubr.bf16.mxu1 %v9464_v63  ;;  %v3723_v63 = vunpack.c.l.b16 %v3310_v50 }
 0x4a0   : > { %v9902_v12 = vpop.f32.mrb[4].mxu0 }
 0x4a1   : > { %11100 = vst [vmem:[#allocation81_spill] sm:$0xff] %v9902_v12  ;;  %v9904_v53 = vpop.f32.mrb[5].mxu0  ;;  %v4032_v31 = vpack.c.b16 %v3723_v63, %v3720_v56  ;;  %v11107_v56 = vld [vmem:[#allocation90_spill] sm:$0xff]  ;;  %v3738_v63 = vunpack.c.h.b16 %v9632_v46 }
 0x4a2   : > { %11101 = vst [vmem:[#allocation34_spill] sm:$0xff] %v9904_v53  ;;  %v9906_v47 = vpop.f32.mrb[6].mxu0 }
 0x4a3   : > { %11102 = vst [vmem:[#allocation42_spill] sm:$0xff] %v9906_v47  ;;  %v5591_v52 = vpop.f32.mrb[7].mxu0  ;;  %v11104_v47 = vld [vmem:[#allocation75_spill] sm:$0xff] }
 0x4a6   : > { %5011 = vmatmul.mubr.bf16.gmra.mrb[172].mxu1 %v9419_v33 }
 0x4a7   : > { %5018 = vmatprep.mubr.bf16.mxu1 %v11103_v29 }
 0x4a9   : > { %v4789_v14 = vpop.f32.mrb[100].mxu1 }
 0x4aa   : > { %v4790_v7 = vpop.f32.mrb[101].mxu1 }
 0x4ab   : > { %v9915_v13 = vpop.f32.mrb[102].mxu1 }
 0x4ac   : > { %v4793_v48 = vpop.f32.mrb[103].mxu1 }
 0x4ae   : > { %5019 = vmatmul.mubr.bf16.gmra.mrb[112].mxu1 %v11104_v47  ;;  %v9918_v52 = vpop.f32.mrb[12].mxu0  ;;  %v3314_v47 = vpack.c.bf16 %v9650_v43, %v9650_v43 }
 0x4af   : > { %5025 = vmatprep.mubr.bf16.mxu1 %v4032_v31  ;;  %11105 = vst [vmem:[#allocation51_spill] sm:$0xff] %v9918_v52  ;;  %v5603_v36 = vpop.f32.mrb[13].mxu0 }
 0x4b0   : > { %v6375_v12 = vpop.f32.mrb[14].mxu0  ;;  %v3741_v7 = vunpack.c.l.b16 %v3314_v47 }
 0x4b1   : > { %v9920_v53 = vpop.f32.mrb[15].mxu0  ;;  %v11108_v12 = vpack.c.bf16 %v9611_v38, %v9585_v10  ;;  %v11112_v38 = vld [vmem:[#allocation98_spill] sm:$0xff] }
 0x4b2   : > { %v4050_v36 = vpack.c.b16 %v3741_v7, %v3738_v63  ;;  %v11115_v63 = vrot.slane %v9711_v42, 7 }
 0x4b6   : > { %5026 = vmatmul.mubr.bf16.gmra.mrb[176].mxu1 %v11106_v34 }
 0x4b7   : > { %5032 = vmatprep.mubr.bf16.mxu1 %v9572_v6 }
 0x4b9   : > { %v9924_v4 = vpop.f32.mrb[108].mxu1 }
 0x4ba   : > { %v4805_v50 = vpop.f32.mrb[109].mxu1 }
 0x4bb   : > { %v9926_v29 = vpop.f32.mrb[110].mxu1 }
 0x4bc   : > { %v4808_v14 = vpop.f32.mrb[111].mxu1 }
 0x4be   : > { %5033 = vmatmul.mubr.bf16.gmra.mrb[120].mxu1 %v11107_v56 }
 0x4bf   : > { %5040 = vmatprep.mubr.bf16.mxu1 %v11108_v12 }
 0x4c2   : > { %v6378_v48 = vpop.f32.mrb[20].mxu0 }
 0x4c3   : > { %v9935_v6 = vpop.f32.mrb[21].mxu0 }
 0x4c4   : > { %11109 = vst [vmem:[#allocation53_spill] sm:$0xff] %v9935_v6  ;;  %v9937_v31 = vpop.f32.mrb[22].mxu0 }
 0x4c5   : > { %11110 = vst [vmem:[#allocation84_spill] sm:$0xff] %v9937_v31  ;;  %v9940_v34 = vpop.f32.mrb[23].mxu0 }
 0x4c6   : > { %5041 = vmatmul.mubr.bf16.gmra.mrb[180].mxu1 %v9578_v16  ;;  %11111 = vst [vmem:[#allocation85_spill] sm:$0xff] %v9940_v34  ;;  %v9955_v16 = vsel %vm456_vm0, %v11115_v63, %v10968_v41 }
 0x4c7   : > { %5047 = vmatprep.mubr.bf16.mxu1 %v4050_v36  ;;  %v3318_v36 = vpack.c.bf16 %v9955_v16, %v9955_v16 }
 0x4c9   : > { %v9942_v43 = vpop.f32.mrb[116].mxu1  ;;  %v3759_v42 = vunpack.c.l.b16 %v3318_v36 }
 0x4ca   : > { %v4820_v50 = vpop.f32.mrb[117].mxu1 }
 0x4cb   : > { %v4821_v14 = vpop.f32.mrb[118].mxu1 }
 0x4cc   : > { %v4822_v10 = vpop.f32.mrb[119].mxu1  ;;  %v3756_v14 = vunpack.c.h.b16 %v9743_v18 }
 0x4ce   : > { %5048 = vmatmul.mubr.bf16.gmra.mrb[128].mxu1 %v11112_v38 }
 0x4cf   : > { %5054 = vmatprep.mubr.bf16.mxu1 %v9674_v26  ;;  %v11117_v26 = vpack.c.bf16 %v9706_v9, %v9680_v15  ;;  %v3749_v15 = vunpack.c.h.b16 %v9691_v17 }
 0x4d0   : > { %v9946_v47 = vpop.f32.mrb[28].mxu0 }
 0x4d1   : > { %11113 = vst [vmem:[#allocation36_spill] sm:$0xff] %v9946_v47  ;;  %v9948_v12 = vpop.f32.mrb[29].mxu0  ;;  %v4068_v47 = vpack.c.b16 %v3759_v42, %v3756_v14 }
 0x4d2   : > { %11114 = vst [vmem:[#allocation24_spill] sm:$0xff] %v9948_v12  ;;  %v9957_v7 = vpop.f32.mrb[30].mxu0 }
 0x4d3   : > { %11116 = vst [vmem:[#allocation28_spill] sm:$0xff] %v9957_v7  ;;  %v5635_v48 = vpop.f32.mrb[31].mxu0 }
 0x4d4   : > { %v3496_v48 = vpack.c.bf16 %v9731_v32, %v9731_v32 }
 0x4d6   : > { %5055 = vmatmul.mubr.bf16.gmra.mrb[184].mxu1 %v9635_v49  ;;  %v3752_v36 = vunpack.c.l.b16 %v3496_v48 }
 0x4d7   : > { %5062 = vmatprep.mubr.bf16.mxu1 %v11117_v26 }
 0x4d9   : > { %v4833_v50 = vpop.f32.mrb[124].mxu1 }
 0x4da   : > { %v4834_v10 = vpop.f32.mrb[125].mxu1  ;;  %v9976_v50 = vpack.c.b16 %v3752_v36, %v3749_v15  ;;  %v11123_v15 = vld [vmem:[#allocation82_spill] sm:$0xff]  ;;  %v3626_v36 = vunpack.c.h.b16 %v11079_v60  ;;  %v6911_v60 = vld [vmem:[%s10540_s3 + $0x198] sm:$0xff]  }
 0x4db   : > { %v9966_v38 = vpop.f32.mrb[126].mxu1  ;;  %v11120_v10 = vld [vmem:[#allocation12_spill] sm:$0xff] }
 0x4dc   : > { %v4837_v63 = vpop.f32.mrb[127].mxu1 }
 0x4dd   : > { %v11121_v63 = vld [vmem:[#allocation79_spill] sm:$0xff] }
 0x4de   : > { %5063 = vmatmul.mubr.bf16.gmra.mrb[136].mxu1 %v9672_v0  ;;  %v9971_v7 = vpop.f32.mrb[36].mxu0  ;;  %v11122_v48 = vpack.c.bf16 %v11121_v63, %v11076_v59  ;;  %v6910_v59 = vld [vmem:[%s10540_s3 + $0x190] sm:$0xff]  }
 0x4df   : > { %5069 = vmatprep.mubr.bf16.mxu1 %v4068_v47  ;;  %11118 = vst [vmem:[#allocation35_spill] sm:$0xff] %v9971_v7  ;;  %v5647_v12 = vpop.f32.mrb[37].mxu0  ;;  %v6908_v47 = vld [vmem:[%s10540_s3 + $0x180] sm:$0xff]  }
 0x4e0   : > { %v6387_v9 = vpop.f32.mrb[38].mxu0 }
 0x4e1   : > { %v9974_v26 = vpop.f32.mrb[39].mxu0  ;;  %v6909_v9 = vld [vmem:[%s10540_s3 + $0x188] sm:$0xff]  }
 0x4e2   : > { %11119 = vst [vmem:[#allocation75_spill] sm:$0xff] %v9974_v26 }
 0x4e6   : > { %5070 = vmatmul.mubr.bf16.gmra.mrb[188].mxu1 %v9976_v50 }
 0x4e7   : > { %5109 = vmatprep.mubr.bf16.mxu1 %v11077_v27  ;;  %v3470_v27 = vpack.c.bf16 %v11123_v15, %v11123_v15 }
 0x4e9   : > { %v9980_v0 = vpop.f32.mrb[132].mxu1 }
 0x4ea   : > { %v4849_v14 = vpop.f32.mrb[133].mxu1 }
 0x4eb   : > { %v9982_v42 = vpop.f32.mrb[134].mxu1 }
 0x4ec   : > { %v4852_v12 = vpop.f32.mrb[135].mxu1 }
 0x4ed   : > { %v3635_v12 = vunpack.c.l.b16 %v3470_v27  ;;  %v11128_v27 = vld [vmem:[#allocation77_spill] sm:$0xff] }
 0x4ee   : > { %5110 = vmatmul.mubr.bf16.vlgmr.msra.gmra.mrb[48].mxu1 %v11120_v10 }
 0x4ef   : > { %5117 = vmatprep.mubr.bf16.mxu1 %v11122_v48  ;;  %5287 = vmatpush1.bf16.msra.mxu1 %v6908_v47  ;;  %v11125_v47 = vld [vmem:[#allocation26_spill] sm:$0xff]  ;;  %v3944_v15 = vpack.c.b16 %v3635_v12, %v3626_v36 }
 0x4f0   : > { %5288 = vmatprep.subr.bf16.mxu1 %v10845_v61  ;;  %v6160_v63 = vpack.c.bf16 %v11125_v47, %v10888_v57  ;;  %v6912_v36 = vld [vmem:[%s10540_s3 + $0x1a0] sm:$0xff]  }
 0x4f2   : > { %v6390_v14 = vpop.f32.mrb[44].mxu0 }
 0x4f3   : > { %5289 = vmatpush1.bf16.msra.mxu1 %v6909_v9  ;;  %v10001_v10 = vpop.f32.mrb[45].mxu0  ;;  %v3625_v9 = vunpack.c.h.b16 %v11128_v27 }
 0x4f4   : > { %11124 = vst [vmem:[#allocation86_spill] sm:$0xff] %v10001_v10  ;;  %5290 = vmatprep.subr.bf16.mxu1 %v10845_v61  ;;  %v10006_v48 = vpop.f32.mrb[46].mxu0 }
 0x4f5   : > { %11126 = vst [vmem:[#allocation90_spill] sm:$0xff] %v10006_v48  ;;  %v10008_v7 = vpop.f32.mrb[47].mxu0  ;;  %v3650_v48 = vunpack.c.h.b16 %v11084_v19 }
 0x4f6   : > { %5118 = vmatmul.mubr.bf16.gmra.mrb[192].mxu1 %v6160_v63  ;;  %11127 = vst [vmem:[#allocation98_spill] sm:$0xff] %v10008_v7  ;;  %v11129_v63 = vld [vmem:[#allocation41_spill] sm:$0xff] }
 0x4f7   : > { %5124 = vmatprep.mubr.bf16.mxu1 %v3944_v15  ;;  %5291 = vmatpush1.bf16.msra.mxu1 %v6910_v59  ;;  %v3943_v59 = vpack.c.b16 %v7221_v35, %v3625_v9  ;;  %v6913_v15 = vld [vmem:[%s10540_s3 + $0x1a8] sm:$0xff]  }
 0x4f8   : > { %5292 = vmatprep.subr.bf16.mxu1 %v10845_v61  ;;  %v11131_v9 = vld [vmem:[#allocation59_spill] sm:$0xff] }
 0x4f9   : > { %v10015_v14 = vpop.f32.mrb[140].mxu1 }
 0x4fa   : > { %v4864_v47 = vpop.f32.mrb[141].mxu1 }
 0x4fb   : > { %v4865_v10 = vpop.f32.mrb[142].mxu1  ;;  %5293 = vmatpush1.bf16.msra.mxu1 %v6911_v60  ;;  %v11130_v60 = vld [vmem:[#allocation47_spill] sm:$0xff]  ;;  %v3474_v47 = vpack.c.bf16 %v11131_v9, %v11131_v9 }
 0x4fc   : > { %v4866_v12 = vpop.f32.mrb[143].mxu1  ;;  %5294 = vmatprep.subr.bf16.mxu1 %v10845_v61  ;;  %v6914_v10 = vld [vmem:[%s10540_s3 + $0x1b0] sm:$0xff]  }
 0x4fd   : > { %v11132_v12 = vld [vmem:[#allocation60_spill] sm:$0xff]  ;;  %v3653_v31 = vunpack.c.l.b16 %v3474_v47 }
 0x4fe   : > { %5125 = vmatmul.mubr.bf16.gmra.mrb[56].mxu1 %v3943_v59  ;;  %v11133_v59 = vld [vmem:[#allocation40_spill] sm:$0xff] }
 0x4ff   : > { %5131 = vmatprep.mubr.bf16.mxu1 %v11129_v63  ;;  %5295 = vmatpush1.bf16.msra.mxu1 %v6912_v36  ;;  %v10037_v36 = vld [vmem:[%s10541_s4] ss:$0 sm:$0xff]  ;;  %v11134_v63 = vpack.c.bf16 %v11132_v12, %v11133_v59  ;;  %v3962_v19 = vpack.c.b16 %v3653_v31, %v3650_v48  ;;  %v11137_v31 = vld [vmem:[#allocation67_spill] sm:$0xff] }
 0x500   : > { %5296 = vmatprep.subr.bf16.mxu1 %v10845_v61  ;;  %v4704_v9 = vadd.f32 %v10037_v36, %v9798_v5  ;;  %v6917_v5 = vld [vmem:[%s10540_s3 + $0x1c8] sm:$0xff]   ;;  %v4716_v48 = vadd.f32 %v10037_v36, %v9819_v40 }
 0x501   : > { %v11138_v40 = vld [vmem:[#allocation83_spill] sm:$0xff] }
 0x503   : > { %5297 = vmatpush1.bf16.msra.mxu1 %v6913_v15  ;;  %v6915_v15 = vld [vmem:[%s10540_s3 + $0x1b8] sm:$0xff]  }
 0x504   : > { %5298 = vmatprep.subr.bf16.mxu1 %v10845_v61 }
 0x506   : > { %5132 = vmatmul.mubr.bf16.gmra.mrb[196].mxu1 %v11130_v60 }
 0x507   : > { %5139 = vmatprep.mubr.bf16.mxu1 %v11134_v63  ;;  %5299 = vmatpush1.bf16.msra.mxu1 %v6914_v10  ;;  %v6916_v10 = vld [vmem:[%s10540_s3 + $0x1c0] sm:$0xff]  }
 0x508   : > { %5300 = vmatprep.subr.bf16.mxu1 %v10845_v61  ;;  %v11135_v63 = vld [vmem:[#allocation46_spill] sm:$0xff] }
 0x509   : > { %v4910_v60 = vpop.f32.mrb[144].mxu1  ;;  %v6166_v34 = vpack.c.bf16 %v11135_v63, %v10888_v57 }
 0x50a   : > { %v4911_v7 = vpop.f32.mrb[145].mxu1 }
 0x50b   : > { %v4912_v26 = vpop.f32.mrb[146].mxu1  ;;  %5301 = vmatpush1.bf16.msra.mxu1 %v6915_v15  ;;  %v11136_v7 = vld [vmem:[#allocation56_spill] sm:$0xff] }
 0x50c   : > { %v10052_v12 = vadd.f32 %v4912_v26, %v4704_v9  ;;  %v4914_v59 = vpop.f32.mrb[147].mxu1  ;;  %5302 = vmatprep.subr.bf16.mxu1 %v10845_v61  ;;  %v3649_v47 = vunpack.c.h.b16 %v11136_v7  ;;  %v6918_v26 = vld [vmem:[%s10540_s3 + $0x1d0] sm:$0xff]   ;;  %v4719_v9 = vadd.f32 %v10037_v36, %v9821_v28  ;;  %v11140_v28 = vld [vmem:[#allocation13_spill] sm:$0xff] }
 0x50e   : > { %5140 = vmatmul.mubr.bf16.gmra.mrb[64].mxu1 %v6166_v34  ;;  %v3961_v15 = vpack.c.b16 %v7221_v35, %v3649_v47  ;;  %v6919_v34 = vld [vmem:[%s10540_s3 + $0x1d8] sm:$0xff]  }
 0x50f   : > { %5146 = vmatprep.mubr.bf16.mxu1 %v3962_v19  ;;  %5303 = vmatpush1.bf16.msra.mxu1 %v6916_v10  ;;  %v6920_v19 = vld [vmem:[%s10540_s3 + $0x1e0] sm:$0xff]  }
 0x510   : > { %5304 = vmatprep.subr.bf16.mxu1 %v10845_v61 }
 0x513   : > { %5305 = vmatpush1.bf16.msra.mxu1 %v6917_v5 }
 0x514   : > { %5306 = vmatprep.subr.bf16.mxu1 %v10845_v61 }
 0x516   : > { %5147 = vmatmul.mubr.bf16.gmra.mrb[200].mxu1 %v3961_v15 }
 0x517   : > { %5153 = vmatprep.mubr.bf16.mxu1 %v11137_v31  ;;  %5307 = vmatpush1.bf16.msra.mxu1 %v6918_v26  ;;  %v11139_v26 = vld [vmem:[#allocation20_spill] sm:$0xff] }
 0x518   : > { %5308 = vmatprep.subr.bf16.mxu1 %v10845_v61  ;;  %v3478_v15 = vpack.c.bf16 %v11139_v26, %v11139_v26  ;;  %v11141_v31 = vld [vmem:[#allocation64_spill] sm:$0xff]  ;;  %v11144_v26 = vld [vmem:[#allocation11_spill] sm:$0xff] }
 0x519   : > { %v4924_v60 = vpop.f32.mrb[148].mxu1 }
 0x51a   : > { %v10076_v10 = vadd.f32 %v4924_v60, %v4716_v48  ;;  %v4926_v59 = vpop.f32.mrb[149].mxu1  ;;  %v11142_v48 = vpack.c.bf16 %v11140_v28, %v11141_v31  ;;  %v3668_v60 = vunpack.c.h.b16 %v9205_v1  ;;  %v4731_v1 = vadd.f32 %v10037_v36, %v9853_v54  ;;  %v11145_v54 = vld [vmem:[#allocation22_spill] sm:$0xff] }
 0x51b   : > { %v4927_v63 = vpop.f32.mrb[150].mxu1  ;;  %5309 = vmatpush1.bf16.msra.mxu1 %v6919_v34  ;;  %v6921_v34 = vld [vmem:[%s10540_s3 + $0x1e8] sm:$0xff]   ;;  %v6922_v59 = vld [vmem:[%s10540_s3 + $0x1f0] sm:$0xff]  }
 0x51c   : > { %v10081_v5 = vadd.f32 %v4927_v63, %v4719_v9  ;;  %v4929_v47 = vpop.f32.mrb[151].mxu1  ;;  %5310 = vmatprep.subr.bf16.mxu1 %v10845_v61  ;;  %v3671_v9 = vunpack.c.l.b16 %v3478_v15  ;;  %v11143_v63 = vld [vmem:[#allocation69_spill] sm:$0xff]  ;;  %v3667_v15 = vunpack.c.h.b16 %v11144_v26 }
 0x51d   : > { %v6172_v47 = vpack.c.bf16 %v11143_v63, %v10888_v57  ;;  %v11147_v63 = vld [vmem:[#allocation44_spill] sm:$0xff] }
 0x51e   : > { %5154 = vmatmul.mubr.bf16.gmra.mrb[72].mxu1 %v11138_v40  ;;  %v6923_v40 = vld [vmem:[%s10540_s3 + $0x1f8] sm:$0xff]  }
 0x51f   : > { %5161 = vmatprep.mubr.bf16.mxu1 %v11142_v48  ;;  %5311 = vmatpush1.bf16.msra.mxu1 %v6920_v19  ;;  %v3980_v19 = vpack.c.b16 %v3671_v9, %v3668_v60  ;;  %v3979_v9 = vpack.c.b16 %v7221_v35, %v3667_v15 }
 0x520   : > { %5312 = vmatprep.subr.bf16.mxu1 %v10845_v61 }
 0x523   : > { %5313 = vmatpush1.bf16.msra.mxu1 %v6921_v34 }
 0x524   : > { %5314 = vmatprep.subr.bf16.mxu1 %v10845_v61 }
 0x526   : > { %5162 = vmatmul.mubr.bf16.gmra.mrb[204].mxu1 %v6172_v47  ;;  %v3482_v47 = vpack.c.bf16 %v11147_v63, %v11147_v63 }
 0x527   : > { %5168 = vmatprep.mubr.bf16.mxu1 %v3980_v19  ;;  %5315 = vmatpush1.bf16.msra.mxu1 %v6922_v59  ;;  %v10114_v59 = vld [vmem:[%s10540_s3 + $0x200] sm:$0xff]   ;;  %v11148_v19 = vld [vmem:[#allocation33_spill] sm:$0xff] }
 0x528   : > { %5316 = vmatprep.subr.bf16.mxu1 %v10845_v61  ;;  %v11146_v61 = vld [vmem:[#allocation17_spill] sm:$0xff] }
 0x529   : > { %v4939_v28 = vpop.f32.mrb[152].mxu1 }
 0x52a   : > { %v10108_v31 = vadd.f32 %v4939_v28, %v4731_v1  ;;  %v4941_v48 = vpop.f32.mrb[153].mxu1  ;;  %v3686_v28 = vunpack.c.h.b16 %v11098_v23  ;;  %v11153_v23 = vld [vmem:[#allocation49_spill] sm:$0xff] }
 0x52b   : > { %v4942_v34 = vpop.f32.mrb[154].mxu1  ;;  %5317 = vmatpush1.bf16.msra.mxu1 %v6923_v40  ;;  %v11149_v40 = vld [vmem:[#allocation21_spill] sm:$0xff]  ;;  %v4748_v48 = vadd.f32 %v10037_v36, %v9871_v8  ;;  %v4760_v8 = vadd.f32 %v10037_v36, %v9880_v39 }
 0x52c   : > { %v4943_v60 = vpop.f32.mrb[155].mxu1  ;;  %6400 = vmatprep.subr.bf16.mxu1 %v10114_v59  ;;  %v11150_v1 = vpack.c.bf16 %v11148_v19, %v11149_v40  ;;  %v11152_v19 = vld [vmem:[#allocation32_spill] sm:$0xff] }
 0x52d   : > { %v3685_v40 = vunpack.c.h.b16 %v11152_v19 }
 0x52e   : > { %5169 = vmatmul.mubr.bf16.gmra.mrb[80].mxu1 %v3979_v9  ;;  %v3689_v9 = vunpack.c.l.b16 %v3482_v47 }
 0x52f   : > { %5175 = vmatprep.mubr.bf16.mxu1 %v11145_v54 }
 0x530   : > { %v3998_v63 = vpack.c.b16 %v3689_v9, %v3686_v28  ;;  %v11154_v9 = vld [vmem:[#allocation48_spill] sm:$0xff] }
 0x536   : > { %5176 = vmatmul.mubr.bf16.gmra.mrb[208].mxu1 %v11146_v61  ;;  %v11151_v61 = vld [vmem:[#allocation27_spill] sm:$0xff] }
 0x537   : > { %5183 = vmatprep.mubr.bf16.mxu1 %v11150_v1  ;;  %v6178_v52 = vpack.c.bf16 %v11151_v61, %v10888_v57  ;;  %v3997_v1 = vpack.c.b16 %v7221_v35, %v3685_v40  ;;  %v11156_v61 = vld [vmem:[#allocation39_spill] sm:$0xff] }
 0x538   : > { %v11158_v40 = vld [vmem:[#allocation71_spill] sm:$0xff] }
 0x539   : > { %v4954_v15 = vpop.f32.mrb[156].mxu1  ;;  %v3486_v39 = vpack.c.bf16 %v11158_v40, %v11158_v40  ;;  %v11161_v40 = vld [vmem:[#allocation65_spill] sm:$0xff] }
 0x53a   : > { %v4955_v34 = vpop.f32.mrb[157].mxu1  ;;  %v4763_v15 = vadd.f32 %v10037_v36, %v9882_v25  ;;  %v11159_v25 = vld [vmem:[#allocation52_spill] sm:$0xff] }
 0x53b   : > { %v4956_v60 = vpop.f32.mrb[158].mxu1 }
 0x53c   : > { %v10127_v6 = vadd.f32 %v4956_v60, %v4748_v48  ;;  %v4958_v54 = vpop.f32.mrb[159].mxu1 }
 0x53d   : > { %v11155_v54 = vld [vmem:[#allocation63_spill] sm:$0xff] }
 0x53e   : > { %5184 = vmatmul.mubr.bf16.gmra.mrb[88].mxu1 %v6178_v52 }
 0x53f   : > { %5190 = vmatprep.mubr.bf16.mxu1 %v3998_v63  ;;  %v11157_v63 = vpack.c.bf16 %v11155_v54, %v11156_v61 }
 0x546   : > { %5191 = vmatmul.mubr.bf16.gmra.mrb[212].mxu1 %v3997_v1  ;;  %v3704_v1 = vunpack.c.h.b16 %v9419_v33 }
 0x547   : > { %5197 = vmatprep.mubr.bf16.mxu1 %v11153_v23  ;;  %v3707_v23 = vunpack.c.l.b16 %v3486_v39  ;;  %v11162_v39 = vld [vmem:[#allocation70_spill] sm:$0xff] }
 0x549   : > { %v4968_v47 = vpop.f32.mrb[160].mxu1 }
 0x54a   : > { %v10138_v48 = vadd.f32 %v4968_v47, %v4760_v8  ;;  %v4970_v34 = vpop.f32.mrb[161].mxu1  ;;  %v6184_v8 = vpack.c.bf16 %v11159_v25, %v10888_v57  ;;  %v4016_v47 = vpack.c.b16 %v3707_v23, %v3704_v1  ;;  %v11163_v1 = vld [vmem:[#allocation93_spill] sm:$0xff] }
 0x54b   : > { %v4971_v28 = vpop.f32.mrb[162].mxu1  ;;  %v11160_v34 = vld [vmem:[#allocation62_spill] sm:$0xff]  ;;  %v3490_v23 = vpack.c.bf16 %v11163_v1, %v11163_v1  ;;  %v11164_v25 = vld [vmem:[#allocation89_spill] sm:$0xff] }
 0x54c   : > { %v10140_v52 = vadd.f32 %v4971_v28, %v4763_v15  ;;  %v4973_v60 = vpop.f32.mrb[163].mxu1  ;;  %v4775_v15 = vadd.f32 %v10037_v36, %v9898_v30  ;;  %v3703_v28 = vunpack.c.h.b16 %v11160_v34  ;;  %v11165_v30 = vld [vmem:[#allocation74_spill] sm:$0xff] }
 0x54e   : > { %5198 = vmatmul.mubr.bf16.gmra.mrb[96].mxu1 %v11154_v9  ;;  %v4015_v33 = vpack.c.b16 %v7221_v35, %v3703_v28 }
 0x54f   : > { %5205 = vmatprep.mubr.bf16.mxu1 %v11157_v63 }
 0x556   : > { %5206 = vmatmul.mubr.bf16.gmra.mrb[216].mxu1 %v6184_v8  ;;  %v11166_v8 = vpack.c.bf16 %v11164_v25, %v11165_v30  ;;  %v11168_v25 = vld [vmem:[#allocation88_spill] sm:$0xff] }
 0x557   : > { %5212 = vmatprep.mubr.bf16.mxu1 %v4016_v47  ;;  %v3721_v30 = vunpack.c.h.b16 %v11168_v25 }
 0x559   : > { %v4983_v60 = vpop.f32.mrb[164].mxu1 }
 0x55a   : > { %v10154_v9 = vadd.f32 %v4983_v60, %v4775_v15  ;;  %v4985_v54 = vpop.f32.mrb[165].mxu1  ;;  %v3722_v15 = vunpack.c.h.b16 %v11107_v56  ;;  %v4792_v60 = vadd.f32 %v10037_v36, %v9915_v13  ;;  %v11169_v56 = vld [vmem:[#allocation95_spill] sm:$0xff]  ;;  %v4804_v13 = vadd.f32 %v10037_v36, %v9924_v4 }
 0x55b   : > { %v4986_v61 = vpop.f32.mrb[166].mxu1 }
 0x55c   : > { %v4987_v63 = vpop.f32.mrb[167].mxu1  ;;  %v3725_v61 = vunpack.c.l.b16 %v3490_v23 }
 0x55e   : > { %5213 = vmatmul.mubr.bf16.gmra.mrb[104].mxu1 %v4015_v33  ;;  %v4034_v1 = vpack.c.b16 %v3725_v61, %v3722_v15 }
 0x55f   : > { %5219 = vmatprep.mubr.bf16.mxu1 %v11161_v40  ;;  %v11167_v40 = vld [vmem:[#allocation6_spill] sm:$0xff] }
 0x566   : > { %5220 = vmatmul.mubr.bf16.gmra.mrb[220].mxu1 %v11162_v39  ;;  %v6190_v39 = vpack.c.bf16 %v11167_v40, %v10888_v57  ;;  %v11171_v40 = vpack.c.bf16 %v9629_v44, %v9550_v58 }
 0x567   : > { %5227 = vmatprep.mubr.bf16.mxu1 %v11166_v8  ;;  %v4033_v8 = vpack.c.b16 %v7221_v35, %v3721_v30 }
 0x569   : > { %v4998_v47 = vpop.f32.mrb[168].mxu1 }
 0x56a   : > { %v4999_v54 = vpop.f32.mrb[169].mxu1  ;;  %v4807_v47 = vadd.f32 %v10037_v36, %v9926_v29  ;;  %v11173_v29 = vld [vmem:[#allocation96_spill] sm:$0xff] }
 0x56b   : > { %v5000_v28 = vpop.f32.mrb[170].mxu1 }
 0x56c   : > { %v10167_v63 = vadd.f32 %v5000_v28, %v4792_v60  ;;  %v5002_v33 = vpop.f32.mrb[171].mxu1 }
 0x56d   : > { %v11170_v33 = vld [vmem:[#allocation94_spill] sm:$0xff] }
 0x56e   : > { %5228 = vmatmul.mubr.bf16.gmra.mrb[112].mxu1 %v6190_v39  ;;  %v11172_v39 = vld [vmem:[#allocation103_spill] sm:$0xff] }
 0x56f   : > { %5234 = vmatprep.mubr.bf16.mxu1 %v4034_v1  ;;  %v3494_v4 = vpack.c.bf16 %v11172_v39, %v11172_v39  ;;  %v3740_v1 = vunpack.c.h.b16 %v9635_v49  ;;  %v11177_v39 = vpack.c.bf16 %v9740_v2, %v9731_v32  ;;  %v11179_v2 = vld [vmem:[#allocation107_spill] sm:$0xff] }
 0x571   : > { %v3743_v30 = vunpack.c.l.b16 %v3494_v4 }
 0x576   : > { %5235 = vmatmul.mubr.bf16.gmra.mrb[224].mxu1 %v4033_v8  ;;  %v6196_v8 = vpack.c.bf16 %v11173_v29, %v10888_v57 }
 0x577   : > { %5241 = vmatprep.mubr.bf16.mxu1 %v11169_v56  ;;  %v4052_v56 = vpack.c.b16 %v3743_v30, %v3740_v1  ;;  %v11178_v30 = vld [vmem:[#allocation108_spill] sm:$0xff] }
 0x578   : > { %v3758_v29 = vunpack.c.h.b16 %v11178_v30 }
 0x579   : > { %v5012_v23 = vpop.f32.mrb[172].mxu1 }
 0x57a   : > { %v10178_v60 = vadd.f32 %v5012_v23, %v4804_v13  ;;  %v5014_v54 = vpop.f32.mrb[173].mxu1  ;;  %v4819_v13 = vadd.f32 %v10037_v36, %v9942_v43  ;;  %v11174_v23 = vld [vmem:[#allocation100_spill] sm:$0xff]  ;;  %v11176_v43 = vld [vmem:[#allocation102_spill] sm:$0xff] }
 0x57b   : > { %v5015_v15 = vpop.f32.mrb[174].mxu1 }
 0x57c   : > { %v10180_v28 = vadd.f32 %v5015_v15, %v4807_v47  ;;  %v5017_v61 = vpop.f32.mrb[175].mxu1  ;;  %v3739_v47 = vunpack.c.h.b16 %v11174_v23 }
 0x57e   : > { %5242 = vmatmul.mubr.bf16.gmra.mrb[120].mxu1 %v11170_v33  ;;  %v4051_v49 = vpack.c.b16 %v7221_v35, %v3739_v47  ;;  %v11175_v33 = vrot.slane %v9695_v62, 1 }
 0x57f   : > { %5249 = vmatprep.mubr.bf16.mxu1 %v11171_v40 }
 0x580   : > { %v10203_v40 = vsel %vm637_vm1, %v7521_v3, %v11175_v33 }
 0x581   : > { %v3498_v4 = vpack.c.bf16 %v10203_v40, %v10203_v40 }
 0x583   : > { %v3761_v20 = vunpack.c.l.b16 %v3498_v4  ;;  %v11180_v4 = vld [vmem:[#allocation38_spill] sm:$0xff] }
 0x585   : > { %v4070_v32 = vpack.c.b16 %v3761_v20, %v3758_v29  ;;  %v4863_v29 = vadd.f32 %v10037_v36, %v10015_v14  ;;  %v6931_v14 = vld [vmem:[%s10540_s3 + $0x228] sm:$0xff]  }
 0x586   : > { %5250 = vmatmul.mubr.bf16.gmra.mrb[228].mxu1 %v6196_v8 }
 0x587   : > { %5256 = vmatprep.mubr.bf16.mxu1 %v4052_v56 }
 0x589   : > { %v5027_v54 = vpop.f32.mrb[176].mxu1 }
 0x58a   : > { %v10194_v58 = vadd.f32 %v5027_v54, %v4819_v13  ;;  %v5029_v44 = vpop.f32.mrb[177].mxu1  ;;  %v6202_v54 = vpack.c.bf16 %v9695_v62, %v10888_v57 }
 0x58b   : > { %v5030_v15 = vpop.f32.mrb[178].mxu1  ;;  %v3757_v44 = vunpack.c.h.b16 %v11179_v2 }
 0x58c   : > { %v5031_v61 = vpop.f32.mrb[179].mxu1 }
 0x58d   : > { %v4069_v15 = vpack.c.b16 %v7221_v35, %v3757_v44  ;;  %v11181_v35 = vld [vmem:[#allocation80_spill] sm:$0xff] }
 0x58e   : > { %5257 = vmatmul.mubr.bf16.gmra.mrb[128].mxu1 %v4051_v49  ;;  %v4851_v49 = vadd.f32 %v10037_v36, %v9982_v42  ;;  %v6928_v42 = vld [vmem:[%s10540_s3 + $0x210] sm:$0xff]  }
 0x58f   : > { %5263 = vmatprep.mubr.bf16.mxu1 %v9691_v17  ;;  %v4836_v17 = vadd.f32 %v10037_v36, %v9966_v38  ;;  %v4848_v38 = vadd.f32 %v10037_v36, %v9980_v0  ;;  %v6927_v0 = vld [vmem:[%s10540_s3 + $0x208] sm:$0xff]   ;;  %v6932_v44 = vld [vmem:[%s10540_s3 + $0x230] sm:$0xff]  }
 0x596   : > { %5264 = vmatmul.mubr.bf16.gmra.mrb[232].mxu1 %v11176_v43 }
 0x597   : > { %5271 = vmatprep.mubr.bf16.mxu1 %v11177_v39 }
 0x599   : > { %v5042_v1 = vpop.f32.mrb[180].mxu1 }
 0x59a   : > { %v5043_v8 = vpop.f32.mrb[181].mxu1  ;;  %v11183_v1 = vld [vmem:[#allocation61_spill] sm:$0xff] }
 0x59b   : > { %v5044_v56 = vpop.f32.mrb[182].mxu1 }
 0x59c   : > { %v10214_v13 = vadd.f32 %v5044_v56, %v4836_v17  ;;  %v5046_v47 = vpop.f32.mrb[183].mxu1 }
 0x59e   : > { %5272 = vmatmul.mubr.bf16.gmra.mrb[136].mxu1 %v6202_v54  ;;  %v6930_v54 = vld [vmem:[%s10540_s3 + $0x220] sm:$0xff]  }
 0x59f   : > { %5278 = vmatprep.mubr.bf16.mxu1 %v4070_v32  ;;  %v11184_v32 = vld [vmem:[#allocation45_spill] sm:$0xff] }
 0x5a6   : > { %5279 = vmatmul.mubr.bf16.gmra.mrb[236].mxu1 %v4069_v15  ;;  %v11185_v15 = vld [vmem:[#allocation50_spill] sm:$0xff] }
 0x5a7   : > { %5318 = vmatprep.mubr.bf16.mxu1 %v11128_v27  ;;  %v11182_v27 = vld [vmem:[#allocation37_spill] sm:$0xff] }
 0x5a9   : > { %v5056_v61 = vpop.f32.mrb[184].mxu1 }
 0x5aa   : > { %v10225_v33 = vadd.f32 %v5056_v61, %v4848_v38  ;;  %v5058_v57 = vpop.f32.mrb[185].mxu1  ;;  %v11186_v38 = vld [vmem:[#allocation54_spill] sm:$0xff] }
 0x5ab   : > { %v5059_v62 = vpop.f32.mrb[186].mxu1 }
 0x5ac   : > { %v10227_v43 = vadd.f32 %v5059_v62, %v4851_v49  ;;  %v5061_v39 = vpop.f32.mrb[187].mxu1 }
 0x5ae   : > { %5319 = vmatmul.mubr.bf16.vlgmr.msra.gmra.mrb[48].mxu1 %v11180_v4  ;;  %v11187_v4 = vld [vmem:[#allocation55_spill] sm:$0xff] }
 0x5af   : > { %5326 = vmatprep.mubr.bf16.mxu1 %v11181_v35  ;;  %6408 = vmatpush3.bf16.msra.mxu1 %v10114_v59  ;;  %v6929_v59 = vld [vmem:[%s10540_s3 + $0x218] sm:$0xff]   ;;  %v11188_v35 = vld [vmem:[#allocation72_spill] sm:$0xff] }
 0x5b0   : > { %6401 = vmatprep.subr.bf16.mxu1 %v6927_v0 }
 0x5b3   : > { %6409 = vmatpush3.bf16.msra.mxu1 %v6927_v0  ;;  %v11189_v0 = vld [vmem:[#allocation10_spill] sm:$0xff] }
 0x5b4   : > { %6402 = vmatprep.subr.bf16.mxu1 %v6928_v42 }
 0x5b6   : > { %5327 = vmatmul.mubr.bf16.gmra.mrb[240].mxu1 %v11182_v27 }
 0x5b7   : > { %5333 = vmatprep.mubr.bf16.mxu1 %v11183_v1  ;;  %6410 = vmatpush3.bf16.msra.mxu1 %v6928_v42 }
 0x5b8   : > { %6403 = vmatprep.subr.bf16.mxu1 %v6929_v59 }
 0x5b9   : > { %v5071_v17 = vpop.f32.mrb[188].mxu1 }
 0x5ba   : > { %v10245_v8 = vadd.f32 %v5071_v17, %v4863_v29  ;;  %v5073_v56 = vpop.f32.mrb[189].mxu1  ;;  %v11190_v17 = vld [vmem:[#allocation14_spill] sm:$0xff] }
 0x5bb   : > { %v5074_v20 = vpop.f32.mrb[190].mxu1  ;;  %6411 = vmatpush3.bf16.msra.mxu1 %v6929_v59  ;;  %v11191_v56 = vld [vmem:[#allocation15_spill] sm:$0xff] }
 0x5bc   : > { %v5075_v47 = vpop.f32.mrb[191].mxu1  ;;  %6404 = vmatprep.subr.bf16.mxu1 %v6930_v54  ;;  %v11192_v20 = vld [vmem:[#allocation18_spill] sm:$0xff] }
 0x5bd   : > { %v11193_v47 = vld [vmem:[#allocation25_spill] sm:$0xff] }
 0x5be   : > { %5334 = vmatmul.mubr.bf16.gmra.mrb[56].mxu1 %v11184_v32 }
 0x5bf   : > { %5340 = vmatprep.mubr.bf16.mxu1 %v11136_v7  ;;  %6412 = vmatpush3.bf16.msra.mxu1 %v6930_v54  ;;  %v6933_v7 = vld [vmem:[%s10540_s3 + $0x238] sm:$0xff]  }
 0x5c0   : > { %6405 = vmatprep.subr.bf16.mxu1 %v6931_v14 }
 0x5c3   : > { %6413 = vmatpush3.bf16.msra.mxu1 %v6931_v14 }
 0x5c4   : > { %6406 = vmatprep.subr.bf16.mxu1 %v6932_v44 }
 0x5c6   : > { %5341 = vmatmul.mubr.bf16.gmra.mrb[244].mxu1 %v11185_v15 }
 0x5c7   : > { %5348 = vmatprep.mubr.bf16.mxu1 %v11186_v38  ;;  %6414 = vmatpush3.bf16.msra.mxu1 %v6932_v44  ;;  %v11194_v44 = vld [vmem:[#allocation30_spill] sm:$0xff] }
 0x5c8   : > { %6407 = vmatprep.subr.bf16.mxu1 %v6933_v7 }
 0x5c9   : > { %v5119_v61 = vpop.f32.mrb[192].mxu1 }
 0x5ca   : > { %v5120_v49 = vpop.f32.mrb[193].mxu1 }
 0x5cb   : > { %v5121_v57 = vpop.f32.mrb[194].mxu1  ;;  %6415 = vmatpush3.bf16.msra.mxu1 %v6933_v7 }
 0x5cc   : > { %v10264_v62 = vadd.f32 %v5121_v57, %v10052_v12  ;;  %v5123_v39 = vpop.f32.mrb[195].mxu1  ;;  %v11197_v57 = vld [vmem:[#allocation57_spill] sm:$0xff] }
 0x5cd   : > { %v11198_v39 = vld [vmem:[#allocation58_spill] sm:$0xff] }
 0x5ce   : > { %5349 = vmatmul.mubr.bf16.gmra.mrb[64].mxu1 %v11187_v4 }
 0x5cf   : > { %5355 = vmatprep.mubr.bf16.mxu1 %v11188_v35 }
 0x5d6   : > { %5356 = vmatmul.mubr.bf16.gmra.mrb[248].mxu1 %v11189_v0 }
 0x5d7   : > { %5362 = vmatprep.mubr.bf16.mxu1 %v11144_v26 }
 0x5d9   : > { %v5133_v42 = vpop.f32.mrb[196].mxu1 }
 0x5da   : > { %v10271_v27 = vadd.f32 %v5133_v42, %v10076_v10  ;;  %v5135_v1 = vpop.f32.mrb[197].mxu1  ;;  %v11199_v42 = vld [vmem:[#allocation66_spill] sm:$0xff] }
 0x5db   : > { %v5136_v29 = vpop.f32.mrb[198].mxu1  ;;  %v11200_v1 = vld [vmem:[#allocation73_spill] sm:$0xff] }
 0x5dc   : > { %v10274_v59 = vadd.f32 %v5136_v29, %v10081_v5  ;;  %v5138_v12 = vpop.f32.mrb[199].mxu1  ;;  %v11195_v5 = vld [vmem:[#allocation7_spill] sm:$0xff]  ;;  %v11201_v29 = vld [vmem:[#allocation68_spill] sm:$0xff] }
 0x5de   : > { %5363 = vmatmul.mubr.bf16.gmra.mrb[72].mxu1 %v11190_v17 }
 0x5df   : > { %5370 = vmatprep.mubr.bf16.mxu1 %v11191_v56 }
 0x5e6   : > { %5371 = vmatmul.mubr.bf16.gmra.mrb[252].mxu1 %v11192_v20  ;;  %v11202_v20 = vld [vmem:[#allocation87_spill] sm:$0xff] }
 0x5e7   : > { %5377 = vmatprep.mubr.bf16.mxu1 %v11193_v47 }
 0x5e9   : > { %v5148_v54 = vpop.f32.mrb[200].mxu1 }
 0x5ea   : > { %v10281_v26 = vadd.f32 %v5148_v54, %v10108_v31  ;;  %v5150_v10 = vpop.f32.mrb[201].mxu1  ;;  %v11196_v31 = vld [vmem:[#allocation43_spill] sm:$0xff] }
 0x5eb   : > { %v5151_v32 = vpop.f32.mrb[202].mxu1 }
 0x5ec   : > { %v5152_v14 = vpop.f32.mrb[203].mxu1 }
 0x5ed   : > { %v11205_v14 = vld [vmem:[#allocation97_spill] sm:$0xff] }
 0x5ee   : > { %5378 = vmatmul.mubr.bf16.gmra.mrb[80].mxu1 %v11194_v44  ;;  %v11206_v44 = vld [vmem:[#allocation99_spill] sm:$0xff] }
 0x5ef   : > { %5384 = vmatprep.mubr.bf16.mxu1 %v11152_v19 }
 0x5f6   : > { %5385 = vmatmul.mubr.bf16.gmra.mrb[0].mxu1 %v11095_v22 }
 0x5f7   : > { %5392 = vmatprep.mubr.bf16.mxu1 %v11195_v5 }
 0x5f9   : > { %v5163_v15 = vpop.f32.mrb[204].mxu1 }
 0x5fa   : > { %v5164_v38 = vpop.f32.mrb[205].mxu1 }
 0x5fb   : > { %v5165_v7 = vpop.f32.mrb[206].mxu1 }
 0x5fc   : > { %v10288_v61 = vadd.f32 %v5165_v7, %v10127_v6  ;;  %v5167_v49 = vpop.f32.mrb[207].mxu1  ;;  %v11207_v7 = vld [vmem:[#allocation101_spill] sm:$0xff] }
 0x5fd   : > { %v11208_v49 = vld [vmem:[#allocation104_spill] sm:$0xff] }
 0x5fe   : > { %5393 = vmatmul.mubr.bf16.gmra.mrb[88].mxu1 %v11196_v31  ;;  %v11209_v31 = vld [vmem:[#allocation105_spill] sm:$0xff] }
 0x5ff   : > { %5399 = vmatprep.mubr.bf16.mxu1 %v11197_v57 }
 0x606   : > { %5400 = vmatmul.mubr.bf16.gmra.mrb[4].mxu1 %v11198_v39 }
 0x607   : > { %5406 = vmatprep.mubr.bf16.mxu1 %v11160_v34 }
 0x609   : > { %v5177_v19 = vpop.f32.mrb[208].mxu1 }
 0x60a   : > { %v10295_v22 = vadd.f32 %v5177_v19, %v10138_v48  ;;  %v5179_v4 = vpop.f32.mrb[209].mxu1 }
 0x60b   : > { %v5180_v35 = vpop.f32.mrb[210].mxu1  ;;  %v11210_v4 = vld [vmem:[#allocation106_spill] sm:$0xff] }
 0x60c   : > { %v10298_v0 = vadd.f32 %v5180_v35, %v10140_v52  ;;  %v5182_v6 = vpop.f32.mrb[211].mxu1 }
 0x60e   : > { %5407 = vmatmul.mubr.bf16.gmra.mrb[96].mxu1 %v9416_v51  ;;  %v11203_v51 = vld [vmem:[#allocation91_spill] sm:$0xff] }
 0x60f   : > { %5414 = vmatprep.mubr.bf16.mxu1 %v11199_v42 }
 0x616   : > { %5415 = vmatmul.mubr.bf16.gmra.mrb[8].mxu1 %v11200_v1 }
 0x617   : > { %5421 = vmatprep.mubr.bf16.mxu1 %v11201_v29  ;;  %v11212_v29 = vld [vmem:[#allocation8_spill] sm:$0xff] }
 0x619   : > { %v5192_v12 = vpop.f32.mrb[212].mxu1 }
 0x61a   : > { %v10305_v34 = vadd.f32 %v5192_v12, %v10154_v9  ;;  %v5194_v48 = vpop.f32.mrb[213].mxu1  ;;  %v11204_v9 = vld [vmem:[#allocation92_spill] sm:$0xff]  ;;  %v11213_v12 = vld [vmem:[#allocation9_spill] sm:$0xff] }
 0x61b   : > { %v5195_v17 = vpop.f32.mrb[214].mxu1 }
 0x61c   : > { %v5196_v56 = vpop.f32.mrb[215].mxu1 }
 0x61e   : > { %5422 = vmatmul.mubr.bf16.gmra.mrb[104].mxu1 %v11202_v20 }
 0x61f   : > { %5428 = vmatprep.mubr.bf16.mxu1 %v11168_v25 }
 0x626   : > { %5429 = vmatmul.mubr.bf16.gmra.mrb[12].mxu1 %v9526_v55 }
 0x627   : > { %5436 = vmatprep.mubr.bf16.mxu1 %v11203_v51 }
 0x629   : > { %v5207_v52 = vpop.f32.mrb[216].mxu1 }
 0x62a   : > { %v5208_v47 = vpop.f32.mrb[217].mxu1 }
 0x62b   : > { %v5209_v54 = vpop.f32.mrb[218].mxu1  ;;  %v11215_v47 = vld [vmem:[#allocation76_spill] sm:$0xff] }
 0x62c   : > { %v10312_v10 = vadd.f32 %v5209_v54, %v10167_v63  ;;  %v5211_v32 = vpop.f32.mrb[219].mxu1 }
 0x62e   : > { %5437 = vmatmul.mubr.bf16.gmra.mrb[112].mxu1 %v11204_v9 }
 0x62f   : > { %5443 = vmatprep.mubr.bf16.mxu1 %v11205_v14 }
 0x636   : > { %5444 = vmatmul.mubr.bf16.gmra.mrb[16].mxu1 %v11206_v44  ;;  %v11216_v44 = vld [vmem:[#allocation16_spill] sm:$0xff] }
 0x637   : > { %5450 = vmatprep.mubr.bf16.mxu1 %v11174_v23 }
 0x639   : > { %v5221_v25 = vpop.f32.mrb[220].mxu1 }
 0x63a   : > { %v10319_v55 = vadd.f32 %v5221_v25, %v10178_v60  ;;  %v5223_v5 = vpop.f32.mrb[221].mxu1 }
 0x63b   : > { %v5224_v15 = vpop.f32.mrb[222].mxu1  ;;  %v6935_v5 = vld [vmem:[%s7173_s25 + $0x8] sm:$0xff] }
 0x63c   : > { %v10322_v38 = vadd.f32 %v5224_v15, %v10180_v28  ;;  %v5226_v63 = vpop.f32.mrb[223].mxu1 }
 0x63e   : > { %5451 = vmatmul.mubr.bf16.gmra.mrb[120].mxu1 %v9632_v46  ;;  %v11211_v46 = vmov 0.0|0.0  }
 0x63f   : > { %5458 = vmatprep.mubr.bf16.mxu1 %v11207_v7 }
 0x646   : > { %5459 = vmatmul.mubr.bf16.gmra.mrb[20].mxu1 %v11208_v49 }
 0x647   : > { %5465 = vmatprep.mubr.bf16.mxu1 %v11209_v31 }
 0x649   : > { %v5236_v57 = vpop.f32.mrb[224].mxu1 }
 0x64a   : > { %v10329_v23 = vadd.f32 %v5236_v57, %v10194_v58  ;;  %v5238_v60 = vpop.f32.mrb[225].mxu1  ;;  %v6204_v58 = vpack.c.bf16 %v10968_v41, %v9955_v16  ;;  %v6206_v41 = vpack.c.bf16 %v7521_v3, %v10203_v40  ;;  %v11214_v16 = vld [vmem:[#allocation29_spill] sm:$0xff] }
 0x64b   : > { %v5239_v39 = vpop.f32.mrb[226].mxu1  ;;  %v11217_v60 = vld [vmem:[#allocation31_spill] sm:$0xff] }
 0x64c   : > { %v5240_v19 = vpop.f32.mrb[227].mxu1 }
 0x64d   : > { %v6936_v19 = vld [vmem:[%s7173_s25 + $0x10] sm:$0xff] }
 0x64e   : > { %5466 = vmatmul.mubr.bf16.gmra.mrb[128].mxu1 %v11210_v4 }
 0x64f   : > { %5472 = vmatprep.mubr.bf16.mxu1 %v11179_v2 }
 0x656   : > { %5473 = vmatmul.mubr.bf16.gmra.mrb[24].mxu1 %v9743_v18 }
 0x657   : > { %5480 = vmatprep.mubr.bf16.mxu1 %v11211_v46 }
 0x659   : > { %v5251_v28 = vpop.f32.mrb[228].mxu1 }
 0x65a   : > { %v5252_v35 = vpop.f32.mrb[229].mxu1 }
 0x65b   : > { %v5253_v6 = vpop.f32.mrb[230].mxu1 }
 0x65c   : > { %v10336_v42 = vadd.f32 %v5253_v6, %v10214_v13  ;;  %v5255_v1 = vpop.f32.mrb[231].mxu1 }
 0x65d   : > { %v11218_v1 = vld [vmem:[#allocation78_spill] sm:$0xff] }
 0x65e   : > { %5481 = vmatmul.mubr.bf16.gmra.mrb[136].mxu1 %v6204_v58 }
 0x65f   : > { %5487 = vmatprep.mubr.bf16.mxu1 %v11212_v29 }
 0x666   : > { %5488 = vmatmul.mubr.bf16.gmra.mrb[28].mxu1 %v11213_v12  ;;  %v6937_v12 = vld [vmem:[%s7173_s25 + $0x18] sm:$0xff] }
 0x667   : > { %6392 = vmatprep.mubr.bf16.mxu1 %v9976_v50 }
 0x669   : > { %v5265_v18 = vpop.f32.mrb[232].mxu1 }
 0x66a   : > { %v10344_v2 = vadd.f32 %v5265_v18, %v10225_v33  ;;  %v5267_v48 = vpop.f32.mrb[233].mxu1 }
 0x66b   : > { %v5268_v13 = vpop.f32.mrb[234].mxu1 }
 0x66c   : > { %v10347_v17 = vadd.f32 %v5268_v13, %v10227_v43  ;;  %v5270_v56 = vpop.f32.mrb[235].mxu1 }
 0x66e   : > { %6393 = vmatmul.mubr.bf16.vlgmr.msra.gmra.mrb[32].mxu1 %v11178_v30 }
 0x66f   : > { %6396 = vmatprep.mubr.bf16.mxu1 %v6206_v41  ;;  %v11219_v41 = vld [vmem:[#allocation19_spill] sm:$0xff] }
 0x676   : > { %6397 = vmatmul.mubr.bf16.gmra.mrb[36].mxu1 %v11214_v16 }
 0x679   : > { %v5280_v50 = vpop.f32.mrb[236].mxu1 }
 0x67a   : > { %v10354_v33 = vadd.f32 %v5280_v50, %v10245_v8  ;;  %v5282_v20 = vpop.f32.mrb[237].mxu1  ;;  %v6934_v8 = vld [vmem:[%s7173_s25] sm:$0xff] }
 0x67b   : > { %v5283_v51 = vpop.f32.mrb[238].mxu1 }
 0x67c   : > { %v5284_v52 = vpop.f32.mrb[239].mxu1  ;;  %v6938_v51 = vld [vmem:[%s7173_s25 + $0x20] sm:$0xff] }
 0x681   : > { %v5320_v43 = vpop.f32.mrb[48].mxu1 }
 0x682   : > { %v6432_v3 = vadd.f32 %v10037_v36, %v5320_v43  ;;  %v5322_v40 = vpop.f32.mrb[49].mxu1  ;;  %v11220_v43 = vld [vmem:[#allocation23_spill] sm:$0xff] }
 0x683   : > { %v5323_v30 = vpop.f32.mrb[50].mxu1  ;;  %v6939_v40 = vld [vmem:[%s7173_s25 + $0x28] sm:$0xff] }
 0x684   : > { %v5530_v54 = vadd.f32 %v6432_v3, %v11215_v47  ;;  %v6433_v32 = vadd.f32 %v10037_v36, %v5323_v30  ;;  %v5325_v9 = vpop.f32.mrb[51].mxu1 }
 0x686   : > { %v5704_v14 = vadd.f32 %v6934_v8, %v5530_v54  ;;  %v5533_v25 = vadd.f32 %v6433_v32, %v11216_v44  ;;  %v6940_v8 = vld [vmem:[%s7173_s25 + $0x30] sm:$0xff] }
 0x688   : > { %5736 = vst [vmem:[%s10364_s7] sm:$0xff] %v5704_v14  ;;  %v5705_v15 = vadd.f32 %v6935_v5, %v5533_v25 }
 0x689   : > { %v5328_v63 = vpop.f32.mrb[240].mxu1 }
 0x68a   : > { %5737 = vst [vmem:[%s10364_s7 + $0x8] sm:$0xff] %v5705_v15  ;;  %v5329_v7 = vpop.f32.mrb[241].mxu1 }
 0x68b   : > { %v5330_v49 = vpop.f32.mrb[242].mxu1 }
 0x68c   : > { %v5331_v31 = vadd.f32 %v5330_v49, %v10264_v62  ;;  %v5332_v57 = vpop.f32.mrb[243].mxu1  ;;  %v6941_v49 = vld [vmem:[%s7173_s25 + $0x38] sm:$0xff] }
 0x68e   : > { %v5540_v39 = vadd.f32 %v11217_v60, %v5331_v31 }
 0x690   : > { %v5706_v4 = vadd.f32 %v6936_v19, %v5540_v39 }
 0x691   : > { %v5335_v46 = vpop.f32.mrb[56].mxu1 }
 0x692   : > { %5738 = vst [vmem:[%s10364_s7 + $0x10] sm:$0xff] %v5706_v4  ;;  %v6434_v28 = vadd.f32 %v10037_v36, %v5335_v46  ;;  %v5337_v35 = vpop.f32.mrb[57].mxu1  ;;  %v6942_v46 = vld [vmem:[%s7173_s25 + $0x40] sm:$0xff] }
 0x693   : > { %v5338_v6 = vpop.f32.mrb[58].mxu1  ;;  %v6943_v35 = vld [vmem:[%s7173_s25 + $0x48] sm:$0xff] }
 0x694   : > { %v5545_v58 = vadd.f32 %v6434_v28, %v11218_v1  ;;  %v5339_v29 = vpop.f32.mrb[59].mxu1 }
 0x696   : > { %v5707_v18 = vadd.f32 %v6937_v12, %v5545_v58 }
 0x698   : > { %5739 = vst [vmem:[%s10364_s7 + $0x18] sm:$0xff] %v5707_v18 }
 0x699   : > { %v5342_v62 = vpop.f32.mrb[244].mxu1 }
 0x69a   : > { %v5343_v48 = vadd.f32 %v5342_v62, %v10271_v27  ;;  %v5344_v13 = vpop.f32.mrb[245].mxu1  ;;  %v6944_v62 = vld [vmem:[%s7173_s25 + $0x50] sm:$0xff] }
 0x69b   : > { %v5345_v56 = vpop.f32.mrb[246].mxu1 }
 0x69c   : > { %v5552_v16 = vadd.f32 %v11219_v41, %v5343_v48  ;;  %v5346_v50 = vadd.f32 %v5345_v56, %v10274_v59  ;;  %v5347_v20 = vpop.f32.mrb[247].mxu1 }
 0x69e   : > { %v5708_v52 = vadd.f32 %v6938_v51, %v5552_v16  ;;  %v5555_v3 = vadd.f32 %v11220_v43, %v5346_v50  ;;  %v11221_v16 = vld [vmem:[#allocation34_spill] sm:$0xff]  ;;  %v6945_v51 = vld [vmem:[%s7173_s25 + $0x58] sm:$0xff] }
 0x6a0   : > { %5740 = vst [vmem:[%s10364_s7 + $0x20] sm:$0xff] %v5708_v52  ;;  %v5709_v30 = vadd.f32 %v6939_v40, %v5555_v3  ;;  %v11222_v40 = vld [vmem:[#allocation81_spill] sm:$0xff] }
 0x6a1   : > { %v5350_v47 = vpop.f32.mrb[64].mxu1 }
 0x6a2   : > { %5741 = vst [vmem:[%s10364_s7 + $0x28] sm:$0xff] %v5709_v30  ;;  %v5351_v27 = vpop.f32.mrb[65].mxu1 }
 0x6a3   : > { %v5352_v54 = vpop.f32.mrb[66].mxu1 }
 0x6a4   : > { %v6435_v32 = vadd.f32 %v10037_v36, %v5352_v54  ;;  %v5354_v9 = vpop.f32.mrb[67].mxu1  ;;  %v6946_v54 = vld [vmem:[%s7173_s25 + $0x60] sm:$0xff] }
 0x6a5   : > { %v11223_v9 = vld [vmem:[#allocation42_spill] sm:$0xff] }
 0x6a6   : > { %v5562_v59 = vadd.f32 %v6435_v32, %v9876_v37 }
 0x6a8   : > { %v5710_v14 = vadd.f32 %v6940_v8, %v5562_v59  ;;  %v6947_v8 = vld [vmem:[%s7173_s25 + $0x68] sm:$0xff] }
 0x6a9   : > { %v5357_v44 = vpop.f32.mrb[248].mxu1 }
 0x6aa   : > { %5742 = vst [vmem:[%s10364_s7 + $0x30] sm:$0xff] %v5710_v14  ;;  %v5358_v25 = vadd.f32 %v5357_v44, %v10281_v26  ;;  %v5359_v5 = vpop.f32.mrb[249].mxu1 }
 0x6ab   : > { %v5360_v15 = vpop.f32.mrb[250].mxu1 }
 0x6ac   : > { %v5567_v63 = vadd.f32 %v9874_v11, %v5358_v25  ;;  %v5361_v7 = vpop.f32.mrb[251].mxu1 }
 0x6ae   : > { %v5711_v31 = vadd.f32 %v6941_v49, %v5567_v63  ;;  %v6948_v63 = vld [vmem:[%s7173_s25 + $0x70] sm:$0xff] }
 0x6b0   : > { %5743 = vst [vmem:[%s10364_s7 + $0x38] sm:$0xff] %v5711_v31 }
 0x6b1   : > { %v5364_v57 = vpop.f32.mrb[72].mxu1 }
 0x6b2   : > { %v6436_v37 = vadd.f32 %v10037_v36, %v5364_v57  ;;  %v5366_v60 = vpop.f32.mrb[73].mxu1 }
 0x6b3   : > { %v5367_v39 = vpop.f32.mrb[74].mxu1  ;;  %v11224_v60 = vld [vmem:[#allocation51_spill] sm:$0xff] }
 0x6b4   : > { %v5574_v19 = vadd.f32 %v6436_v37, %v9891_v45  ;;  %v6437_v26 = vadd.f32 %v10037_v36, %v5367_v39  ;;  %v5369_v4 = vpop.f32.mrb[75].mxu1 }
 0x6b6   : > { %v5712_v11 = vadd.f32 %v6942_v46, %v5574_v19  ;;  %v5577_v28 = vadd.f32 %v6437_v26, %v9896_v21  ;;  %v6949_v26 = vld [vmem:[%s7173_s25 + $0x78] sm:$0xff] }
 0x6b8   : > { %5744 = vst [vmem:[%s10364_s7 + $0x40] sm:$0xff] %v5712_v11  ;;  %v5713_v6 = vadd.f32 %v6943_v35, %v5577_v28  ;;  %v11225_v35 = vld [vmem:[#allocation53_spill] sm:$0xff] }
 0x6b9   : > { %v5372_v1 = vpop.f32.mrb[252].mxu1 }
 0x6ba   : > { %5745 = vst [vmem:[%s10364_s7 + $0x48] sm:$0xff] %v5713_v6  ;;  %v5373_v58 = vpop.f32.mrb[253].mxu1 }
 0x6bb   : > { %v5374_v29 = vpop.f32.mrb[254].mxu1  ;;  %v6950_v58 = vld [vmem:[%s7173_s25 + $0x80] sm:$0xff] }
 0x6bc   : > { %v5375_v45 = vadd.f32 %v5374_v29, %v10288_v61  ;;  %v5376_v12 = vpop.f32.mrb[255].mxu1 }
 0x6be   : > { %v5584_v18 = vadd.f32 %v9893_v24, %v5375_v45  ;;  %v11226_v45 = vld [vmem:[#allocation85_spill] sm:$0xff] }
 0x6c0   : > { %v5714_v48 = vadd.f32 %v6944_v62, %v5584_v18  ;;  %v6951_v18 = vld [vmem:[%s7173_s25 + $0x88] sm:$0xff] }
 0x6c1   : > { %v5379_v13 = vpop.f32.mrb[80].mxu1 }
 0x6c2   : > { %5746 = vst [vmem:[%s10364_s7 + $0x50] sm:$0xff] %v5714_v48  ;;  %v6438_v21 = vadd.f32 %v10037_v36, %v5379_v13  ;;  %v5381_v56 = vpop.f32.mrb[81].mxu1 }
 0x6c3   : > { %v5382_v41 = vpop.f32.mrb[82].mxu1 }
 0x6c4   : > { %v5589_v50 = vadd.f32 %v6438_v21, %v11221_v16  ;;  %v5383_v20 = vpop.f32.mrb[83].mxu1  ;;  %v11227_v16 = vld [vmem:[#allocation84_spill] sm:$0xff] }
 0x6c5   : > { %v6952_v20 = vld [vmem:[%s7173_s25 + $0x90] sm:$0xff] }
 0x6c6   : > { %v5715_v52 = vadd.f32 %v6945_v51, %v5589_v50 }
 0x6c8   : > { %5747 = vst [vmem:[%s10364_s7 + $0x58] sm:$0xff] %v5715_v52 }
 0x6c9   : > { %v5386_v61 = vpop.f32.mrb[0].mxu1 }
 0x6ca   : > { %v5387_v24 = vadd.f32 %v5386_v61, %v10295_v22  ;;  %v5388_v43 = vpop.f32.mrb[1].mxu1 }
 0x6cb   : > { %v5389_v3 = vpop.f32.mrb[2].mxu1 }
 0x6cc   : > { %v5596_v30 = vadd.f32 %v11222_v40, %v5387_v24  ;;  %v5390_v47 = vadd.f32 %v5389_v3, %v10298_v0  ;;  %v5391_v27 = vpop.f32.mrb[3].mxu1  ;;  %v11228_v3 = vld [vmem:[#allocation24_spill] sm:$0xff] }
 0x6ce   : > { %v5716_v32 = vadd.f32 %v6946_v54, %v5596_v30  ;;  %v5599_v59 = vadd.f32 %v11223_v9, %v5390_v47  ;;  %v6953_v47 = vld [vmem:[%s7173_s25 + $0x98] sm:$0xff] }
 0x6d0   : > { %5748 = vst [vmem:[%s10364_s7 + $0x60] sm:$0xff] %v5716_v32  ;;  %v5717_v14 = vadd.f32 %v6947_v8, %v5599_v59  ;;  %v11229_v59 = vld [vmem:[#allocation36_spill] sm:$0xff] }
 0x6d1   : > { %v5394_v44 = vpop.f32.mrb[88].mxu1 }
 0x6d2   : > { %5749 = vst [vmem:[%s10364_s7 + $0x68] sm:$0xff] %v5717_v14  ;;  %v5395_v22 = vpop.f32.mrb[89].mxu1 }
 0x6d3   : > { %v5396_v25 = vpop.f32.mrb[90].mxu1  ;;  %v6954_v22 = vld [vmem:[%s7173_s25 + $0xa0] sm:$0xff] }
 0x6d4   : > { %v6439_v5 = vadd.f32 %v10037_v36, %v5396_v25  ;;  %v5398_v15 = vpop.f32.mrb[91].mxu1 }
 0x6d6   : > { %v5606_v0 = vadd.f32 %v6439_v5, %v9920_v53  ;;  %v11230_v5 = vld [vmem:[#allocation28_spill] sm:$0xff] }
 0x6d8   : > { %v5718_v7 = vadd.f32 %v6948_v63, %v5606_v0  ;;  %v6955_v0 = vld [vmem:[%s7173_s25 + $0xa8] sm:$0xff] }
 0x6d9   : > { %v5401_v49 = vpop.f32.mrb[4].mxu1 }
 0x6da   : > { %5750 = vst [vmem:[%s10364_s7 + $0x70] sm:$0xff] %v5718_v7  ;;  %v5402_v31 = vadd.f32 %v5401_v49, %v10305_v34  ;;  %v5403_v57 = vpop.f32.mrb[5].mxu1 }
 0x6db   : > { %v5404_v37 = vpop.f32.mrb[6].mxu1 }
 0x6dc   : > { %v5611_v39 = vadd.f32 %v11224_v60, %v5402_v31  ;;  %v5405_v19 = vpop.f32.mrb[7].mxu1  ;;  %v11231_v37 = vld [vmem:[#allocation75_spill] sm:$0xff]  ;;  %v6956_v60 = vld [vmem:[%s7173_s25 + $0xb0] sm:$0xff] }
 0x6de   : > { %v5719_v4 = vadd.f32 %v6949_v26, %v5611_v39 }
 0x6e0   : > { %5751 = vst [vmem:[%s10364_s7 + $0x78] sm:$0xff] %v5719_v4 }
 0x6e1   : > { %v5408_v46 = vpop.f32.mrb[96].mxu1 }
 0x6e2   : > { %v6440_v53 = vadd.f32 %v10037_v36, %v5408_v46  ;;  %v5410_v11 = vpop.f32.mrb[97].mxu1 }
 0x6e3   : > { %v5411_v28 = vpop.f32.mrb[98].mxu1 }
 0x6e4   : > { %v5618_v6 = vadd.f32 %v6440_v53, %v11225_v35  ;;  %v6441_v34 = vadd.f32 %v10037_v36, %v5411_v28  ;;  %v5413_v1 = vpop.f32.mrb[99].mxu1  ;;  %v11232_v53 = vld [vmem:[#allocation35_spill] sm:$0xff]  ;;  %v6957_v35 = vld [vmem:[%s7173_s25 + $0xb8] sm:$0xff] }
 0x6e6   : > { %v5720_v29 = vadd.f32 %v6950_v58, %v5618_v6  ;;  %v5621_v12 = vadd.f32 %v6441_v34, %v11226_v45  ;;  %v11233_v45 = vld [vmem:[#allocation86_spill] sm:$0xff] }
 0x6e8   : > { %5752 = vst [vmem:[%s10364_s7 + $0x80] sm:$0xff] %v5720_v29  ;;  %v5721_v62 = vadd.f32 %v6951_v18, %v5621_v12 }
 0x6e9   : > { %v5416_v48 = vpop.f32.mrb[8].mxu1 }
 0x6ea   : > { %5753 = vst [vmem:[%s10364_s7 + $0x88] sm:$0xff] %v5721_v62  ;;  %v5417_v13 = vpop.f32.mrb[9].mxu1  ;;  %v6958_v62 = vld [vmem:[%s7173_s25 + $0xc0] sm:$0xff] }
 0x6eb   : > { %v5418_v21 = vpop.f32.mrb[10].mxu1  ;;  %v11234_v13 = vld [vmem:[#allocation98_spill] sm:$0xff] }
 0x6ec   : > { %v5419_v56 = vadd.f32 %v5418_v21, %v10312_v10  ;;  %v5420_v41 = vpop.f32.mrb[11].mxu1 }
 0x6ee   : > { %v5628_v50 = vadd.f32 %v11227_v16, %v5419_v56  ;;  %v6959_v56 = vld [vmem:[%s7173_s25 + $0xc8] sm:$0xff] }
 0x6f0   : > { %v5722_v51 = vadd.f32 %v6952_v20, %v5628_v50 }
 0x6f1   : > { %v5423_v52 = vpop.f32.mrb[104].mxu1 }
 0x6f2   : > { %5754 = vst [vmem:[%s10364_s7 + $0x90] sm:$0xff] %v5722_v51  ;;  %v6442_v61 = vadd.f32 %v10037_v36, %v5423_v52  ;;  %v5425_v24 = vpop.f32.mrb[105].mxu1 }
 0x6f3   : > { %v5426_v43 = vpop.f32.mrb[106].mxu1 }
 0x6f4   : > { %v5633_v40 = vadd.f32 %v6442_v61, %v11228_v3  ;;  %v5427_v30 = vpop.f32.mrb[107].mxu1  ;;  %v11235_v61 = vld [vmem:[#allocation90_spill] sm:$0xff]  ;;  %v6960_v43 = vld [vmem:[%s7173_s25 + $0xd0] sm:$0xff] }
 0x6f6   : > { %v5723_v27 = vadd.f32 %v6953_v47, %v5633_v40 }
 0x6f8   : > { %5755 = vst [vmem:[%s10364_s7 + $0x98] sm:$0xff] %v5723_v27 }
 0x6f9   : > { %v5430_v10 = vpop.f32.mrb[12].mxu1 }
 0x6fa   : > { %v5431_v54 = vadd.f32 %v5430_v10, %v10319_v55  ;;  %v5432_v32 = vpop.f32.mrb[13].mxu1 }
 0x6fb   : > { %v5433_v9 = vpop.f32.mrb[14].mxu1 }
 0x6fc   : > { %v5640_v8 = vadd.f32 %v11229_v59, %v5431_v54  ;;  %v5434_v14 = vadd.f32 %v5433_v9, %v10322_v38  ;;  %v5435_v44 = vpop.f32.mrb[15].mxu1 }
 0x6fe   : > { %v5724_v25 = vadd.f32 %v6954_v22, %v5640_v8  ;;  %v5643_v15 = vadd.f32 %v11230_v5, %v5434_v14 }
 0x700   : > { %5756 = vst [vmem:[%s10364_s7 + $0xa0] sm:$0xff] %v5724_v25  ;;  %v5725_v63 = vadd.f32 %v6955_v0, %v5643_v15 }
 0x701   : > { %v5438_v7 = vpop.f32.mrb[112].mxu1 }
 0x702   : > { %5757 = vst [vmem:[%s10364_s7 + $0xa8] sm:$0xff] %v5725_v63  ;;  %v5439_v55 = vpop.f32.mrb[113].mxu1 }
 0x703   : > { %v5440_v49 = vpop.f32.mrb[114].mxu1 }
 0x704   : > { %v6443_v31 = vadd.f32 %v10037_v36, %v5440_v49  ;;  %v5442_v57 = vpop.f32.mrb[115].mxu1 }
 0x705   : > { %v6962_v57 = vld [vmem:[%s7173_s25 + $0xe0] sm:$0xff] }
 0x706   : > { %v5650_v38 = vadd.f32 %v6443_v31, %v11231_v37 }
 0x708   : > { %v5726_v39 = vadd.f32 %v6956_v60, %v5650_v38  ;;  %v6963_v60 = vld [vmem:[%s7173_s25 + $0xd8] sm:$0xff] }
 0x709   : > { %v5445_v19 = vpop.f32.mrb[16].mxu1 }
 0x70a   : > { %5758 = vst [vmem:[%s10364_s7 + $0xb0] sm:$0xff] %v5726_v39  ;;  %v5446_v26 = vadd.f32 %v5445_v19, %v10329_v23  ;;  %v5447_v4 = vpop.f32.mrb[17].mxu1  ;;  %v6964_v19 = vld [vmem:[%s7173_s25 + $0xe8] sm:$0xff] }
 0x70b   : > { %v5448_v46 = vpop.f32.mrb[18].mxu1 }
 0x70c   : > { %v5655_v11 = vadd.f32 %v11232_v53, %v5446_v26  ;;  %v5449_v28 = vpop.f32.mrb[19].mxu1 }
 0x70e   : > { %v5727_v6 = vadd.f32 %v6957_v35, %v5655_v11  ;;  %v6965_v35 = vld [vmem:[%s7173_s25 + $0xf8] sm:$0xff] }
 0x710   : > { %5759 = vst [vmem:[%s10364_s7 + $0xb8] sm:$0xff] %v5727_v6 }
 0x711   : > { %v5452_v34 = vpop.f32.mrb[120].mxu1 }
 0x712   : > { %v6444_v1 = vadd.f32 %v10037_v36, %v5452_v34  ;;  %v5454_v58 = vpop.f32.mrb[121].mxu1 }
 0x713   : > { %v5455_v29 = vpop.f32.mrb[122].mxu1  ;;  %v6966_v58 = vld [vmem:[%s7173_s25 + $0xf0] sm:$0xff] }
 0x714   : > { %v5662_v12 = vadd.f32 %v6444_v1, %v11233_v45  ;;  %v6445_v23 = vadd.f32 %v10037_v36, %v5455_v29  ;;  %v5457_v18 = vpop.f32.mrb[123].mxu1 }
 0x716   : > { %v5728_v48 = vadd.f32 %v6958_v62, %v5662_v12  ;;  %v5665_v21 = vadd.f32 %v6445_v23, %v11234_v13 }
 0x718   : > { %5760 = vst [vmem:[%s10364_s7 + $0xc0] sm:$0xff] %v5728_v48  ;;  %v5729_v41 = vadd.f32 %v6959_v56, %v5665_v21 }
 0x719   : > { %v5460_v16 = vpop.f32.mrb[20].mxu1 }
 0x71a   : > { %5761 = vst [vmem:[%s10364_s7 + $0xc8] sm:$0xff] %v5729_v41  ;;  %v5461_v50 = vpop.f32.mrb[21].mxu1 }
 0x71b   : > { %v5462_v20 = vpop.f32.mrb[22].mxu1 }
 0x71c   : > { %v5463_v51 = vadd.f32 %v5462_v20, %v10336_v42  ;;  %v5464_v52 = vpop.f32.mrb[23].mxu1 }
 0x71e   : > { %v5672_v24 = vadd.f32 %v11235_v61, %v5463_v51 }
 0x720   : > { %v5730_v36 = vadd.f32 %v6960_v43, %v5672_v24 }
 0x721   : > { %v5467_v3 = vpop.f32.mrb[128].mxu1 }
 0x722   : > { %5762 = vst [vmem:[%s10364_s7 + $0xd0] sm:$0xff] %v5730_v36  ;;  %v5469_v40 = vpop.f32.mrb[129].mxu1 }
 0x723   : > { %v5470_v30 = vpop.f32.mrb[130].mxu1 }
 0x724   : > { %v5471_v47 = vpop.f32.mrb[131].mxu1 }
 0x729   : > { %v5474_v27 = vpop.f32.mrb[24].mxu1 }
 0x72a   : > { %v5475_v10 = vadd.f32 %v5474_v27, %v10344_v2  ;;  %v5476_v54 = vpop.f32.mrb[25].mxu1  ;;  %v6961_v2 = vld [vmem:[%s10541_s4] ss:$0 sm:$0xff] }
 0x72b   : > { %v5477_v32 = vpop.f32.mrb[26].mxu1 }
 0x72c   : > { %v5478_v9 = vadd.f32 %v5477_v32, %v10347_v17  ;;  %v5479_v59 = vpop.f32.mrb[27].mxu1  ;;  %v6446_v17 = vadd.f32 %v6961_v2, %v5467_v3 }
 0x731   : > { %v5482_v8 = vpop.f32.mrb[136].mxu1 }
 0x732   : > { %v5483_v42 = vpop.f32.mrb[137].mxu1 }
 0x733   : > { %v5484_v14 = vpop.f32.mrb[138].mxu1 }
 0x734   : > { %v5486_v44 = vpop.f32.mrb[139].mxu1  ;;  %v6447_v11 = vadd.f32 %v6961_v2, %v5484_v14 }
 0x739   : > { %v5489_v22 = vpop.f32.mrb[28].mxu1 }
 0x73a   : > { %v5490_v25 = vadd.f32 %v5489_v22, %v10354_v33  ;;  %v5491_v5 = vpop.f32.mrb[29].mxu1 }
 0x73b   : > { %v5492_v15 = vpop.f32.mrb[30].mxu1 }
 0x73c   : > { %v5493_v0 = vpop.f32.mrb[31].mxu1 }
 0x741   : > { %v6394_v63 = vpop.f32.mrb[32].mxu1 }
 0x742   : > { %v5684_v7 = vadd.f32 %v6394_v63, %v5475_v10  ;;  %v5676_v55 = vpop.f32.mrb[33].mxu1 }
 0x743   : > { %v5677_v49 = vadd.f32 %v6446_v17, %v5676_v55  ;;  %v6395_v31 = vpop.f32.mrb[34].mxu1 }
 0x744   : > { %v5732_v33 = vadd.f32 %v6962_v57, %v5684_v7  ;;  %v5687_v37 = vadd.f32 %v6395_v31, %v5478_v9  ;;  %v5679_v38 = vpop.f32.mrb[35].mxu1 }
 0x745   : > { %v5731_v39 = vadd.f32 %v6963_v60, %v5677_v49 }
 0x746   : > { %5764 = vst [vmem:[%s10364_s7 + $0xe0] sm:$0xff] %v5732_v33  ;;  %v5733_v26 = vadd.f32 %v6964_v19, %v5687_v37 }
 0x747   : > { %5763 = vst [vmem:[%s10364_s7 + $0xd8] sm:$0xff] %v5731_v39 }
 0x748   : > { %5765 = vst [vmem:[%s10364_s7 + $0xe8] sm:$0xff] %v5733_v26 }
 0x749   : > { %v6398_v4 = vpop.f32.mrb[36].mxu1 }
 0x74a   : > { %v5699_v46 = vadd.f32 %v6398_v4, %v5490_v25  ;;  %v5691_v53 = vpop.f32.mrb[37].mxu1 }
 0x74b   : > { %v6399_v28 = vpop.f32.mrb[38].mxu1 }
 0x74c   : > { %v5735_v6 = vadd.f32 %v6965_v35, %v5699_v46  ;;  %v5693_v34 = vpop.f32.mrb[39].mxu1 }
 0x74d   : > { %v5694_v1 = vadd.f32 %v6447_v11, %v5693_v34 }
 0x74e   : > { %5767 = vst [vmem:[%s10364_s7 + $0xf8] sm:$0xff] %v5735_v6 }
 0x74f   : > { %v5734_v29 = vadd.f32 %v6966_v58, %v5694_v1 }
 0x751   : > { %5766 = vst [vmem:[%s10364_s7 + $0xf0] sm:$0xff] %v5734_v29 }
 0x752   : > { %6980 = shalt.err (!%p6977_p3)
}
 0x753   : > { %s6981_s25 = scalar_lea.hbm %s10488_s14, 4096  ;;  %s6985_s6 = scalar_lea.hbm %s10542_s5, 8192 }
 0x754   : > { %p6982_p4 = scmp.ne.s32.totalorder %s10488_s14, %s6981_s25  ;;  %p6986_p9 = scmp.lt.u32.totalorder %s10488_s14, %s10542_s5 }
 0x755   : > { %p6987_p10 = scmp.lt.u32.totalorder %s6985_s6, %s6981_s25  ;;  %p6989_p12 = scmp.lt.u32.totalorder %s6981_s25, %s10488_s14 }
 0x756   : > { %p6983_p7 = pnand %p6982_p4, %p7105_p5 }
 0x757   : > { %p6988_p11 = por %p6987_p10, %p6986_p9 }
 0x758   : > { %p6984_p8 = pneg %p6983_p7 }
 0x759   : > { %p6990_p13 = por %p6989_p12, %p6988_p11 }
 0x75b   : > { %p6991_p0 = pnand %p6990_p13, %p6984_p8 }
 0x75d   : > { %6994 = shalt.err (!%p6991_p0)
}
 0x75e   : > { %s7035_s9 = smov 128   ;;  %s7036_s10 = smov 8  }
 0x75f   : > { %6736 = dma.vmem_to_hbm [thread:$0]  (%p7105_p5), %s10490_s11, 4096, %s10488_s14, %s10496_s22, %s7035_s9, %s7035_s9, %s7036_s10  }
 0x760 PF: > { %p6742_p1 = scmp.ge.s32.totalorder %s7029_s21, 2  ;;  %s5797_s12 = sand.u32 1, %s7017_s18  }
 0x761   : > { %s5798_s13 = scalar_lea.sflag [#allocation4], %s5797_s12 }
 0x762   : > { %p6739_p2 = pnand %p6742_p1, %p7109_p6 }
 0x764   : > { %7012 = dma.done.wait (!%p6739_p2), %s5798_s13, 4096  }
 0x765   : > { %7014 = vsyncadd (!%p6739_p2), %s5798_s13, 4294963200  ;;  %p15_p3 = scmp.ge.s32.totalorder %s7092_s24, 4   ;;  %s11236_s18 = smov %s7021_s19 }
 0x766   : > { %s11237_s19 = smov %s7025_s20  ;;  %s11238_s20 = smov %s7103_s27 }
 0x767   : > { %s11239_s21 = smov %s7092_s24  ;;  %17 = sbr.rel (!%p15_p3) target bundleno = 3 (0x3), region = 77 }
 0x76e   :  { %5803 = vsyncpa [#allocation4], 1 }
 0x76f   :  { %5805 = vsyncpa [#allocation4 + $0x1], 1 }

</bundles_post_ra>
